<compile_context>
chip_gen: v7x
topology: tpu7x:2x2x1
jax: 0.10.0
libtpu: 0.0.40
codegen_flags: <defaults>
</compile_context>

<pallas_src>
import math
from functools import partial

import jax
import jax.numpy as jnp
from jax import lax
from jax.experimental import pallas as pl
from jax.experimental.pallas import tpu as pltpu

# ----------------------------- hyperparameters ------------------------------
HIDDEN_SIZE = 32
LATENT_SIZE = 16
BIDIRECTIONAL = False
NUM_LAYERS = 1
WORD_DROPOUT_RATE = 0.2          # must be > 0 (the reference decoder requires it)
VOCAB_SIZE = 24
MAX_SEQ_LEN = 9                  # drug sequences have MAX_SEQ_LEN - 1 = 8 timesteps
SOS_IDX, EOS_IDX, PAD_IDX, UNK_IDX = 1, 2, 0, 3
PRIOR = "Standard"
ALPHA, BETA, GAMMA = 1.0, 1.0, 1.0
HIDDEN_FACTOR = (2 if BIDIRECTIONAL else 1) * NUM_LAYERS   # == 1 here

LANE = 128                       # per-gate lane slab width (vreg lane count)
F32 = jnp.float32
_DN_LAST = (((1,), (1,)), ((), ()))      # dot_general: contract last dim with last dim


# --------------------------- fused forward kernel ----------------------------
def _make_evae_kernel(T, B, Bp):
    H, V, L, GP = HIDDEN_SIZE, VOCAB_SIZE, LATENT_SIZE, LANE
    log2pi = math.log(2.0 * math.pi)

    def kernel(enc_oh_ref, dec_oh_ref, lens_ref, eps_ref, ts_ref, wlse_ref, tgt_ref,
               enc_win_ref, enc_wrec_ref, dec_win_ref, dec_wrec_ref, bias_ref,
               w_h2ml_ref, w_l2h_ref, w_o2v_ref, out_ref, dec_hs):

        lens = lens_ref[...]                       # (Bp, 1) f32 lengths (0 = padded row)
        bias = bias_ref[...]                       # (8, 3*GP) packed bias slab

        def mm(a, b):
            return jnp.dot(a, b, preferred_element_type=jnp.float32)

        def run_gru(oh_ref, w_in_ref, w_rec_ref, b_in_row, b_nh_row, h0, store):
            # Hoisted *fused* input projection for all T steps and all 3 gates at
            # once; kept as a value (vregs) and sliced at 8-sublane / 128-lane
            # aligned offsets inside the loop.
            xproj = mm(oh_ref[...], w_in_ref[...]) + b_in_row      # (T*Bp, 3*GP)
            bnh = jnp.broadcast_to(b_nh_row, (Bp, H))              # hoisted broadcast
            h = h0
            for t in range(T):                                     # static unroll
                rs, re = t * Bp, (t + 1) * Bp                      # 8-aligned row window
                g = mm(h, w_rec_ref[...])                          # single fused gate matmul
                r = jax.nn.sigmoid(xproj[rs:re, 0:H] + g[:, 0:H])
                zg = jax.nn.sigmoid(xproj[rs:re, GP:GP + H] + g[:, GP:GP + H])
                n = jnp.tanh(xproj[rs:re, 2 * GP:2 * GP + H]
                             + r * (g[:, 2 * GP:2 * GP + H] + bnh))
                h_new = (1.0 - zg) * n + zg * h
                valid = float(t) < lens                            # (Bp, 1) packed-seq mask
                h = jnp.where(valid, h_new, h)                     # freeze hidden past length
                if store:
                    dec_hs[rs:re, :] = jnp.where(valid, h_new, 0.0)  # pad_packed -> 0
            return h

        # ------------------------------ encoder -------------------------------
        hidden = run_gru(enc_oh_ref, enc_win_ref, enc_wrec_ref,
                         bias[0:1, :], bias[1:2, 0:H],
                         jnp.zeros((Bp, H), jnp.float32), False)

        # ----------------- reparameterize (fused mean | logv) ------------------
        ml = mm(hidden, w_h2ml_ref[...]) + bias[4:5, 0:2 * GP]     # (Bp, 2*GP)
        mean = ml[:, 0:L]
        logv = ml[:, GP:GP + L]
        z = mean + eps_ref[...] * jnp.exp(0.5 * logv)              # (Bp, L)

        # ------------------------ latent2hidden + decoder ----------------------
        dec_h0 = mm(z, w_l2h_ref[...]) + bias[5:6, 0:H]
        run_gru(dec_oh_ref, dec_win_ref, dec_wrec_ref,
                bias[2:3, :], bias[3:4, 0:H], dec_h0, True)

        # --------------- reconstruction NLL (sum, pad ignored) -----------------
        logits = mm(dec_hs[...], w_o2v_ref[...]) + bias[6:7, 0:V]  # (T*Bp, V)
        mrow = jnp.max(logits, axis=-1, keepdims=True)
        lse = mrow + jnp.log(jnp.sum(jnp.exp(logits - mrow), axis=-1, keepdims=True))
        tgt = tgt_ref[...]                                         # (T*Bp, 1) int32
        colv = lax.broadcasted_iota(jnp.int32, (T * Bp, V), 1)
        logit_tgt = jnp.sum(jnp.where(colv == tgt, logits, 0.0), axis=-1, keepdims=True)
        tmask = (tgt != PAD_IDX).astype(jnp.float32)
        recon = jnp.sum(jnp.sum(tmask * (lse - logit_tgt), axis=1, keepdims=True),
                        axis=0, keepdims=True)                     # (1, 1)

        # ------- static masks excluding padded batch rows / columns (>= B) ------
        bmask = (lax.broadcasted_iota(jnp.int32, (Bp, 1), 0) < B).astype(jnp.float32)
        colB = lax.broadcasted_iota(jnp.int32, (Bp, Bp), 1)
        rowB = lax.broadcasted_iota(jnp.int32, (Bp, Bp), 0)
        pmask = jnp.logical_and(rowB < B, colB < B)

        # ------------- sample-based diagonal-MVN KL (matches reference) ---------
        inv = jnp.exp(-logv)
        sum_logv = jnp.sum(logv, axis=1, keepdims=True)            # reused below
        sumsq_z = jnp.sum(z * z, axis=1, keepdims=True)            # reused below
        maha = jnp.sum((z - mean) ** 2 * inv, axis=1, keepdims=True)
        kl = jnp.sum(bmask * (-0.5) * (sum_logv + maha - sumsq_z),
                     axis=0, keepdims=True)                        # (1, 1)

        # -------------------- marginal posterior divergence ---------------------
        ones_row = jnp.ones((1, L), jnp.float32)
        minv = mean * inv
        A = lax.dot_general(z * z, inv, _DN_LAST, preferred_element_type=jnp.float32)
        Bm = lax.dot_general(z, minv, _DN_LAST, preferred_element_type=jnp.float32)
        D_T = lax.dot_general(ones_row, mean * minv, _DN_LAST,
                              preferred_element_type=jnp.float32)  # (1, Bp)
        S_T = lax.dot_general(ones_row, logv, _DN_LAST,
                              preferred_element_type=jnp.float32)  # (1, Bp)
        Lmat = -0.5 * (L * log2pi + S_T + A - 2.0 * Bm + D_T)      # (Bp, Bp) log N(z_b; mu_r)
        Y = jnp.where(colB < B, Lmat + wlse_ref[...], -1e30)       # kill padded columns
        ym = jnp.max(Y, axis=1, keepdims=True)
        logq = ym + jnp.log(jnp.sum(jnp.exp(Y - ym), axis=1, keepdims=True))    # (Bp, 1)
        logp = -0.5 * (L * log2pi + sumsq_z)                                     # (Bp, 1)
        mkl = jnp.sum(bmask * (logq - logp), axis=0, keepdims=True)              # (1, 1)

        # ---------------------------------- MMD ---------------------------------
        x = ts_ref[...]
        sumsq_x = jnp.sum(x * x, axis=1, keepdims=True)
        zz_T = lax.dot_general(ones_row, z * z, _DN_LAST, preferred_element_type=jnp.float32)
        xx_T = lax.dot_general(ones_row, x * x, _DN_LAST, preferred_element_type=jnp.float32)
        inv_dim2 = 1.0 / float(L * L)                 # == (diff^2).mean(dim) / dim

        def kmean(a, b, a2, b2_T):
            ab = lax.dot_general(a, b, _DN_LAST, preferred_element_type=jnp.float32)
            d2 = jnp.maximum(a2 + b2_T - 2.0 * ab, 0.0)            # clamp cancellation noise
            k = jnp.exp(-d2 * inv_dim2)
            s = jnp.sum(jnp.sum(jnp.where(pmask, k, 0.0), axis=1, keepdims=True),
                        axis=0, keepdims=True)
            return s * (1.0 / float(B * B))

        mmd = (kmean(x, x, sumsq_x, xx_T) + kmean(z, z, sumsq_z, zz_T)
               - 2.0 * kmean(x, z, sumsq_x, zz_T))                 # (1, 1)

        # ----- pack the four scalar losses into lanes 0..3 of a dense slab ------
        pos = lax.broadcasted_iota(jnp.int32, (1, GP), 1)
        row = (jnp.where(pos == 0, recon, 0.0) + jnp.where(pos == 1, kl, 0.0)
               + jnp.where(pos == 2, mkl, 0.0) + jnp.where(pos == 3, mmd, 0.0))
        out_ref[...] = jnp.broadcast_to(row, (8, GP))

    return kernel


# ------------------------------- parameters ----------------------------------
def _uniform(key, shape, scale):
    return jax.random.uniform(key, shape, dtype=F32, minval=-scale, maxval=scale)


def init_params(key):
    """Parameters pre-packed into the lane-padded slabs the kernel consumes."""
    H, V, L, GP = HIDDEN_SIZE, VOCAB_SIZE, LATENT_SIZE, LANE
    ks = jax.random.split(key, 28)
    kH = 1.0 / math.sqrt(H)
    kin = 1.0 / math.sqrt(H * HIDDEN_FACTOR)
    kl_ = 1.0 / math.sqrt(L)

    def gate_slab(keys, rows):
        # fused (rows, 3*GP): gate g's real block lives at columns [g*GP, g*GP+H)
        w = jnp.zeros((rows, 3 * GP), F32)
        for g in range(3):
            w = w.at[:, g * GP:g * GP + H].set(_uniform(keys[g], (rows, H), kH))
        return w

    enc_w_in = gate_slab(ks[0:3], V)
    enc_w_rec = gate_slab(ks[3:6], H)
    dec_w_in = gate_slab(ks[10:13], V)
    dec_w_rec = gate_slab(ks[13:16], H)

    bias = jnp.zeros((8, 3 * GP), F32)
    # row 0: enc (b_r | b_z | b_ni) in the gate slabs; row 1: enc b_nh
    for g, kk in enumerate(ks[6:9]):
        bias = bias.at[0, g * GP:g * GP + H].set(_uniform(kk, (H,), kH))
    bias = bias.at[1, 0:H].set(_uniform(ks[9], (H,), kH))
    # row 2 / 3: same for the decoder GRU
    for g, kk in enumerate(ks[16:19]):
        bias = bias.at[2, g * GP:g * GP + H].set(_uniform(kk, (H,), kH))
    bias = bias.at[3, 0:H].set(_uniform(ks[19], (H,), kH))

    # fused hidden2mean | hidden2logv weight (mean at lanes [0:L], logv at [GP:GP+L])
    w_h2ml = jnp.zeros((H, 2 * GP), F32)
    w_h2ml = w_h2ml.at[:, 0:L].set(_uniform(ks[20], (H, L), kin))
    w_h2ml = w_h2ml.at[:, GP:GP + L].set(_uniform(ks[22], (H, L), kin))
    bias = bias.at[4, 0:L].set(_uniform(ks[21], (L,), kin))          # b_h2m
    bias = bias.at[4, GP:GP + L].set(_uniform(ks[23], (L,), kin))    # b_h2v

    w_l2h = _uniform(ks[24], (L, H * NUM_LAYERS), kl_)
    bias = bias.at[5, 0:H].set(_uniform(ks[25], (H * NUM_LAYERS,), kl_))
    w_o2v = _uniform(ks[26], (H, V), kH)
    bias = bias.at[6, 0:V].set(_uniform(ks[27], (V,), kH))

    return {"enc_w_in": enc_w_in, "enc_w_rec": enc_w_rec,
            "dec_w_in": dec_w_in, "dec_w_rec": dec_w_rec,
            "bias": bias, "w_h2ml": w_h2ml, "w_l2h": w_l2h, "w_o2v": w_o2v}


# ------------------------------- model glue -----------------------------------
def one_hot_embedding(seq):
    # matches EVAE.one_hot_embedding: index 0 (pad) maps to the all-zeros vector
    oh = jax.nn.one_hot(seq, VOCAB_SIZE, dtype=F32)
    return oh * (seq != 0).astype(F32)[..., None]


def _round_up(x, m):
    return ((x + m - 1) // m) * m


@partial(jax.jit, static_argnames=("num_samples",))
def _vae_loss_impl(params, inp, tgt, lens, num_samples, key):
    B, T = inp.shape
    Bp = _round_up(B, 8)                     # pad batch to the 8-sublane tile
    k_eps, k_drop, k_mmd = jax.random.split(key, 3)

    pad_rows = ((0, Bp - B), (0, 0))
    inp_p = jnp.pad(inp, pad_rows, constant_values=PAD_IDX)
    tgt_p = jnp.pad(tgt, pad_rows, constant_values=PAD_IDX)
    lens_p = jnp.pad(lens, (0, Bp - B))      # padded rows get length 0

    # NOTE: the pack_padded_sequence sort-by-length / un-sort is dropped; the
    # in-kernel length mask makes the computation order-invariant.
    enc_oh = jnp.transpose(one_hot_embedding(inp_p), (1, 0, 2)).reshape(T * Bp, VOCAB_SIZE)

    # word dropout (sos / pad tokens are never dropped)
    prob = jax.random.uniform(k_drop, (Bp, T), dtype=F32)
    prob = jnp.where((inp_p == SOS_IDX) | (inp_p == PAD_IDX), 1.0, prob)
    dec_seq = jnp.where(prob < WORD_DROPOUT_RATE, UNK_IDX, inp_p)
    dec_oh = jnp.transpose(one_hot_embedding(dec_seq), (1, 0, 2)).reshape(T * Bp, VOCAB_SIZE)

    lens_col = lens_p.astype(F32)[:, None]                          # (Bp, 1)
    eps = jnp.zeros((Bp, LATENT_SIZE), F32).at[:B].set(
        jax.random.normal(k_eps, (B, LATENT_SIZE), dtype=F32))
    true_samples = jnp.zeros((Bp, LATENT_SIZE), F32).at[:B].set(
        jax.random.normal(k_mmd, (B, LATENT_SIZE), dtype=F32))

    # logsumexp weight matrix for the marginal posterior divergence
    off = math.log((num_samples - 1) / ((B - 1) * num_samples))
    wlse = jnp.full((Bp, Bp), off, dtype=F32)
    wlse = wlse.at[jnp.arange(Bp), jnp.arange(Bp)].set(-math.log(float(num_samples)))

    # targets as int32 indices, time-major flattened (matches decoder scratch rows)
    tgt_tm = jnp.transpose(tgt_p, (1, 0)).reshape(T * Bp, 1).astype(jnp.int32)

    losses = pl.pallas_call(
        _make_evae_kernel(T, B, Bp),
        out_shape=jax.ShapeDtypeStruct((8, LANE), F32),
        scratch_shapes=[
            pltpu.VMEM((T * Bp, HIDDEN_SIZE), F32),   # decoder hidden states (time-major)
        ],
    )(enc_oh, dec_oh, lens_col, eps, true_samples, wlse, tgt_tm,
      params["enc_w_in"], params["enc_w_rec"], params["dec_w_in"], params["dec_w_rec"],
      params["bias"], params["w_h2ml"], params["w_l2h"], params["w_o2v"])

    recon_loss = losses[0, 0] / B
    kl_loss = losses[0, 1] / B if BETA > 0.0 else jnp.float32(0.0)
    mkl_loss = losses[0, 2] / B if ALPHA > 0.0 else jnp.float32(0.0)
    mmd_loss = losses[0, 3] if GAMMA > 0.0 else jnp.float32(0.0)
    return recon_loss, kl_loss, mkl_loss, mmd_loss


def vae_loss(params, batch, num_samples, key):
    return _vae_loss_impl(params, batch["drug_inputs"], batch["drug_targets"],
                          batch["drug_len"], num_samples, key)


def evae_forward(params, task, batch, num_samples, key):
    if task == "vae":
        recon, kl, mkl, mmd = vae_loss(params, batch, num_samples, key)
        return recon, kl, mkl, mmd, jnp.float32(0.0)
    # TODO(synk): 'atc' / 'vae + atc' ranking_loss path not implemented (needs ATC ranking batch fields).
    raise NotImplementedError(task)


# ---------------------------------- main --------------------------------------
if __name__ == "__main__":
    key = jax.random.PRNGKey(0)
    k_param, k_tok, k_fwd = jax.random.split(key, 3)
    params = init_params(k_param)

    B, T = 4, MAX_SEQ_LEN - 1                       # (4, 8)
    lens = jnp.array([8, 6, 5, 3], dtype=jnp.int32)
    tok = jax.random.randint(k_tok, (B, T), 4, VOCAB_SIZE, dtype=jnp.int32)
    t_idx = jnp.arange(T)[None, :]
    drug_inputs = jnp.where(
        t_idx == 0, SOS_IDX,
        jnp.where(t_idx < lens[:, None], tok, PAD_IDX)).astype(jnp.int32)
    drug_targets = jnp.where(
        t_idx < lens[:, None] - 1, tok,
        jnp.where(t_idx == lens[:, None] - 1, EOS_IDX, PAD_IDX)).astype(jnp.int32)

    batch = {
        "drug_name": ["drug_a", "drug_b", "drug_c", "drug_d"],
        "drug_inputs": drug_inputs,
        "drug_targets": drug_targets,
        "drug_len": lens,
    }

    outs = evae_forward(params, "vae", batch, num_samples=100, key=k_fwd)
    outs = jax.block_until_ready(outs)
    for name, v in zip(["recon", "kl", "mkl", "mmd", "rank"], outs):
        assert bool(jnp.isfinite(v)), f"non-finite {name} loss"
    print("KERNEL_OK")
</pallas_src>

<mosaic_0001>
module attributes {stable_mosaic.version = 11 : i64} {
  func.func @kernel(%arg0: memref<64x24xf32, #tpu.memory_space<vmem>>, %arg1: memref<64x24xf32, #tpu.memory_space<vmem>>, %arg2: memref<8x1xf32, #tpu.memory_space<vmem>>, %arg3: memref<8x16xf32, #tpu.memory_space<vmem>>, %arg4: memref<8x16xf32, #tpu.memory_space<vmem>>, %arg5: memref<8x8xf32, #tpu.memory_space<vmem>>, %arg6: memref<64x1xi32, #tpu.memory_space<vmem>>, %arg7: memref<24x384xf32, #tpu.memory_space<vmem>>, %arg8: memref<32x384xf32, #tpu.memory_space<vmem>>, %arg9: memref<24x384xf32, #tpu.memory_space<vmem>>, %arg10: memref<32x384xf32, #tpu.memory_space<vmem>>, %arg11: memref<8x384xf32, #tpu.memory_space<vmem>>, %arg12: memref<32x256xf32, #tpu.memory_space<vmem>>, %arg13: memref<16x32xf32, #tpu.memory_space<vmem>>, %arg14: memref<32x24xf32, #tpu.memory_space<vmem>>, %arg15: memref<8x128xf32, #tpu.memory_space<vmem>>, %arg16: memref<64x32xf32, #tpu.memory_space<vmem>>) attributes {dimension_semantics = [], scalar_prefetch = 0 : i64, scratch_operands = 1 : i64, tpu.core_type = #tpu.core_type<tc>} {
    %c0 = arith.constant 0 : index
    %c0_0 = arith.constant 0 : index
    %0 = vector.load %arg2[%c0, %c0_0] : memref<8x1xf32, #tpu.memory_space<vmem>>, vector<8x1xf32>
    %c0_1 = arith.constant 0 : index
    %c0_2 = arith.constant 0 : index
    %1 = vector.load %arg11[%c0_1, %c0_2] : memref<8x384xf32, #tpu.memory_space<vmem>>, vector<8x384xf32>
    %2 = vector.extract_strided_slice %1 {offsets = [0, 0], sizes = [1, 384], strides = [1, 1]} : vector<8x384xf32> to vector<1x384xf32>
    %3 = vector.extract_strided_slice %1 {offsets = [1, 0], sizes = [1, 32], strides = [1, 1]} : vector<8x384xf32> to vector<1x32xf32>
    %cst = arith.constant 0.000000e+00 : f32
    %4 = vector.broadcast %cst : f32 to vector<8x32xf32>
    %c0_3 = arith.constant 0 : index
    %c0_4 = arith.constant 0 : index
    %5 = vector.load %arg0[%c0_3, %c0_4] : memref<64x24xf32, #tpu.memory_space<vmem>>, vector<64x24xf32>
    %c0_5 = arith.constant 0 : index
    %c0_6 = arith.constant 0 : index
    %6 = vector.load %arg7[%c0_5, %c0_6] : memref<24x384xf32, #tpu.memory_space<vmem>>, vector<24x384xf32>
    %cst_7 = arith.constant dense<0.000000e+00> : vector<64x384xf32>
    %7 = tpu.matmul %5, %6, %cst_7 {dimension_numbers = #tpu.dot_dimension_numbers<[1], [0], [0], [1], [0, 0, 1, 1], [], []>} : vector<64x24xf32>, vector<24x384xf32>, vector<64x384xf32> -> vector<64x384xf32>
    %8 = vector.broadcast %2 : vector<1x384xf32> to vector<64x384xf32>
    %9 = arith.addf %7, %8 : vector<64x384xf32>
    %10 = vector.shape_cast %3 : vector<1x32xf32> to vector<1x32xf32>
    %11 = vector.broadcast %10 : vector<1x32xf32> to vector<8x32xf32>
    %c0_8 = arith.constant 0 : index
    %c0_9 = arith.constant 0 : index
    %12 = vector.load %arg8[%c0_8, %c0_9] : memref<32x384xf32, #tpu.memory_space<vmem>>, vector<32x384xf32>
    %cst_10 = arith.constant dense<0.000000e+00> : vector<8x384xf32>
    %13 = tpu.matmul %4, %12, %cst_10 {dimension_numbers = #tpu.dot_dimension_numbers<[1], [0], [0], [1], [0, 0, 1, 1], [], []>} : vector<8x32xf32>, vector<32x384xf32>, vector<8x384xf32> -> vector<8x384xf32>
    %14 = vector.extract_strided_slice %9 {offsets = [0, 0], sizes = [8, 32], strides = [1, 1]} : vector<64x384xf32> to vector<8x32xf32>
    %15 = vector.extract_strided_slice %13 {offsets = [0, 0], sizes = [8, 32], strides = [1, 1]} : vector<8x384xf32> to vector<8x32xf32>
    %16 = arith.addf %14, %15 : vector<8x32xf32>
    %17 = arith.negf %16 : vector<8x32xf32>
    %18 = math.exp %17 : vector<8x32xf32>
    %cst_11 = arith.constant 1.000000e+00 : f32
    %19 = vector.broadcast %cst_11 : f32 to vector<8x32xf32>
    %20 = arith.addf %19, %18 : vector<8x32xf32>
    %21 = arith.divf %19, %20 : vector<8x32xf32>
    %22 = vector.extract_strided_slice %9 {offsets = [0, 128], sizes = [8, 32], strides = [1, 1]} : vector<64x384xf32> to vector<8x32xf32>
    %23 = vector.extract_strided_slice %13 {offsets = [0, 128], sizes = [8, 32], strides = [1, 1]} : vector<8x384xf32> to vector<8x32xf32>
    %24 = arith.addf %22, %23 : vector<8x32xf32>
    %25 = arith.negf %24 : vector<8x32xf32>
    %26 = math.exp %25 : vector<8x32xf32>
    %cst_12 = arith.constant 1.000000e+00 : f32
    %27 = vector.broadcast %cst_12 : f32 to vector<8x32xf32>
    %28 = arith.addf %27, %26 : vector<8x32xf32>
    %29 = arith.divf %27, %28 : vector<8x32xf32>
    %30 = vector.extract_strided_slice %9 {offsets = [0, 256], sizes = [8, 32], strides = [1, 1]} : vector<64x384xf32> to vector<8x32xf32>
    %31 = vector.extract_strided_slice %13 {offsets = [0, 256], sizes = [8, 32], strides = [1, 1]} : vector<8x384xf32> to vector<8x32xf32>
    %32 = arith.addf %31, %11 : vector<8x32xf32>
    %33 = arith.mulf %21, %32 : vector<8x32xf32>
    %34 = arith.addf %30, %33 : vector<8x32xf32>
    %35 = math.tanh %34 : vector<8x32xf32>
    %cst_13 = arith.constant 1.000000e+00 : f32
    %36 = vector.broadcast %cst_13 : f32 to vector<8x32xf32>
    %37 = arith.subf %36, %29 : vector<8x32xf32>
    %38 = arith.mulf %37, %35 : vector<8x32xf32>
    %39 = arith.mulf %29, %4 : vector<8x32xf32>
    %40 = arith.addf %38, %39 : vector<8x32xf32>
    %cst_14 = arith.constant 0.000000e+00 : f32
    %41 = vector.broadcast %cst_14 : f32 to vector<8x1xf32>
    %42 = arith.cmpf ogt, %0, %41 : vector<8x1xf32>
    %43 = vector.shape_cast %42 : vector<8x1xi1> to vector<8x1xi1>
    %44 = vector.broadcast %43 : vector<8x1xi1> to vector<8x32xi1>
    %45 = arith.select %44, %40, %4 : vector<8x32xi1>, vector<8x32xf32>
    %c0_15 = arith.constant 0 : index
    %c0_16 = arith.constant 0 : index
    %46 = vector.load %arg8[%c0_15, %c0_16] : memref<32x384xf32, #tpu.memory_space<vmem>>, vector<32x384xf32>
    %cst_17 = arith.constant dense<0.000000e+00> : vector<8x384xf32>
    %47 = tpu.matmul %45, %46, %cst_17 {dimension_numbers = #tpu.dot_dimension_numbers<[1], [0], [0], [1], [0, 0, 1, 1], [], []>} : vector<8x32xf32>, vector<32x384xf32>, vector<8x384xf32> -> vector<8x384xf32>
    %48 = vector.extract_strided_slice %9 {offsets = [8, 0], sizes = [8, 32], strides = [1, 1]} : vector<64x384xf32> to vector<8x32xf32>
    %49 = vector.extract_strided_slice %47 {offsets = [0, 0], sizes = [8, 32], strides = [1, 1]} : vector<8x384xf32> to vector<8x32xf32>
    %50 = arith.addf %48, %49 : vector<8x32xf32>
    %51 = arith.negf %50 : vector<8x32xf32>
    %52 = math.exp %51 : vector<8x32xf32>
    %cst_18 = arith.constant 1.000000e+00 : f32
    %53 = vector.broadcast %cst_18 : f32 to vector<8x32xf32>
    %54 = arith.addf %53, %52 : vector<8x32xf32>
    %55 = arith.divf %53, %54 : vector<8x32xf32>
    %56 = vector.extract_strided_slice %9 {offsets = [8, 128], sizes = [8, 32], strides = [1, 1]} : vector<64x384xf32> to vector<8x32xf32>
    %57 = vector.extract_strided_slice %47 {offsets = [0, 128], sizes = [8, 32], strides = [1, 1]} : vector<8x384xf32> to vector<8x32xf32>
    %58 = arith.addf %56, %57 : vector<8x32xf32>
    %59 = arith.negf %58 : vector<8x32xf32>
    %60 = math.exp %59 : vector<8x32xf32>
    %cst_19 = arith.constant 1.000000e+00 : f32
    %61 = vector.broadcast %cst_19 : f32 to vector<8x32xf32>
    %62 = arith.addf %61, %60 : vector<8x32xf32>
    %63 = arith.divf %61, %62 : vector<8x32xf32>
    %64 = vector.extract_strided_slice %9 {offsets = [8, 256], sizes = [8, 32], strides = [1, 1]} : vector<64x384xf32> to vector<8x32xf32>
    %65 = vector.extract_strided_slice %47 {offsets = [0, 256], sizes = [8, 32], strides = [1, 1]} : vector<8x384xf32> to vector<8x32xf32>
    %66 = arith.addf %65, %11 : vector<8x32xf32>
    %67 = arith.mulf %55, %66 : vector<8x32xf32>
    %68 = arith.addf %64, %67 : vector<8x32xf32>
    %69 = math.tanh %68 : vector<8x32xf32>
    %cst_20 = arith.constant 1.000000e+00 : f32
    %70 = vector.broadcast %cst_20 : f32 to vector<8x32xf32>
    %71 = arith.subf %70, %63 : vector<8x32xf32>
    %72 = arith.mulf %71, %69 : vector<8x32xf32>
    %73 = arith.mulf %63, %45 : vector<8x32xf32>
    %74 = arith.addf %72, %73 : vector<8x32xf32>
    %cst_21 = arith.constant 1.000000e+00 : f32
    %75 = vector.broadcast %cst_21 : f32 to vector<8x1xf32>
    %76 = arith.cmpf ogt, %0, %75 : vector<8x1xf32>
    %77 = vector.shape_cast %76 : vector<8x1xi1> to vector<8x1xi1>
    %78 = vector.broadcast %77 : vector<8x1xi1> to vector<8x32xi1>
    %79 = arith.select %78, %74, %45 : vector<8x32xi1>, vector<8x32xf32>
    %c0_22 = arith.constant 0 : index
    %c0_23 = arith.constant 0 : index
    %80 = vector.load %arg8[%c0_22, %c0_23] : memref<32x384xf32, #tpu.memory_space<vmem>>, vector<32x384xf32>
    %cst_24 = arith.constant dense<0.000000e+00> : vector<8x384xf32>
    %81 = tpu.matmul %79, %80, %cst_24 {dimension_numbers = #tpu.dot_dimension_numbers<[1], [0], [0], [1], [0, 0, 1, 1], [], []>} : vector<8x32xf32>, vector<32x384xf32>, vector<8x384xf32> -> vector<8x384xf32>
    %82 = vector.extract_strided_slice %9 {offsets = [16, 0], sizes = [8, 32], strides = [1, 1]} : vector<64x384xf32> to vector<8x32xf32>
    %83 = vector.extract_strided_slice %81 {offsets = [0, 0], sizes = [8, 32], strides = [1, 1]} : vector<8x384xf32> to vector<8x32xf32>
    %84 = arith.addf %82, %83 : vector<8x32xf32>
    %85 = arith.negf %84 : vector<8x32xf32>
    %86 = math.exp %85 : vector<8x32xf32>
    %cst_25 = arith.constant 1.000000e+00 : f32
    %87 = vector.broadcast %cst_25 : f32 to vector<8x32xf32>
    %88 = arith.addf %87, %86 : vector<8x32xf32>
    %89 = arith.divf %87, %88 : vector<8x32xf32>
    %90 = vector.extract_strided_slice %9 {offsets = [16, 128], sizes = [8, 32], strides = [1, 1]} : vector<64x384xf32> to vector<8x32xf32>
    %91 = vector.extract_strided_slice %81 {offsets = [0, 128], sizes = [8, 32], strides = [1, 1]} : vector<8x384xf32> to vector<8x32xf32>
    %92 = arith.addf %90, %91 : vector<8x32xf32>
    %93 = arith.negf %92 : vector<8x32xf32>
    %94 = math.exp %93 : vector<8x32xf32>
    %cst_26 = arith.constant 1.000000e+00 : f32
    %95 = vector.broadcast %cst_26 : f32 to vector<8x32xf32>
    %96 = arith.addf %95, %94 : vector<8x32xf32>
    %97 = arith.divf %95, %96 : vector<8x32xf32>
    %98 = vector.extract_strided_slice %9 {offsets = [16, 256], sizes = [8, 32], strides = [1, 1]} : vector<64x384xf32> to vector<8x32xf32>
    %99 = vector.extract_strided_slice %81 {offsets = [0, 256], sizes = [8, 32], strides = [1, 1]} : vector<8x384xf32> to vector<8x32xf32>
    %100 = arith.addf %99, %11 : vector<8x32xf32>
    %101 = arith.mulf %89, %100 : vector<8x32xf32>
    %102 = arith.addf %98, %101 : vector<8x32xf32>
    %103 = math.tanh %102 : vector<8x32xf32>
    %cst_27 = arith.constant 1.000000e+00 : f32
    %104 = vector.broadcast %cst_27 : f32 to vector<8x32xf32>
    %105 = arith.subf %104, %97 : vector<8x32xf32>
    %106 = arith.mulf %105, %103 : vector<8x32xf32>
    %107 = arith.mulf %97, %79 : vector<8x32xf32>
    %108 = arith.addf %106, %107 : vector<8x32xf32>
    %cst_28 = arith.constant 2.000000e+00 : f32
    %109 = vector.broadcast %cst_28 : f32 to vector<8x1xf32>
    %110 = arith.cmpf ogt, %0, %109 : vector<8x1xf32>
    %111 = vector.shape_cast %110 : vector<8x1xi1> to vector<8x1xi1>
    %112 = vector.broadcast %111 : vector<8x1xi1> to vector<8x32xi1>
    %113 = arith.select %112, %108, %79 : vector<8x32xi1>, vector<8x32xf32>
    %c0_29 = arith.constant 0 : index
    %c0_30 = arith.constant 0 : index
    %114 = vector.load %arg8[%c0_29, %c0_30] : memref<32x384xf32, #tpu.memory_space<vmem>>, vector<32x384xf32>
    %cst_31 = arith.constant dense<0.000000e+00> : vector<8x384xf32>
    %115 = tpu.matmul %113, %114, %cst_31 {dimension_numbers = #tpu.dot_dimension_numbers<[1], [0], [0], [1], [0, 0, 1, 1], [], []>} : vector<8x32xf32>, vector<32x384xf32>, vector<8x384xf32> -> vector<8x384xf32>
    %116 = vector.extract_strided_slice %9 {offsets = [24, 0], sizes = [8, 32], strides = [1, 1]} : vector<64x384xf32> to vector<8x32xf32>
    %117 = vector.extract_strided_slice %115 {offsets = [0, 0], sizes = [8, 32], strides = [1, 1]} : vector<8x384xf32> to vector<8x32xf32>
    %118 = arith.addf %116, %117 : vector<8x32xf32>
    %119 = arith.negf %118 : vector<8x32xf32>
    %120 = math.exp %119 : vector<8x32xf32>
    %cst_32 = arith.constant 1.000000e+00 : f32
    %121 = vector.broadcast %cst_32 : f32 to vector<8x32xf32>
    %122 = arith.addf %121, %120 : vector<8x32xf32>
    %123 = arith.divf %121, %122 : vector<8x32xf32>
    %124 = vector.extract_strided_slice %9 {offsets = [24, 128], sizes = [8, 32], strides = [1, 1]} : vector<64x384xf32> to vector<8x32xf32>
    %125 = vector.extract_strided_slice %115 {offsets = [0, 128], sizes = [8, 32], strides = [1, 1]} : vector<8x384xf32> to vector<8x32xf32>
    %126 = arith.addf %124, %125 : vector<8x32xf32>
    %127 = arith.negf %126 : vector<8x32xf32>
    %128 = math.exp %127 : vector<8x32xf32>
    %cst_33 = arith.constant 1.000000e+00 : f32
    %129 = vector.broadcast %cst_33 : f32 to vector<8x32xf32>
    %130 = arith.addf %129, %128 : vector<8x32xf32>
    %131 = arith.divf %129, %130 : vector<8x32xf32>
    %132 = vector.extract_strided_slice %9 {offsets = [24, 256], sizes = [8, 32], strides = [1, 1]} : vector<64x384xf32> to vector<8x32xf32>
    %133 = vector.extract_strided_slice %115 {offsets = [0, 256], sizes = [8, 32], strides = [1, 1]} : vector<8x384xf32> to vector<8x32xf32>
    %134 = arith.addf %133, %11 : vector<8x32xf32>
    %135 = arith.mulf %123, %134 : vector<8x32xf32>
    %136 = arith.addf %132, %135 : vector<8x32xf32>
    %137 = math.tanh %136 : vector<8x32xf32>
    %cst_34 = arith.constant 1.000000e+00 : f32
    %138 = vector.broadcast %cst_34 : f32 to vector<8x32xf32>
    %139 = arith.subf %138, %131 : vector<8x32xf32>
    %140 = arith.mulf %139, %137 : vector<8x32xf32>
    %141 = arith.mulf %131, %113 : vector<8x32xf32>
    %142 = arith.addf %140, %141 : vector<8x32xf32>
    %cst_35 = arith.constant 3.000000e+00 : f32
    %143 = vector.broadcast %cst_35 : f32 to vector<8x1xf32>
    %144 = arith.cmpf ogt, %0, %143 : vector<8x1xf32>
    %145 = vector.shape_cast %144 : vector<8x1xi1> to vector<8x1xi1>
    %146 = vector.broadcast %145 : vector<8x1xi1> to vector<8x32xi1>
    %147 = arith.select %146, %142, %113 : vector<8x32xi1>, vector<8x32xf32>
    %c0_36 = arith.constant 0 : index
    %c0_37 = arith.constant 0 : index
    %148 = vector.load %arg8[%c0_36, %c0_37] : memref<32x384xf32, #tpu.memory_space<vmem>>, vector<32x384xf32>
    %cst_38 = arith.constant dense<0.000000e+00> : vector<8x384xf32>
    %149 = tpu.matmul %147, %148, %cst_38 {dimension_numbers = #tpu.dot_dimension_numbers<[1], [0], [0], [1], [0, 0, 1, 1], [], []>} : vector<8x32xf32>, vector<32x384xf32>, vector<8x384xf32> -> vector<8x384xf32>
    %150 = vector.extract_strided_slice %9 {offsets = [32, 0], sizes = [8, 32], strides = [1, 1]} : vector<64x384xf32> to vector<8x32xf32>
    %151 = vector.extract_strided_slice %149 {offsets = [0, 0], sizes = [8, 32], strides = [1, 1]} : vector<8x384xf32> to vector<8x32xf32>
    %152 = arith.addf %150, %151 : vector<8x32xf32>
    %153 = arith.negf %152 : vector<8x32xf32>
    %154 = math.exp %153 : vector<8x32xf32>
    %cst_39 = arith.constant 1.000000e+00 : f32
    %155 = vector.broadcast %cst_39 : f32 to vector<8x32xf32>
    %156 = arith.addf %155, %154 : vector<8x32xf32>
    %157 = arith.divf %155, %156 : vector<8x32xf32>
    %158 = vector.extract_strided_slice %9 {offsets = [32, 128], sizes = [8, 32], strides = [1, 1]} : vector<64x384xf32> to vector<8x32xf32>
    %159 = vector.extract_strided_slice %149 {offsets = [0, 128], sizes = [8, 32], strides = [1, 1]} : vector<8x384xf32> to vector<8x32xf32>
    %160 = arith.addf %158, %159 : vector<8x32xf32>
    %161 = arith.negf %160 : vector<8x32xf32>
    %162 = math.exp %161 : vector<8x32xf32>
    %cst_40 = arith.constant 1.000000e+00 : f32
    %163 = vector.broadcast %cst_40 : f32 to vector<8x32xf32>
    %164 = arith.addf %163, %162 : vector<8x32xf32>
    %165 = arith.divf %163, %164 : vector<8x32xf32>
    %166 = vector.extract_strided_slice %9 {offsets = [32, 256], sizes = [8, 32], strides = [1, 1]} : vector<64x384xf32> to vector<8x32xf32>
    %167 = vector.extract_strided_slice %149 {offsets = [0, 256], sizes = [8, 32], strides = [1, 1]} : vector<8x384xf32> to vector<8x32xf32>
    %168 = arith.addf %167, %11 : vector<8x32xf32>
    %169 = arith.mulf %157, %168 : vector<8x32xf32>
    %170 = arith.addf %166, %169 : vector<8x32xf32>
    %171 = math.tanh %170 : vector<8x32xf32>
    %cst_41 = arith.constant 1.000000e+00 : f32
    %172 = vector.broadcast %cst_41 : f32 to vector<8x32xf32>
    %173 = arith.subf %172, %165 : vector<8x32xf32>
    %174 = arith.mulf %173, %171 : vector<8x32xf32>
    %175 = arith.mulf %165, %147 : vector<8x32xf32>
    %176 = arith.addf %174, %175 : vector<8x32xf32>
    %cst_42 = arith.constant 4.000000e+00 : f32
    %177 = vector.broadcast %cst_42 : f32 to vector<8x1xf32>
    %178 = arith.cmpf ogt, %0, %177 : vector<8x1xf32>
    %179 = vector.shape_cast %178 : vector<8x1xi1> to vector<8x1xi1>
    %180 = vector.broadcast %179 : vector<8x1xi1> to vector<8x32xi1>
    %181 = arith.select %180, %176, %147 : vector<8x32xi1>, vector<8x32xf32>
    %c0_43 = arith.constant 0 : index
    %c0_44 = arith.constant 0 : index
    %182 = vector.load %arg8[%c0_43, %c0_44] : memref<32x384xf32, #tpu.memory_space<vmem>>, vector<32x384xf32>
    %cst_45 = arith.constant dense<0.000000e+00> : vector<8x384xf32>
    %183 = tpu.matmul %181, %182, %cst_45 {dimension_numbers = #tpu.dot_dimension_numbers<[1], [0], [0], [1], [0, 0, 1, 1], [], []>} : vector<8x32xf32>, vector<32x384xf32>, vector<8x384xf32> -> vector<8x384xf32>
    %184 = vector.extract_strided_slice %9 {offsets = [40, 0], sizes = [8, 32], strides = [1, 1]} : vector<64x384xf32> to vector<8x32xf32>
    %185 = vector.extract_strided_slice %183 {offsets = [0, 0], sizes = [8, 32], strides = [1, 1]} : vector<8x384xf32> to vector<8x32xf32>
    %186 = arith.addf %184, %185 : vector<8x32xf32>
    %187 = arith.negf %186 : vector<8x32xf32>
    %188 = math.exp %187 : vector<8x32xf32>
    %cst_46 = arith.constant 1.000000e+00 : f32
    %189 = vector.broadcast %cst_46 : f32 to vector<8x32xf32>
    %190 = arith.addf %189, %188 : vector<8x32xf32>
    %191 = arith.divf %189, %190 : vector<8x32xf32>
    %192 = vector.extract_strided_slice %9 {offsets = [40, 128], sizes = [8, 32], strides = [1, 1]} : vector<64x384xf32> to vector<8x32xf32>
    %193 = vector.extract_strided_slice %183 {offsets = [0, 128], sizes = [8, 32], strides = [1, 1]} : vector<8x384xf32> to vector<8x32xf32>
    %194 = arith.addf %192, %193 : vector<8x32xf32>
    %195 = arith.negf %194 : vector<8x32xf32>
    %196 = math.exp %195 : vector<8x32xf32>
    %cst_47 = arith.constant 1.000000e+00 : f32
    %197 = vector.broadcast %cst_47 : f32 to vector<8x32xf32>
    %198 = arith.addf %197, %196 : vector<8x32xf32>
    %199 = arith.divf %197, %198 : vector<8x32xf32>
    %200 = vector.extract_strided_slice %9 {offsets = [40, 256], sizes = [8, 32], strides = [1, 1]} : vector<64x384xf32> to vector<8x32xf32>
    %201 = vector.extract_strided_slice %183 {offsets = [0, 256], sizes = [8, 32], strides = [1, 1]} : vector<8x384xf32> to vector<8x32xf32>
    %202 = arith.addf %201, %11 : vector<8x32xf32>
    %203 = arith.mulf %191, %202 : vector<8x32xf32>
    %204 = arith.addf %200, %203 : vector<8x32xf32>
    %205 = math.tanh %204 : vector<8x32xf32>
    %cst_48 = arith.constant 1.000000e+00 : f32
    %206 = vector.broadcast %cst_48 : f32 to vector<8x32xf32>
    %207 = arith.subf %206, %199 : vector<8x32xf32>
    %208 = arith.mulf %207, %205 : vector<8x32xf32>
    %209 = arith.mulf %199, %181 : vector<8x32xf32>
    %210 = arith.addf %208, %209 : vector<8x32xf32>
    %cst_49 = arith.constant 5.000000e+00 : f32
    %211 = vector.broadcast %cst_49 : f32 to vector<8x1xf32>
    %212 = arith.cmpf ogt, %0, %211 : vector<8x1xf32>
    %213 = vector.shape_cast %212 : vector<8x1xi1> to vector<8x1xi1>
    %214 = vector.broadcast %213 : vector<8x1xi1> to vector<8x32xi1>
    %215 = arith.select %214, %210, %181 : vector<8x32xi1>, vector<8x32xf32>
    %c0_50 = arith.constant 0 : index
    %c0_51 = arith.constant 0 : index
    %216 = vector.load %arg8[%c0_50, %c0_51] : memref<32x384xf32, #tpu.memory_space<vmem>>, vector<32x384xf32>
    %cst_52 = arith.constant dense<0.000000e+00> : vector<8x384xf32>
    %217 = tpu.matmul %215, %216, %cst_52 {dimension_numbers = #tpu.dot_dimension_numbers<[1], [0], [0], [1], [0, 0, 1, 1], [], []>} : vector<8x32xf32>, vector<32x384xf32>, vector<8x384xf32> -> vector<8x384xf32>
    %218 = vector.extract_strided_slice %9 {offsets = [48, 0], sizes = [8, 32], strides = [1, 1]} : vector<64x384xf32> to vector<8x32xf32>
    %219 = vector.extract_strided_slice %217 {offsets = [0, 0], sizes = [8, 32], strides = [1, 1]} : vector<8x384xf32> to vector<8x32xf32>
    %220 = arith.addf %218, %219 : vector<8x32xf32>
    %221 = arith.negf %220 : vector<8x32xf32>
    %222 = math.exp %221 : vector<8x32xf32>
    %cst_53 = arith.constant 1.000000e+00 : f32
    %223 = vector.broadcast %cst_53 : f32 to vector<8x32xf32>
    %224 = arith.addf %223, %222 : vector<8x32xf32>
    %225 = arith.divf %223, %224 : vector<8x32xf32>
    %226 = vector.extract_strided_slice %9 {offsets = [48, 128], sizes = [8, 32], strides = [1, 1]} : vector<64x384xf32> to vector<8x32xf32>
    %227 = vector.extract_strided_slice %217 {offsets = [0, 128], sizes = [8, 32], strides = [1, 1]} : vector<8x384xf32> to vector<8x32xf32>
    %228 = arith.addf %226, %227 : vector<8x32xf32>
    %229 = arith.negf %228 : vector<8x32xf32>
    %230 = math.exp %229 : vector<8x32xf32>
    %cst_54 = arith.constant 1.000000e+00 : f32
    %231 = vector.broadcast %cst_54 : f32 to vector<8x32xf32>
    %232 = arith.addf %231, %230 : vector<8x32xf32>
    %233 = arith.divf %231, %232 : vector<8x32xf32>
    %234 = vector.extract_strided_slice %9 {offsets = [48, 256], sizes = [8, 32], strides = [1, 1]} : vector<64x384xf32> to vector<8x32xf32>
    %235 = vector.extract_strided_slice %217 {offsets = [0, 256], sizes = [8, 32], strides = [1, 1]} : vector<8x384xf32> to vector<8x32xf32>
    %236 = arith.addf %235, %11 : vector<8x32xf32>
    %237 = arith.mulf %225, %236 : vector<8x32xf32>
    %238 = arith.addf %234, %237 : vector<8x32xf32>
    %239 = math.tanh %238 : vector<8x32xf32>
    %cst_55 = arith.constant 1.000000e+00 : f32
    %240 = vector.broadcast %cst_55 : f32 to vector<8x32xf32>
    %241 = arith.subf %240, %233 : vector<8x32xf32>
    %242 = arith.mulf %241, %239 : vector<8x32xf32>
    %243 = arith.mulf %233, %215 : vector<8x32xf32>
    %244 = arith.addf %242, %243 : vector<8x32xf32>
    %cst_56 = arith.constant 6.000000e+00 : f32
    %245 = vector.broadcast %cst_56 : f32 to vector<8x1xf32>
    %246 = arith.cmpf ogt, %0, %245 : vector<8x1xf32>
    %247 = vector.shape_cast %246 : vector<8x1xi1> to vector<8x1xi1>
    %248 = vector.broadcast %247 : vector<8x1xi1> to vector<8x32xi1>
    %249 = arith.select %248, %244, %215 : vector<8x32xi1>, vector<8x32xf32>
    %c0_57 = arith.constant 0 : index
    %c0_58 = arith.constant 0 : index
    %250 = vector.load %arg8[%c0_57, %c0_58] : memref<32x384xf32, #tpu.memory_space<vmem>>, vector<32x384xf32>
    %cst_59 = arith.constant dense<0.000000e+00> : vector<8x384xf32>
    %251 = tpu.matmul %249, %250, %cst_59 {dimension_numbers = #tpu.dot_dimension_numbers<[1], [0], [0], [1], [0, 0, 1, 1], [], []>} : vector<8x32xf32>, vector<32x384xf32>, vector<8x384xf32> -> vector<8x384xf32>
    %252 = vector.extract_strided_slice %9 {offsets = [56, 0], sizes = [8, 32], strides = [1, 1]} : vector<64x384xf32> to vector<8x32xf32>
    %253 = vector.extract_strided_slice %251 {offsets = [0, 0], sizes = [8, 32], strides = [1, 1]} : vector<8x384xf32> to vector<8x32xf32>
    %254 = arith.addf %252, %253 : vector<8x32xf32>
    %255 = arith.negf %254 : vector<8x32xf32>
    %256 = math.exp %255 : vector<8x32xf32>
    %cst_60 = arith.constant 1.000000e+00 : f32
    %257 = vector.broadcast %cst_60 : f32 to vector<8x32xf32>
    %258 = arith.addf %257, %256 : vector<8x32xf32>
    %259 = arith.divf %257, %258 : vector<8x32xf32>
    %260 = vector.extract_strided_slice %9 {offsets = [56, 128], sizes = [8, 32], strides = [1, 1]} : vector<64x384xf32> to vector<8x32xf32>
    %261 = vector.extract_strided_slice %251 {offsets = [0, 128], sizes = [8, 32], strides = [1, 1]} : vector<8x384xf32> to vector<8x32xf32>
    %262 = arith.addf %260, %261 : vector<8x32xf32>
    %263 = arith.negf %262 : vector<8x32xf32>
    %264 = math.exp %263 : vector<8x32xf32>
    %cst_61 = arith.constant 1.000000e+00 : f32
    %265 = vector.broadcast %cst_61 : f32 to vector<8x32xf32>
    %266 = arith.addf %265, %264 : vector<8x32xf32>
    %267 = arith.divf %265, %266 : vector<8x32xf32>
    %268 = vector.extract_strided_slice %9 {offsets = [56, 256], sizes = [8, 32], strides = [1, 1]} : vector<64x384xf32> to vector<8x32xf32>
    %269 = vector.extract_strided_slice %251 {offsets = [0, 256], sizes = [8, 32], strides = [1, 1]} : vector<8x384xf32> to vector<8x32xf32>
    %270 = arith.addf %269, %11 : vector<8x32xf32>
    %271 = arith.mulf %259, %270 : vector<8x32xf32>
    %272 = arith.addf %268, %271 : vector<8x32xf32>
    %273 = math.tanh %272 : vector<8x32xf32>
    %cst_62 = arith.constant 1.000000e+00 : f32
    %274 = vector.broadcast %cst_62 : f32 to vector<8x32xf32>
    %275 = arith.subf %274, %267 : vector<8x32xf32>
    %276 = arith.mulf %275, %273 : vector<8x32xf32>
    %277 = arith.mulf %267, %249 : vector<8x32xf32>
    %278 = arith.addf %276, %277 : vector<8x32xf32>
    %cst_63 = arith.constant 7.000000e+00 : f32
    %279 = vector.broadcast %cst_63 : f32 to vector<8x1xf32>
    %280 = arith.cmpf ogt, %0, %279 : vector<8x1xf32>
    %281 = vector.shape_cast %280 : vector<8x1xi1> to vector<8x1xi1>
    %282 = vector.broadcast %281 : vector<8x1xi1> to vector<8x32xi1>
    %283 = arith.select %282, %278, %249 : vector<8x32xi1>, vector<8x32xf32>
    %c0_64 = arith.constant 0 : index
    %c0_65 = arith.constant 0 : index
    %284 = vector.load %arg12[%c0_64, %c0_65] : memref<32x256xf32, #tpu.memory_space<vmem>>, vector<32x256xf32>
    %cst_66 = arith.constant dense<0.000000e+00> : vector<8x256xf32>
    %285 = tpu.matmul %283, %284, %cst_66 {dimension_numbers = #tpu.dot_dimension_numbers<[1], [0], [0], [1], [0, 0, 1, 1], [], []>} : vector<8x32xf32>, vector<32x256xf32>, vector<8x256xf32> -> vector<8x256xf32>
    %286 = vector.extract_strided_slice %1 {offsets = [4, 0], sizes = [1, 256], strides = [1, 1]} : vector<8x384xf32> to vector<1x256xf32>
    %287 = vector.broadcast %286 : vector<1x256xf32> to vector<8x256xf32>
    %288 = arith.addf %285, %287 : vector<8x256xf32>
    %289 = vector.extract_strided_slice %288 {offsets = [0, 0], sizes = [8, 16], strides = [1, 1]} : vector<8x256xf32> to vector<8x16xf32>
    %290 = vector.extract_strided_slice %288 {offsets = [0, 128], sizes = [8, 16], strides = [1, 1]} : vector<8x256xf32> to vector<8x16xf32>
    %c0_67 = arith.constant 0 : index
    %c0_68 = arith.constant 0 : index
    %291 = vector.load %arg3[%c0_67, %c0_68] : memref<8x16xf32, #tpu.memory_space<vmem>>, vector<8x16xf32>
    %cst_69 = arith.constant 5.000000e-01 : f32
    %292 = vector.broadcast %cst_69 : f32 to vector<8x16xf32>
    %293 = arith.mulf %292, %290 : vector<8x16xf32>
    %294 = math.exp %293 : vector<8x16xf32>
    %295 = arith.mulf %291, %294 : vector<8x16xf32>
    %296 = arith.addf %289, %295 : vector<8x16xf32>
    %c0_70 = arith.constant 0 : index
    %c0_71 = arith.constant 0 : index
    %297 = vector.load %arg13[%c0_70, %c0_71] : memref<16x32xf32, #tpu.memory_space<vmem>>, vector<16x32xf32>
    %cst_72 = arith.constant dense<0.000000e+00> : vector<8x32xf32>
    %298 = tpu.matmul %296, %297, %cst_72 {dimension_numbers = #tpu.dot_dimension_numbers<[1], [0], [0], [1], [0, 0, 1, 1], [], []>} : vector<8x16xf32>, vector<16x32xf32>, vector<8x32xf32> -> vector<8x32xf32>
    %299 = vector.extract_strided_slice %1 {offsets = [5, 0], sizes = [1, 32], strides = [1, 1]} : vector<8x384xf32> to vector<1x32xf32>
    %300 = vector.broadcast %299 : vector<1x32xf32> to vector<8x32xf32>
    %301 = arith.addf %298, %300 : vector<8x32xf32>
    %302 = vector.extract_strided_slice %1 {offsets = [2, 0], sizes = [1, 384], strides = [1, 1]} : vector<8x384xf32> to vector<1x384xf32>
    %303 = vector.extract_strided_slice %1 {offsets = [3, 0], sizes = [1, 32], strides = [1, 1]} : vector<8x384xf32> to vector<1x32xf32>
    %c0_73 = arith.constant 0 : index
    %c0_74 = arith.constant 0 : index
    %304 = vector.load %arg1[%c0_73, %c0_74] : memref<64x24xf32, #tpu.memory_space<vmem>>, vector<64x24xf32>
    %c0_75 = arith.constant 0 : index
    %c0_76 = arith.constant 0 : index
    %305 = vector.load %arg9[%c0_75, %c0_76] : memref<24x384xf32, #tpu.memory_space<vmem>>, vector<24x384xf32>
    %cst_77 = arith.constant dense<0.000000e+00> : vector<64x384xf32>
    %306 = tpu.matmul %304, %305, %cst_77 {dimension_numbers = #tpu.dot_dimension_numbers<[1], [0], [0], [1], [0, 0, 1, 1], [], []>} : vector<64x24xf32>, vector<24x384xf32>, vector<64x384xf32> -> vector<64x384xf32>
    %307 = vector.broadcast %302 : vector<1x384xf32> to vector<64x384xf32>
    %308 = arith.addf %306, %307 : vector<64x384xf32>
    %309 = vector.shape_cast %303 : vector<1x32xf32> to vector<1x32xf32>
    %310 = vector.broadcast %309 : vector<1x32xf32> to vector<8x32xf32>
    %c0_78 = arith.constant 0 : index
    %c0_79 = arith.constant 0 : index
    %311 = vector.load %arg10[%c0_78, %c0_79] : memref<32x384xf32, #tpu.memory_space<vmem>>, vector<32x384xf32>
    %cst_80 = arith.constant dense<0.000000e+00> : vector<8x384xf32>
    %312 = tpu.matmul %301, %311, %cst_80 {dimension_numbers = #tpu.dot_dimension_numbers<[1], [0], [0], [1], [0, 0, 1, 1], [], []>} : vector<8x32xf32>, vector<32x384xf32>, vector<8x384xf32> -> vector<8x384xf32>
    %313 = vector.extract_strided_slice %308 {offsets = [0, 0], sizes = [8, 32], strides = [1, 1]} : vector<64x384xf32> to vector<8x32xf32>
    %314 = vector.extract_strided_slice %312 {offsets = [0, 0], sizes = [8, 32], strides = [1, 1]} : vector<8x384xf32> to vector<8x32xf32>
    %315 = arith.addf %313, %314 : vector<8x32xf32>
    %316 = arith.negf %315 : vector<8x32xf32>
    %317 = math.exp %316 : vector<8x32xf32>
    %cst_81 = arith.constant 1.000000e+00 : f32
    %318 = vector.broadcast %cst_81 : f32 to vector<8x32xf32>
    %319 = arith.addf %318, %317 : vector<8x32xf32>
    %320 = arith.divf %318, %319 : vector<8x32xf32>
    %321 = vector.extract_strided_slice %308 {offsets = [0, 128], sizes = [8, 32], strides = [1, 1]} : vector<64x384xf32> to vector<8x32xf32>
    %322 = vector.extract_strided_slice %312 {offsets = [0, 128], sizes = [8, 32], strides = [1, 1]} : vector<8x384xf32> to vector<8x32xf32>
    %323 = arith.addf %321, %322 : vector<8x32xf32>
    %324 = arith.negf %323 : vector<8x32xf32>
    %325 = math.exp %324 : vector<8x32xf32>
    %cst_82 = arith.constant 1.000000e+00 : f32
    %326 = vector.broadcast %cst_82 : f32 to vector<8x32xf32>
    %327 = arith.addf %326, %325 : vector<8x32xf32>
    %328 = arith.divf %326, %327 : vector<8x32xf32>
    %329 = vector.extract_strided_slice %308 {offsets = [0, 256], sizes = [8, 32], strides = [1, 1]} : vector<64x384xf32> to vector<8x32xf32>
    %330 = vector.extract_strided_slice %312 {offsets = [0, 256], sizes = [8, 32], strides = [1, 1]} : vector<8x384xf32> to vector<8x32xf32>
    %331 = arith.addf %330, %310 : vector<8x32xf32>
    %332 = arith.mulf %320, %331 : vector<8x32xf32>
    %333 = arith.addf %329, %332 : vector<8x32xf32>
    %334 = math.tanh %333 : vector<8x32xf32>
    %cst_83 = arith.constant 1.000000e+00 : f32
    %335 = vector.broadcast %cst_83 : f32 to vector<8x32xf32>
    %336 = arith.subf %335, %328 : vector<8x32xf32>
    %337 = arith.mulf %336, %334 : vector<8x32xf32>
    %338 = arith.mulf %328, %301 : vector<8x32xf32>
    %339 = arith.addf %337, %338 : vector<8x32xf32>
    %cst_84 = arith.constant 0.000000e+00 : f32
    %340 = vector.broadcast %cst_84 : f32 to vector<8x1xf32>
    %341 = arith.cmpf ogt, %0, %340 : vector<8x1xf32>
    %342 = vector.shape_cast %341 : vector<8x1xi1> to vector<8x1xi1>
    %343 = vector.broadcast %342 : vector<8x1xi1> to vector<8x32xi1>
    %344 = arith.select %343, %339, %301 : vector<8x32xi1>, vector<8x32xf32>
    %cst_85 = arith.constant 0.000000e+00 : f32
    %345 = vector.shape_cast %341 : vector<8x1xi1> to vector<8x1xi1>
    %346 = vector.broadcast %345 : vector<8x1xi1> to vector<8x32xi1>
    %347 = vector.broadcast %cst_85 : f32 to vector<8x32xf32>
    %348 = arith.select %346, %339, %347 : vector<8x32xi1>, vector<8x32xf32>
    %c0_86 = arith.constant 0 : index
    %c0_87 = arith.constant 0 : index
    %349 = vector.load %arg16[%c0_86, %c0_87] : memref<64x32xf32, #tpu.memory_space<vmem>>, vector<8x32xf32>
    tpu.vector_store %arg16[%c0_86, %c0_87], %348 {strides = array<i32>} : memref<64x32xf32, #tpu.memory_space<vmem>>, vector<8x32xf32>,
    %c0_88 = arith.constant 0 : index
    %c0_89 = arith.constant 0 : index
    %350 = vector.load %arg10[%c0_88, %c0_89] : memref<32x384xf32, #tpu.memory_space<vmem>>, vector<32x384xf32>
    %cst_90 = arith.constant dense<0.000000e+00> : vector<8x384xf32>
    %351 = tpu.matmul %344, %350, %cst_90 {dimension_numbers = #tpu.dot_dimension_numbers<[1], [0], [0], [1], [0, 0, 1, 1], [], []>} : vector<8x32xf32>, vector<32x384xf32>, vector<8x384xf32> -> vector<8x384xf32>
    %352 = vector.extract_strided_slice %308 {offsets = [8, 0], sizes = [8, 32], strides = [1, 1]} : vector<64x384xf32> to vector<8x32xf32>
    %353 = vector.extract_strided_slice %351 {offsets = [0, 0], sizes = [8, 32], strides = [1, 1]} : vector<8x384xf32> to vector<8x32xf32>
    %354 = arith.addf %352, %353 : vector<8x32xf32>
    %355 = arith.negf %354 : vector<8x32xf32>
    %356 = math.exp %355 : vector<8x32xf32>
    %cst_91 = arith.constant 1.000000e+00 : f32
    %357 = vector.broadcast %cst_91 : f32 to vector<8x32xf32>
    %358 = arith.addf %357, %356 : vector<8x32xf32>
    %359 = arith.divf %357, %358 : vector<8x32xf32>
    %360 = vector.extract_strided_slice %308 {offsets = [8, 128], sizes = [8, 32], strides = [1, 1]} : vector<64x384xf32> to vector<8x32xf32>
    %361 = vector.extract_strided_slice %351 {offsets = [0, 128], sizes = [8, 32], strides = [1, 1]} : vector<8x384xf32> to vector<8x32xf32>
    %362 = arith.addf %360, %361 : vector<8x32xf32>
    %363 = arith.negf %362 : vector<8x32xf32>
    %364 = math.exp %363 : vector<8x32xf32>
    %cst_92 = arith.constant 1.000000e+00 : f32
    %365 = vector.broadcast %cst_92 : f32 to vector<8x32xf32>
    %366 = arith.addf %365, %364 : vector<8x32xf32>
    %367 = arith.divf %365, %366 : vector<8x32xf32>
    %368 = vector.extract_strided_slice %308 {offsets = [8, 256], sizes = [8, 32], strides = [1, 1]} : vector<64x384xf32> to vector<8x32xf32>
    %369 = vector.extract_strided_slice %351 {offsets = [0, 256], sizes = [8, 32], strides = [1, 1]} : vector<8x384xf32> to vector<8x32xf32>
    %370 = arith.addf %369, %310 : vector<8x32xf32>
    %371 = arith.mulf %359, %370 : vector<8x32xf32>
    %372 = arith.addf %368, %371 : vector<8x32xf32>
    %373 = math.tanh %372 : vector<8x32xf32>
    %cst_93 = arith.constant 1.000000e+00 : f32
    %374 = vector.broadcast %cst_93 : f32 to vector<8x32xf32>
    %375 = arith.subf %374, %367 : vector<8x32xf32>
    %376 = arith.mulf %375, %373 : vector<8x32xf32>
    %377 = arith.mulf %367, %344 : vector<8x32xf32>
    %378 = arith.addf %376, %377 : vector<8x32xf32>
    %cst_94 = arith.constant 1.000000e+00 : f32
    %379 = vector.broadcast %cst_94 : f32 to vector<8x1xf32>
    %380 = arith.cmpf ogt, %0, %379 : vector<8x1xf32>
    %381 = vector.shape_cast %380 : vector<8x1xi1> to vector<8x1xi1>
    %382 = vector.broadcast %381 : vector<8x1xi1> to vector<8x32xi1>
    %383 = arith.select %382, %378, %344 : vector<8x32xi1>, vector<8x32xf32>
    %cst_95 = arith.constant 0.000000e+00 : f32
    %384 = vector.shape_cast %380 : vector<8x1xi1> to vector<8x1xi1>
    %385 = vector.broadcast %384 : vector<8x1xi1> to vector<8x32xi1>
    %386 = vector.broadcast %cst_95 : f32 to vector<8x32xf32>
    %387 = arith.select %385, %378, %386 : vector<8x32xi1>, vector<8x32xf32>
    %c8 = arith.constant 8 : index
    %c0_96 = arith.constant 0 : index
    %388 = vector.load %arg16[%c8, %c0_96] : memref<64x32xf32, #tpu.memory_space<vmem>>, vector<8x32xf32>
    tpu.vector_store %arg16[%c8, %c0_96], %387 {strides = array<i32>} : memref<64x32xf32, #tpu.memory_space<vmem>>, vector<8x32xf32>,
    %c0_97 = arith.constant 0 : index
    %c0_98 = arith.constant 0 : index
    %389 = vector.load %arg10[%c0_97, %c0_98] : memref<32x384xf32, #tpu.memory_space<vmem>>, vector<32x384xf32>
    %cst_99 = arith.constant dense<0.000000e+00> : vector<8x384xf32>
    %390 = tpu.matmul %383, %389, %cst_99 {dimension_numbers = #tpu.dot_dimension_numbers<[1], [0], [0], [1], [0, 0, 1, 1], [], []>} : vector<8x32xf32>, vector<32x384xf32>, vector<8x384xf32> -> vector<8x384xf32>
    %391 = vector.extract_strided_slice %308 {offsets = [16, 0], sizes = [8, 32], strides = [1, 1]} : vector<64x384xf32> to vector<8x32xf32>
    %392 = vector.extract_strided_slice %390 {offsets = [0, 0], sizes = [8, 32], strides = [1, 1]} : vector<8x384xf32> to vector<8x32xf32>
    %393 = arith.addf %391, %392 : vector<8x32xf32>
    %394 = arith.negf %393 : vector<8x32xf32>
    %395 = math.exp %394 : vector<8x32xf32>
    %cst_100 = arith.constant 1.000000e+00 : f32
    %396 = vector.broadcast %cst_100 : f32 to vector<8x32xf32>
    %397 = arith.addf %396, %395 : vector<8x32xf32>
    %398 = arith.divf %396, %397 : vector<8x32xf32>
    %399 = vector.extract_strided_slice %308 {offsets = [16, 128], sizes = [8, 32], strides = [1, 1]} : vector<64x384xf32> to vector<8x32xf32>
    %400 = vector.extract_strided_slice %390 {offsets = [0, 128], sizes = [8, 32], strides = [1, 1]} : vector<8x384xf32> to vector<8x32xf32>
    %401 = arith.addf %399, %400 : vector<8x32xf32>
    %402 = arith.negf %401 : vector<8x32xf32>
    %403 = math.exp %402 : vector<8x32xf32>
    %cst_101 = arith.constant 1.000000e+00 : f32
    %404 = vector.broadcast %cst_101 : f32 to vector<8x32xf32>
    %405 = arith.addf %404, %403 : vector<8x32xf32>
    %406 = arith.divf %404, %405 : vector<8x32xf32>
    %407 = vector.extract_strided_slice %308 {offsets = [16, 256], sizes = [8, 32], strides = [1, 1]} : vector<64x384xf32> to vector<8x32xf32>
    %408 = vector.extract_strided_slice %390 {offsets = [0, 256], sizes = [8, 32], strides = [1, 1]} : vector<8x384xf32> to vector<8x32xf32>
    %409 = arith.addf %408, %310 : vector<8x32xf32>
    %410 = arith.mulf %398, %409 : vector<8x32xf32>
    %411 = arith.addf %407, %410 : vector<8x32xf32>
    %412 = math.tanh %411 : vector<8x32xf32>
    %cst_102 = arith.constant 1.000000e+00 : f32
    %413 = vector.broadcast %cst_102 : f32 to vector<8x32xf32>
    %414 = arith.subf %413, %406 : vector<8x32xf32>
    %415 = arith.mulf %414, %412 : vector<8x32xf32>
    %416 = arith.mulf %406, %383 : vector<8x32xf32>
    %417 = arith.addf %415, %416 : vector<8x32xf32>
    %cst_103 = arith.constant 2.000000e+00 : f32
    %418 = vector.broadcast %cst_103 : f32 to vector<8x1xf32>
    %419 = arith.cmpf ogt, %0, %418 : vector<8x1xf32>
    %420 = vector.shape_cast %419 : vector<8x1xi1> to vector<8x1xi1>
    %421 = vector.broadcast %420 : vector<8x1xi1> to vector<8x32xi1>
    %422 = arith.select %421, %417, %383 : vector<8x32xi1>, vector<8x32xf32>
    %cst_104 = arith.constant 0.000000e+00 : f32
    %423 = vector.shape_cast %419 : vector<8x1xi1> to vector<8x1xi1>
    %424 = vector.broadcast %423 : vector<8x1xi1> to vector<8x32xi1>
    %425 = vector.broadcast %cst_104 : f32 to vector<8x32xf32>
    %426 = arith.select %424, %417, %425 : vector<8x32xi1>, vector<8x32xf32>
    %c16 = arith.constant 16 : index
    %c0_105 = arith.constant 0 : index
    %427 = vector.load %arg16[%c16, %c0_105] : memref<64x32xf32, #tpu.memory_space<vmem>>, vector<8x32xf32>
    tpu.vector_store %arg16[%c16, %c0_105], %426 {strides = array<i32>} : memref<64x32xf32, #tpu.memory_space<vmem>>, vector<8x32xf32>,
    %c0_106 = arith.constant 0 : index
    %c0_107 = arith.constant 0 : index
    %428 = vector.load %arg10[%c0_106, %c0_107] : memref<32x384xf32, #tpu.memory_space<vmem>>, vector<32x384xf32>
    %cst_108 = arith.constant dense<0.000000e+00> : vector<8x384xf32>
    %429 = tpu.matmul %422, %428, %cst_108 {dimension_numbers = #tpu.dot_dimension_numbers<[1], [0], [0], [1], [0, 0, 1, 1], [], []>} : vector<8x32xf32>, vector<32x384xf32>, vector<8x384xf32> -> vector<8x384xf32>
    %430 = vector.extract_strided_slice %308 {offsets = [24, 0], sizes = [8, 32], strides = [1, 1]} : vector<64x384xf32> to vector<8x32xf32>
    %431 = vector.extract_strided_slice %429 {offsets = [0, 0], sizes = [8, 32], strides = [1, 1]} : vector<8x384xf32> to vector<8x32xf32>
    %432 = arith.addf %430, %431 : vector<8x32xf32>
    %433 = arith.negf %432 : vector<8x32xf32>
    %434 = math.exp %433 : vector<8x32xf32>
    %cst_109 = arith.constant 1.000000e+00 : f32
    %435 = vector.broadcast %cst_109 : f32 to vector<8x32xf32>
    %436 = arith.addf %435, %434 : vector<8x32xf32>
    %437 = arith.divf %435, %436 : vector<8x32xf32>
    %438 = vector.extract_strided_slice %308 {offsets = [24, 128], sizes = [8, 32], strides = [1, 1]} : vector<64x384xf32> to vector<8x32xf32>
    %439 = vector.extract_strided_slice %429 {offsets = [0, 128], sizes = [8, 32], strides = [1, 1]} : vector<8x384xf32> to vector<8x32xf32>
    %440 = arith.addf %438, %439 : vector<8x32xf32>
    %441 = arith.negf %440 : vector<8x32xf32>
    %442 = math.exp %441 : vector<8x32xf32>
    %cst_110 = arith.constant 1.000000e+00 : f32
    %443 = vector.broadcast %cst_110 : f32 to vector<8x32xf32>
    %444 = arith.addf %443, %442 : vector<8x32xf32>
    %445 = arith.divf %443, %444 : vector<8x32xf32>
    %446 = vector.extract_strided_slice %308 {offsets = [24, 256], sizes = [8, 32], strides = [1, 1]} : vector<64x384xf32> to vector<8x32xf32>
    %447 = vector.extract_strided_slice %429 {offsets = [0, 256], sizes = [8, 32], strides = [1, 1]} : vector<8x384xf32> to vector<8x32xf32>
    %448 = arith.addf %447, %310 : vector<8x32xf32>
    %449 = arith.mulf %437, %448 : vector<8x32xf32>
    %450 = arith.addf %446, %449 : vector<8x32xf32>
    %451 = math.tanh %450 : vector<8x32xf32>
    %cst_111 = arith.constant 1.000000e+00 : f32
    %452 = vector.broadcast %cst_111 : f32 to vector<8x32xf32>
    %453 = arith.subf %452, %445 : vector<8x32xf32>
    %454 = arith.mulf %453, %451 : vector<8x32xf32>
    %455 = arith.mulf %445, %422 : vector<8x32xf32>
    %456 = arith.addf %454, %455 : vector<8x32xf32>
    %cst_112 = arith.constant 3.000000e+00 : f32
    %457 = vector.broadcast %cst_112 : f32 to vector<8x1xf32>
    %458 = arith.cmpf ogt, %0, %457 : vector<8x1xf32>
    %459 = vector.shape_cast %458 : vector<8x1xi1> to vector<8x1xi1>
    %460 = vector.broadcast %459 : vector<8x1xi1> to vector<8x32xi1>
    %461 = arith.select %460, %456, %422 : vector<8x32xi1>, vector<8x32xf32>
    %cst_113 = arith.constant 0.000000e+00 : f32
    %462 = vector.shape_cast %458 : vector<8x1xi1> to vector<8x1xi1>
    %463 = vector.broadcast %462 : vector<8x1xi1> to vector<8x32xi1>
    %464 = vector.broadcast %cst_113 : f32 to vector<8x32xf32>
    %465 = arith.select %463, %456, %464 : vector<8x32xi1>, vector<8x32xf32>
    %c24 = arith.constant 24 : index
    %c0_114 = arith.constant 0 : index
    %466 = vector.load %arg16[%c24, %c0_114] : memref<64x32xf32, #tpu.memory_space<vmem>>, vector<8x32xf32>
    tpu.vector_store %arg16[%c24, %c0_114], %465 {strides = array<i32>} : memref<64x32xf32, #tpu.memory_space<vmem>>, vector<8x32xf32>,
    %c0_115 = arith.constant 0 : index
    %c0_116 = arith.constant 0 : index
    %467 = vector.load %arg10[%c0_115, %c0_116] : memref<32x384xf32, #tpu.memory_space<vmem>>, vector<32x384xf32>
    %cst_117 = arith.constant dense<0.000000e+00> : vector<8x384xf32>
    %468 = tpu.matmul %461, %467, %cst_117 {dimension_numbers = #tpu.dot_dimension_numbers<[1], [0], [0], [1], [0, 0, 1, 1], [], []>} : vector<8x32xf32>, vector<32x384xf32>, vector<8x384xf32> -> vector<8x384xf32>
    %469 = vector.extract_strided_slice %308 {offsets = [32, 0], sizes = [8, 32], strides = [1, 1]} : vector<64x384xf32> to vector<8x32xf32>
    %470 = vector.extract_strided_slice %468 {offsets = [0, 0], sizes = [8, 32], strides = [1, 1]} : vector<8x384xf32> to vector<8x32xf32>
    %471 = arith.addf %469, %470 : vector<8x32xf32>
    %472 = arith.negf %471 : vector<8x32xf32>
    %473 = math.exp %472 : vector<8x32xf32>
    %cst_118 = arith.constant 1.000000e+00 : f32
    %474 = vector.broadcast %cst_118 : f32 to vector<8x32xf32>
    %475 = arith.addf %474, %473 : vector<8x32xf32>
    %476 = arith.divf %474, %475 : vector<8x32xf32>
    %477 = vector.extract_strided_slice %308 {offsets = [32, 128], sizes = [8, 32], strides = [1, 1]} : vector<64x384xf32> to vector<8x32xf32>
    %478 = vector.extract_strided_slice %468 {offsets = [0, 128], sizes = [8, 32], strides = [1, 1]} : vector<8x384xf32> to vector<8x32xf32>
    %479 = arith.addf %477, %478 : vector<8x32xf32>
    %480 = arith.negf %479 : vector<8x32xf32>
    %481 = math.exp %480 : vector<8x32xf32>
    %cst_119 = arith.constant 1.000000e+00 : f32
    %482 = vector.broadcast %cst_119 : f32 to vector<8x32xf32>
    %483 = arith.addf %482, %481 : vector<8x32xf32>
    %484 = arith.divf %482, %483 : vector<8x32xf32>
    %485 = vector.extract_strided_slice %308 {offsets = [32, 256], sizes = [8, 32], strides = [1, 1]} : vector<64x384xf32> to vector<8x32xf32>
    %486 = vector.extract_strided_slice %468 {offsets = [0, 256], sizes = [8, 32], strides = [1, 1]} : vector<8x384xf32> to vector<8x32xf32>
    %487 = arith.addf %486, %310 : vector<8x32xf32>
    %488 = arith.mulf %476, %487 : vector<8x32xf32>
    %489 = arith.addf %485, %488 : vector<8x32xf32>
    %490 = math.tanh %489 : vector<8x32xf32>
    %cst_120 = arith.constant 1.000000e+00 : f32
    %491 = vector.broadcast %cst_120 : f32 to vector<8x32xf32>
    %492 = arith.subf %491, %484 : vector<8x32xf32>
    %493 = arith.mulf %492, %490 : vector<8x32xf32>
    %494 = arith.mulf %484, %461 : vector<8x32xf32>
    %495 = arith.addf %493, %494 : vector<8x32xf32>
    %cst_121 = arith.constant 4.000000e+00 : f32
    %496 = vector.broadcast %cst_121 : f32 to vector<8x1xf32>
    %497 = arith.cmpf ogt, %0, %496 : vector<8x1xf32>
    %498 = vector.shape_cast %497 : vector<8x1xi1> to vector<8x1xi1>
    %499 = vector.broadcast %498 : vector<8x1xi1> to vector<8x32xi1>
    %500 = arith.select %499, %495, %461 : vector<8x32xi1>, vector<8x32xf32>
    %cst_122 = arith.constant 0.000000e+00 : f32
    %501 = vector.shape_cast %497 : vector<8x1xi1> to vector<8x1xi1>
    %502 = vector.broadcast %501 : vector<8x1xi1> to vector<8x32xi1>
    %503 = vector.broadcast %cst_122 : f32 to vector<8x32xf32>
    %504 = arith.select %502, %495, %503 : vector<8x32xi1>, vector<8x32xf32>
    %c32 = arith.constant 32 : index
    %c0_123 = arith.constant 0 : index
    %505 = vector.load %arg16[%c32, %c0_123] : memref<64x32xf32, #tpu.memory_space<vmem>>, vector<8x32xf32>
    tpu.vector_store %arg16[%c32, %c0_123], %504 {strides = array<i32>} : memref<64x32xf32, #tpu.memory_space<vmem>>, vector<8x32xf32>,
    %c0_124 = arith.constant 0 : index
    %c0_125 = arith.constant 0 : index
    %506 = vector.load %arg10[%c0_124, %c0_125] : memref<32x384xf32, #tpu.memory_space<vmem>>, vector<32x384xf32>
    %cst_126 = arith.constant dense<0.000000e+00> : vector<8x384xf32>
    %507 = tpu.matmul %500, %506, %cst_126 {dimension_numbers = #tpu.dot_dimension_numbers<[1], [0], [0], [1], [0, 0, 1, 1], [], []>} : vector<8x32xf32>, vector<32x384xf32>, vector<8x384xf32> -> vector<8x384xf32>
    %508 = vector.extract_strided_slice %308 {offsets = [40, 0], sizes = [8, 32], strides = [1, 1]} : vector<64x384xf32> to vector<8x32xf32>
    %509 = vector.extract_strided_slice %507 {offsets = [0, 0], sizes = [8, 32], strides = [1, 1]} : vector<8x384xf32> to vector<8x32xf32>
    %510 = arith.addf %508, %509 : vector<8x32xf32>
    %511 = arith.negf %510 : vector<8x32xf32>
    %512 = math.exp %511 : vector<8x32xf32>
    %cst_127 = arith.constant 1.000000e+00 : f32
    %513 = vector.broadcast %cst_127 : f32 to vector<8x32xf32>
    %514 = arith.addf %513, %512 : vector<8x32xf32>
    %515 = arith.divf %513, %514 : vector<8x32xf32>
    %516 = vector.extract_strided_slice %308 {offsets = [40, 128], sizes = [8, 32], strides = [1, 1]} : vector<64x384xf32> to vector<8x32xf32>
    %517 = vector.extract_strided_slice %507 {offsets = [0, 128], sizes = [8, 32], strides = [1, 1]} : vector<8x384xf32> to vector<8x32xf32>
    %518 = arith.addf %516, %517 : vector<8x32xf32>
    %519 = arith.negf %518 : vector<8x32xf32>
    %520 = math.exp %519 : vector<8x32xf32>
    %cst_128 = arith.constant 1.000000e+00 : f32
    %521 = vector.broadcast %cst_128 : f32 to vector<8x32xf32>
    %522 = arith.addf %521, %520 : vector<8x32xf32>
    %523 = arith.divf %521, %522 : vector<8x32xf32>
    %524 = vector.extract_strided_slice %308 {offsets = [40, 256], sizes = [8, 32], strides = [1, 1]} : vector<64x384xf32> to vector<8x32xf32>
    %525 = vector.extract_strided_slice %507 {offsets = [0, 256], sizes = [8, 32], strides = [1, 1]} : vector<8x384xf32> to vector<8x32xf32>
    %526 = arith.addf %525, %310 : vector<8x32xf32>
    %527 = arith.mulf %515, %526 : vector<8x32xf32>
    %528 = arith.addf %524, %527 : vector<8x32xf32>
    %529 = math.tanh %528 : vector<8x32xf32>
    %cst_129 = arith.constant 1.000000e+00 : f32
    %530 = vector.broadcast %cst_129 : f32 to vector<8x32xf32>
    %531 = arith.subf %530, %523 : vector<8x32xf32>
    %532 = arith.mulf %531, %529 : vector<8x32xf32>
    %533 = arith.mulf %523, %500 : vector<8x32xf32>
    %534 = arith.addf %532, %533 : vector<8x32xf32>
    %cst_130 = arith.constant 5.000000e+00 : f32
    %535 = vector.broadcast %cst_130 : f32 to vector<8x1xf32>
    %536 = arith.cmpf ogt, %0, %535 : vector<8x1xf32>
    %537 = vector.shape_cast %536 : vector<8x1xi1> to vector<8x1xi1>
    %538 = vector.broadcast %537 : vector<8x1xi1> to vector<8x32xi1>
    %539 = arith.select %538, %534, %500 : vector<8x32xi1>, vector<8x32xf32>
    %cst_131 = arith.constant 0.000000e+00 : f32
    %540 = vector.shape_cast %536 : vector<8x1xi1> to vector<8x1xi1>
    %541 = vector.broadcast %540 : vector<8x1xi1> to vector<8x32xi1>
    %542 = vector.broadcast %cst_131 : f32 to vector<8x32xf32>
    %543 = arith.select %541, %534, %542 : vector<8x32xi1>, vector<8x32xf32>
    %c40 = arith.constant 40 : index
    %c0_132 = arith.constant 0 : index
    %544 = vector.load %arg16[%c40, %c0_132] : memref<64x32xf32, #tpu.memory_space<vmem>>, vector<8x32xf32>
    tpu.vector_store %arg16[%c40, %c0_132], %543 {strides = array<i32>} : memref<64x32xf32, #tpu.memory_space<vmem>>, vector<8x32xf32>,
    %c0_133 = arith.constant 0 : index
    %c0_134 = arith.constant 0 : index
    %545 = vector.load %arg10[%c0_133, %c0_134] : memref<32x384xf32, #tpu.memory_space<vmem>>, vector<32x384xf32>
    %cst_135 = arith.constant dense<0.000000e+00> : vector<8x384xf32>
    %546 = tpu.matmul %539, %545, %cst_135 {dimension_numbers = #tpu.dot_dimension_numbers<[1], [0], [0], [1], [0, 0, 1, 1], [], []>} : vector<8x32xf32>, vector<32x384xf32>, vector<8x384xf32> -> vector<8x384xf32>
    %547 = vector.extract_strided_slice %308 {offsets = [48, 0], sizes = [8, 32], strides = [1, 1]} : vector<64x384xf32> to vector<8x32xf32>
    %548 = vector.extract_strided_slice %546 {offsets = [0, 0], sizes = [8, 32], strides = [1, 1]} : vector<8x384xf32> to vector<8x32xf32>
    %549 = arith.addf %547, %548 : vector<8x32xf32>
    %550 = arith.negf %549 : vector<8x32xf32>
    %551 = math.exp %550 : vector<8x32xf32>
    %cst_136 = arith.constant 1.000000e+00 : f32
    %552 = vector.broadcast %cst_136 : f32 to vector<8x32xf32>
    %553 = arith.addf %552, %551 : vector<8x32xf32>
    %554 = arith.divf %552, %553 : vector<8x32xf32>
    %555 = vector.extract_strided_slice %308 {offsets = [48, 128], sizes = [8, 32], strides = [1, 1]} : vector<64x384xf32> to vector<8x32xf32>
    %556 = vector.extract_strided_slice %546 {offsets = [0, 128], sizes = [8, 32], strides = [1, 1]} : vector<8x384xf32> to vector<8x32xf32>
    %557 = arith.addf %555, %556 : vector<8x32xf32>
    %558 = arith.negf %557 : vector<8x32xf32>
    %559 = math.exp %558 : vector<8x32xf32>
    %cst_137 = arith.constant 1.000000e+00 : f32
    %560 = vector.broadcast %cst_137 : f32 to vector<8x32xf32>
    %561 = arith.addf %560, %559 : vector<8x32xf32>
    %562 = arith.divf %560, %561 : vector<8x32xf32>
    %563 = vector.extract_strided_slice %308 {offsets = [48, 256], sizes = [8, 32], strides = [1, 1]} : vector<64x384xf32> to vector<8x32xf32>
    %564 = vector.extract_strided_slice %546 {offsets = [0, 256], sizes = [8, 32], strides = [1, 1]} : vector<8x384xf32> to vector<8x32xf32>
    %565 = arith.addf %564, %310 : vector<8x32xf32>
    %566 = arith.mulf %554, %565 : vector<8x32xf32>
    %567 = arith.addf %563, %566 : vector<8x32xf32>
    %568 = math.tanh %567 : vector<8x32xf32>
    %cst_138 = arith.constant 1.000000e+00 : f32
    %569 = vector.broadcast %cst_138 : f32 to vector<8x32xf32>
    %570 = arith.subf %569, %562 : vector<8x32xf32>
    %571 = arith.mulf %570, %568 : vector<8x32xf32>
    %572 = arith.mulf %562, %539 : vector<8x32xf32>
    %573 = arith.addf %571, %572 : vector<8x32xf32>
    %cst_139 = arith.constant 6.000000e+00 : f32
    %574 = vector.broadcast %cst_139 : f32 to vector<8x1xf32>
    %575 = arith.cmpf ogt, %0, %574 : vector<8x1xf32>
    %576 = vector.shape_cast %575 : vector<8x1xi1> to vector<8x1xi1>
    %577 = vector.broadcast %576 : vector<8x1xi1> to vector<8x32xi1>
    %578 = arith.select %577, %573, %539 : vector<8x32xi1>, vector<8x32xf32>
    %cst_140 = arith.constant 0.000000e+00 : f32
    %579 = vector.shape_cast %575 : vector<8x1xi1> to vector<8x1xi1>
    %580 = vector.broadcast %579 : vector<8x1xi1> to vector<8x32xi1>
    %581 = vector.broadcast %cst_140 : f32 to vector<8x32xf32>
    %582 = arith.select %580, %573, %581 : vector<8x32xi1>, vector<8x32xf32>
    %c48 = arith.constant 48 : index
    %c0_141 = arith.constant 0 : index
    %583 = vector.load %arg16[%c48, %c0_141] : memref<64x32xf32, #tpu.memory_space<vmem>>, vector<8x32xf32>
    tpu.vector_store %arg16[%c48, %c0_141], %582 {strides = array<i32>} : memref<64x32xf32, #tpu.memory_space<vmem>>, vector<8x32xf32>,
    %c0_142 = arith.constant 0 : index
    %c0_143 = arith.constant 0 : index
    %584 = vector.load %arg10[%c0_142, %c0_143] : memref<32x384xf32, #tpu.memory_space<vmem>>, vector<32x384xf32>
    %cst_144 = arith.constant dense<0.000000e+00> : vector<8x384xf32>
    %585 = tpu.matmul %578, %584, %cst_144 {dimension_numbers = #tpu.dot_dimension_numbers<[1], [0], [0], [1], [0, 0, 1, 1], [], []>} : vector<8x32xf32>, vector<32x384xf32>, vector<8x384xf32> -> vector<8x384xf32>
    %586 = vector.extract_strided_slice %308 {offsets = [56, 0], sizes = [8, 32], strides = [1, 1]} : vector<64x384xf32> to vector<8x32xf32>
    %587 = vector.extract_strided_slice %585 {offsets = [0, 0], sizes = [8, 32], strides = [1, 1]} : vector<8x384xf32> to vector<8x32xf32>
    %588 = arith.addf %586, %587 : vector<8x32xf32>
    %589 = arith.negf %588 : vector<8x32xf32>
    %590 = math.exp %589 : vector<8x32xf32>
    %cst_145 = arith.constant 1.000000e+00 : f32
    %591 = vector.broadcast %cst_145 : f32 to vector<8x32xf32>
    %592 = arith.addf %591, %590 : vector<8x32xf32>
    %593 = arith.divf %591, %592 : vector<8x32xf32>
    %594 = vector.extract_strided_slice %308 {offsets = [56, 128], sizes = [8, 32], strides = [1, 1]} : vector<64x384xf32> to vector<8x32xf32>
    %595 = vector.extract_strided_slice %585 {offsets = [0, 128], sizes = [8, 32], strides = [1, 1]} : vector<8x384xf32> to vector<8x32xf32>
    %596 = arith.addf %594, %595 : vector<8x32xf32>
    %597 = arith.negf %596 : vector<8x32xf32>
    %598 = math.exp %597 : vector<8x32xf32>
    %cst_146 = arith.constant 1.000000e+00 : f32
    %599 = vector.broadcast %cst_146 : f32 to vector<8x32xf32>
    %600 = arith.addf %599, %598 : vector<8x32xf32>
    %601 = arith.divf %599, %600 : vector<8x32xf32>
    %602 = vector.extract_strided_slice %308 {offsets = [56, 256], sizes = [8, 32], strides = [1, 1]} : vector<64x384xf32> to vector<8x32xf32>
    %603 = vector.extract_strided_slice %585 {offsets = [0, 256], sizes = [8, 32], strides = [1, 1]} : vector<8x384xf32> to vector<8x32xf32>
    %604 = arith.addf %603, %310 : vector<8x32xf32>
    %605 = arith.mulf %593, %604 : vector<8x32xf32>
    %606 = arith.addf %602, %605 : vector<8x32xf32>
    %607 = math.tanh %606 : vector<8x32xf32>
    %cst_147 = arith.constant 1.000000e+00 : f32
    %608 = vector.broadcast %cst_147 : f32 to vector<8x32xf32>
    %609 = arith.subf %608, %601 : vector<8x32xf32>
    %610 = arith.mulf %609, %607 : vector<8x32xf32>
    %611 = arith.mulf %601, %578 : vector<8x32xf32>
    %612 = arith.addf %610, %611 : vector<8x32xf32>
    %cst_148 = arith.constant 7.000000e+00 : f32
    %613 = vector.broadcast %cst_148 : f32 to vector<8x1xf32>
    %614 = arith.cmpf ogt, %0, %613 : vector<8x1xf32>
    %cst_149 = arith.constant 0.000000e+00 : f32
    %615 = vector.shape_cast %614 : vector<8x1xi1> to vector<8x1xi1>
    %616 = vector.broadcast %615 : vector<8x1xi1> to vector<8x32xi1>
    %617 = vector.broadcast %cst_149 : f32 to vector<8x32xf32>
    %618 = arith.select %616, %612, %617 : vector<8x32xi1>, vector<8x32xf32>
    %c56 = arith.constant 56 : index
    %c0_150 = arith.constant 0 : index
    %619 = vector.load %arg16[%c56, %c0_150] : memref<64x32xf32, #tpu.memory_space<vmem>>, vector<8x32xf32>
    tpu.vector_store %arg16[%c56, %c0_150], %618 {strides = array<i32>} : memref<64x32xf32, #tpu.memory_space<vmem>>, vector<8x32xf32>,
    %c0_151 = arith.constant 0 : index
    %c0_152 = arith.constant 0 : index
    %620 = vector.load %arg16[%c0_151, %c0_152] : memref<64x32xf32, #tpu.memory_space<vmem>>, vector<64x32xf32>
    %c0_153 = arith.constant 0 : index
    %c0_154 = arith.constant 0 : index
    %621 = vector.load %arg14[%c0_153, %c0_154] : memref<32x24xf32, #tpu.memory_space<vmem>>, vector<32x24xf32>
    %cst_155 = arith.constant dense<0.000000e+00> : vector<64x24xf32>
    %622 = tpu.matmul %620, %621, %cst_155 {dimension_numbers = #tpu.dot_dimension_numbers<[1], [0], [0], [1], [0, 0, 1, 1], [], []>} : vector<64x32xf32>, vector<32x24xf32>, vector<64x24xf32> -> vector<64x24xf32>
    %623 = vector.extract_strided_slice %1 {offsets = [6, 0], sizes = [1, 24], strides = [1, 1]} : vector<8x384xf32> to vector<1x24xf32>
    %624 = vector.broadcast %623 : vector<1x24xf32> to vector<64x24xf32>
    %625 = arith.addf %622, %624 : vector<64x24xf32>
    %cst_156 = arith.constant dense<0xFF800000> : vector<64xf32>
    %626 = vector.multi_reduction <maximumf>, %625, %cst_156 [1] : vector<64x24xf32> to vector<64xf32>
    %627 = vector.shape_cast %626 : vector<64xf32> to vector<64x1xf32>
    %628 = vector.broadcast %627 : vector<64x1xf32> to vector<64x24xf32>
    %629 = arith.subf %625, %628 : vector<64x24xf32>
    %630 = math.exp %629 : vector<64x24xf32>
    %cst_157 = arith.constant dense<0.000000e+00> : vector<64xf32>
    %631 = vector.multi_reduction <add>, %630, %cst_157 [1] : vector<64x24xf32> to vector<64xf32>
    %632 = vector.shape_cast %631 : vector<64xf32> to vector<64x1xf32>
    %633 = math.log %632 : vector<64x1xf32>
    %634 = arith.addf %627, %633 : vector<64x1xf32>
    %c0_158 = arith.constant 0 : index
    %c0_159 = arith.constant 0 : index
    %635 = vector.load %arg6[%c0_158, %c0_159] : memref<64x1xi32, #tpu.memory_space<vmem>>, vector<64x1xi32>
    %636 = tpu.iota {dimensions = array<i32: 1>} : vector<64x24xi32>
    %637 = vector.broadcast %635 : vector<64x1xi32> to vector<64x24xi32>
    %638 = arith.cmpi eq, %636, %637 : vector<64x24xi32>
    %cst_160 = arith.constant 0.000000e+00 : f32
    %639 = vector.broadcast %cst_160 : f32 to vector<64x24xf32>
    %640 = arith.select %638, %625, %639 : vector<64x24xi1>, vector<64x24xf32>
    %cst_161 = arith.constant dense<0.000000e+00> : vector<64xf32>
    %641 = vector.multi_reduction <add>, %640, %cst_161 [1] : vector<64x24xf32> to vector<64xf32>
    %642 = vector.shape_cast %641 : vector<64xf32> to vector<64x1xf32>
    %c0_i32 = arith.constant 0 : i32
    %643 = vector.broadcast %c0_i32 : i32 to vector<64x1xi32>
    %644 = arith.cmpi ne, %635, %643 : vector<64x1xi32>
    %645 = arith.extui %644 : vector<64x1xi1> to vector<64x1xi32>
    %646 = arith.sitofp %645 : vector<64x1xi32> to vector<64x1xf32>
    %647 = arith.subf %634, %642 : vector<64x1xf32>
    %648 = arith.mulf %646, %647 : vector<64x1xf32>
    %cst_162 = arith.constant dense<0.000000e+00> : vector<64xf32>
    %649 = vector.multi_reduction <add>, %648, %cst_162 [1] : vector<64x1xf32> to vector<64xf32>
    %650 = vector.shape_cast %649 : vector<64xf32> to vector<64x1xf32>
    %cst_163 = arith.constant dense<0.000000e+00> : vector<1xf32>
    %651 = vector.multi_reduction <add>, %650, %cst_163 [0] : vector<64x1xf32> to vector<1xf32>
    %652 = vector.shape_cast %651 : vector<1xf32> to vector<1x1xf32>
    %653 = tpu.iota {dimensions = array<i32: 0>} : vector<8x1xi32>
    %c4_i32 = arith.constant 4 : i32
    %654 = vector.broadcast %c4_i32 : i32 to vector<8x1xi32>
    %655 = arith.cmpi slt, %653, %654 : vector<8x1xi32>
    %656 = arith.extui %655 : vector<8x1xi1> to vector<8x1xi32>
    %657 = arith.sitofp %656 : vector<8x1xi32> to vector<8x1xf32>
    %658 = tpu.iota {dimensions = array<i32: 1>} : vector<8x8xi32>
    %659 = tpu.iota {dimensions = array<i32: 0>} : vector<8x8xi32>
    %c4_i32_164 = arith.constant 4 : i32
    %660 = vector.broadcast %c4_i32_164 : i32 to vector<8x8xi32>
    %661 = arith.cmpi slt, %659, %660 : vector<8x8xi32>
    %c4_i32_165 = arith.constant 4 : i32
    %662 = vector.broadcast %c4_i32_165 : i32 to vector<8x8xi32>
    %663 = arith.cmpi slt, %658, %662 : vector<8x8xi32>
    %664 = arith.andi %661, %663 : vector<8x8xi1>
    %cst_166 = arith.constant 0.000000e+00 : f32
    %665 = vector.broadcast %cst_166 : f32 to vector<8x16xf32>
    %666 = arith.subf %665, %290 : vector<8x16xf32>
    %667 = math.exp %666 : vector<8x16xf32>
    %cst_167 = arith.constant dense<0.000000e+00> : vector<8xf32>
    %668 = vector.multi_reduction <add>, %290, %cst_167 [1] : vector<8x16xf32> to vector<8xf32>
    %669 = vector.shape_cast %668 : vector<8xf32> to vector<8x1xf32>
    %670 = arith.mulf %296, %296 : vector<8x16xf32>
    %cst_168 = arith.constant dense<0.000000e+00> : vector<8xf32>
    %671 = vector.multi_reduction <add>, %670, %cst_168 [1] : vector<8x16xf32> to vector<8xf32>
    %672 = vector.shape_cast %671 : vector<8xf32> to vector<8x1xf32>
    %673 = arith.subf %296, %289 : vector<8x16xf32>
    %674 = arith.mulf %673, %673 : vector<8x16xf32>
    %675 = arith.mulf %674, %667 : vector<8x16xf32>
    %cst_169 = arith.constant dense<0.000000e+00> : vector<8xf32>
    %676 = vector.multi_reduction <add>, %675, %cst_169 [1] : vector<8x16xf32> to vector<8xf32>
    %677 = vector.shape_cast %676 : vector<8xf32> to vector<8x1xf32>
    %cst_170 = arith.constant -5.000000e-01 : f32
    %678 = vector.broadcast %cst_170 : f32 to vector<8x1xf32>
    %679 = arith.mulf %657, %678 : vector<8x1xf32>
    %680 = arith.addf %669, %677 : vector<8x1xf32>
    %681 = arith.subf %680, %672 : vector<8x1xf32>
    %682 = arith.mulf %679, %681 : vector<8x1xf32>
    %cst_171 = arith.constant dense<0.000000e+00> : vector<1xf32>
    %683 = vector.multi_reduction <add>, %682, %cst_171 [0] : vector<8x1xf32> to vector<1xf32>
    %684 = vector.shape_cast %683 : vector<1xf32> to vector<1x1xf32>
    %cst_172 = arith.constant 1.000000e+00 : f32
    %685 = vector.broadcast %cst_172 : f32 to vector<1x16xf32>
    %686 = arith.mulf %289, %667 : vector<8x16xf32>
    %687 = arith.mulf %296, %296 : vector<8x16xf32>
    %cst_173 = arith.constant dense<0.000000e+00> : vector<8x8xf32>
    %688 = tpu.matmul %687, %667, %cst_173 {dimension_numbers = #tpu.dot_dimension_numbers<[1], [1], [0], [0], [0, 0, 1, 0], [], []>} : vector<8x16xf32>, vector<8x16xf32>, vector<8x8xf32> -> vector<8x8xf32>
    %cst_174 = arith.constant dense<0.000000e+00> : vector<8x8xf32>
    %689 = tpu.matmul %296, %686, %cst_174 {dimension_numbers = #tpu.dot_dimension_numbers<[1], [1], [0], [0], [0, 0, 1, 0], [], []>} : vector<8x16xf32>, vector<8x16xf32>, vector<8x8xf32> -> vector<8x8xf32>
    %690 = arith.mulf %289, %686 : vector<8x16xf32>
    %cst_175 = arith.constant dense<0.000000e+00> : vector<1x8xf32>
    %691 = tpu.matmul %685, %690, %cst_175 {dimension_numbers = #tpu.dot_dimension_numbers<[1], [1], [0], [0], [0, 0, 1, 0], [], []>} : vector<1x16xf32>, vector<8x16xf32>, vector<1x8xf32> -> vector<1x8xf32>
    %cst_176 = arith.constant dense<0.000000e+00> : vector<1x8xf32>
    %692 = tpu.matmul %685, %290, %cst_176 {dimension_numbers = #tpu.dot_dimension_numbers<[1], [1], [0], [0], [0, 0, 1, 0], [], []>} : vector<1x16xf32>, vector<8x16xf32>, vector<1x8xf32> -> vector<1x8xf32>
    %cst_177 = arith.constant 29.4060326 : f32
    %693 = vector.broadcast %cst_177 : f32 to vector<1x8xf32>
    %694 = arith.addf %693, %692 : vector<1x8xf32>
    %695 = vector.broadcast %694 : vector<1x8xf32> to vector<8x8xf32>
    %696 = arith.addf %695, %688 : vector<8x8xf32>
    %cst_178 = arith.constant 2.000000e+00 : f32
    %697 = vector.broadcast %cst_178 : f32 to vector<8x8xf32>
    %698 = arith.mulf %697, %689 : vector<8x8xf32>
    %699 = arith.subf %696, %698 : vector<8x8xf32>
    %700 = vector.broadcast %691 : vector<1x8xf32> to vector<8x8xf32>
    %701 = arith.addf %699, %700 : vector<8x8xf32>
    %cst_179 = arith.constant -5.000000e-01 : f32
    %702 = vector.broadcast %cst_179 : f32 to vector<8x8xf32>
    %703 = arith.mulf %702, %701 : vector<8x8xf32>
    %c4_i32_180 = arith.constant 4 : i32
    %704 = vector.broadcast %c4_i32_180 : i32 to vector<8x8xi32>
    %705 = arith.cmpi slt, %658, %704 : vector<8x8xi32>
    %c0_181 = arith.constant 0 : index
    %c0_182 = arith.constant 0 : index
    %706 = vector.load %arg5[%c0_181, %c0_182] : memref<8x8xf32, #tpu.memory_space<vmem>>, vector<8x8xf32>
    %707 = arith.addf %703, %706 : vector<8x8xf32>
    %cst_183 = arith.constant -1.000000e+30 : f32
    %708 = vector.broadcast %cst_183 : f32 to vector<8x8xf32>
    %709 = arith.select %705, %707, %708 : vector<8x8xi1>, vector<8x8xf32>
    %cst_184 = arith.constant dense<0xFF800000> : vector<8xf32>
    %710 = vector.multi_reduction <maximumf>, %709, %cst_184 [1] : vector<8x8xf32> to vector<8xf32>
    %711 = vector.shape_cast %710 : vector<8xf32> to vector<8x1xf32>
    %712 = vector.broadcast %711 : vector<8x1xf32> to vector<8x8xf32>
    %713 = arith.subf %709, %712 : vector<8x8xf32>
    %714 = math.exp %713 : vector<8x8xf32>
    %cst_185 = arith.constant dense<0.000000e+00> : vector<8xf32>
    %715 = vector.multi_reduction <add>, %714, %cst_185 [1] : vector<8x8xf32> to vector<8xf32>
    %716 = vector.shape_cast %715 : vector<8xf32> to vector<8x1xf32>
    %717 = math.log %716 : vector<8x1xf32>
    %718 = arith.addf %711, %717 : vector<8x1xf32>
    %cst_186 = arith.constant 29.4060326 : f32
    %719 = vector.broadcast %cst_186 : f32 to vector<8x1xf32>
    %720 = arith.addf %719, %672 : vector<8x1xf32>
    %cst_187 = arith.constant -5.000000e-01 : f32
    %721 = vector.broadcast %cst_187 : f32 to vector<8x1xf32>
    %722 = arith.mulf %721, %720 : vector<8x1xf32>
    %723 = arith.subf %718, %722 : vector<8x1xf32>
    %724 = arith.mulf %657, %723 : vector<8x1xf32>
    %cst_188 = arith.constant dense<0.000000e+00> : vector<1xf32>
    %725 = vector.multi_reduction <add>, %724, %cst_188 [0] : vector<8x1xf32> to vector<1xf32>
    %726 = vector.shape_cast %725 : vector<1xf32> to vector<1x1xf32>
    %c0_189 = arith.constant 0 : index
    %c0_190 = arith.constant 0 : index
    %727 = vector.load %arg4[%c0_189, %c0_190] : memref<8x16xf32, #tpu.memory_space<vmem>>, vector<8x16xf32>
    %728 = arith.mulf %727, %727 : vector<8x16xf32>
    %cst_191 = arith.constant dense<0.000000e+00> : vector<8xf32>
    %729 = vector.multi_reduction <add>, %728, %cst_191 [1] : vector<8x16xf32> to vector<8xf32>
    %730 = vector.shape_cast %729 : vector<8xf32> to vector<8x1xf32>
    %731 = arith.mulf %296, %296 : vector<8x16xf32>
    %cst_192 = arith.constant dense<0.000000e+00> : vector<1x8xf32>
    %732 = tpu.matmul %685, %731, %cst_192 {dimension_numbers = #tpu.dot_dimension_numbers<[1], [1], [0], [0], [0, 0, 1, 0], [], []>} : vector<1x16xf32>, vector<8x16xf32>, vector<1x8xf32> -> vector<1x8xf32>
    %733 = arith.mulf %727, %727 : vector<8x16xf32>
    %cst_193 = arith.constant dense<0.000000e+00> : vector<1x8xf32>
    %734 = tpu.matmul %685, %733, %cst_193 {dimension_numbers = #tpu.dot_dimension_numbers<[1], [1], [0], [0], [0, 0, 1, 0], [], []>} : vector<1x16xf32>, vector<8x16xf32>, vector<1x8xf32> -> vector<1x8xf32>
    %cst_194 = arith.constant dense<0.000000e+00> : vector<8x8xf32>
    %735 = tpu.matmul %727, %727, %cst_194 {dimension_numbers = #tpu.dot_dimension_numbers<[1], [1], [0], [0], [0, 0, 1, 0], [], []>} : vector<8x16xf32>, vector<8x16xf32>, vector<8x8xf32> -> vector<8x8xf32>
    %736 = vector.broadcast %730 : vector<8x1xf32> to vector<8x8xf32>
    %737 = vector.broadcast %734 : vector<1x8xf32> to vector<8x8xf32>
    %738 = arith.addf %736, %737 : vector<8x8xf32>
    %cst_195 = arith.constant 2.000000e+00 : f32
    %739 = vector.broadcast %cst_195 : f32 to vector<8x8xf32>
    %740 = arith.mulf %739, %735 : vector<8x8xf32>
    %741 = arith.subf %738, %740 : vector<8x8xf32>
    %cst_196 = arith.constant 0.000000e+00 : f32
    %742 = vector.broadcast %cst_196 : f32 to vector<8x8xf32>
    %743 = arith.maximumf %741, %742 : vector<8x8xf32>
    %cst_197 = arith.constant 0.000000e+00 : f32
    %744 = vector.broadcast %cst_197 : f32 to vector<8x8xf32>
    %745 = arith.subf %744, %743 : vector<8x8xf32>
    %cst_198 = arith.constant 3.906250e-03 : f32
    %746 = vector.broadcast %cst_198 : f32 to vector<8x8xf32>
    %747 = arith.mulf %745, %746 : vector<8x8xf32>
    %748 = math.exp %747 : vector<8x8xf32>
    %cst_199 = arith.constant 0.000000e+00 : f32
    %749 = vector.broadcast %cst_199 : f32 to vector<8x8xf32>
    %750 = arith.select %664, %748, %749 : vector<8x8xi1>, vector<8x8xf32>
    %cst_200 = arith.constant dense<0.000000e+00> : vector<8xf32>
    %751 = vector.multi_reduction <add>, %750, %cst_200 [1] : vector<8x8xf32> to vector<8xf32>
    %752 = vector.shape_cast %751 : vector<8xf32> to vector<8x1xf32>
    %cst_201 = arith.constant dense<0.000000e+00> : vector<1xf32>
    %753 = vector.multi_reduction <add>, %752, %cst_201 [0] : vector<8x1xf32> to vector<1xf32>
    %754 = vector.shape_cast %753 : vector<1xf32> to vector<1x1xf32>
    %cst_202 = arith.constant 6.250000e-02 : f32
    %755 = vector.broadcast %cst_202 : f32 to vector<1x1xf32>
    %756 = arith.mulf %754, %755 : vector<1x1xf32>
    %cst_203 = arith.constant dense<0.000000e+00> : vector<8x8xf32>
    %757 = tpu.matmul %296, %296, %cst_203 {dimension_numbers = #tpu.dot_dimension_numbers<[1], [1], [0], [0], [0, 0, 1, 0], [], []>} : vector<8x16xf32>, vector<8x16xf32>, vector<8x8xf32> -> vector<8x8xf32>
    %758 = vector.broadcast %672 : vector<8x1xf32> to vector<8x8xf32>
    %759 = vector.broadcast %732 : vector<1x8xf32> to vector<8x8xf32>
    %760 = arith.addf %758, %759 : vector<8x8xf32>
    %cst_204 = arith.constant 2.000000e+00 : f32
    %761 = vector.broadcast %cst_204 : f32 to vector<8x8xf32>
    %762 = arith.mulf %761, %757 : vector<8x8xf32>
    %763 = arith.subf %760, %762 : vector<8x8xf32>
    %cst_205 = arith.constant 0.000000e+00 : f32
    %764 = vector.broadcast %cst_205 : f32 to vector<8x8xf32>
    %765 = arith.maximumf %763, %764 : vector<8x8xf32>
    %cst_206 = arith.constant 0.000000e+00 : f32
    %766 = vector.broadcast %cst_206 : f32 to vector<8x8xf32>
    %767 = arith.subf %766, %765 : vector<8x8xf32>
    %cst_207 = arith.constant 3.906250e-03 : f32
    %768 = vector.broadcast %cst_207 : f32 to vector<8x8xf32>
    %769 = arith.mulf %767, %768 : vector<8x8xf32>
    %770 = math.exp %769 : vector<8x8xf32>
    %cst_208 = arith.constant 0.000000e+00 : f32
    %771 = vector.broadcast %cst_208 : f32 to vector<8x8xf32>
    %772 = arith.select %664, %770, %771 : vector<8x8xi1>, vector<8x8xf32>
    %cst_209 = arith.constant dense<0.000000e+00> : vector<8xf32>
    %773 = vector.multi_reduction <add>, %772, %cst_209 [1] : vector<8x8xf32> to vector<8xf32>
    %774 = vector.shape_cast %773 : vector<8xf32> to vector<8x1xf32>
    %cst_210 = arith.constant dense<0.000000e+00> : vector<1xf32>
    %775 = vector.multi_reduction <add>, %774, %cst_210 [0] : vector<8x1xf32> to vector<1xf32>
    %776 = vector.shape_cast %775 : vector<1xf32> to vector<1x1xf32>
    %cst_211 = arith.constant 6.250000e-02 : f32
    %777 = vector.broadcast %cst_211 : f32 to vector<1x1xf32>
    %778 = arith.mulf %776, %777 : vector<1x1xf32>
    %779 = arith.addf %756, %778 : vector<1x1xf32>
    %cst_212 = arith.constant dense<0.000000e+00> : vector<8x8xf32>
    %780 = tpu.matmul %727, %296, %cst_212 {dimension_numbers = #tpu.dot_dimension_numbers<[1], [1], [0], [0], [0, 0, 1, 0], [], []>} : vector<8x16xf32>, vector<8x16xf32>, vector<8x8xf32> -> vector<8x8xf32>
    %781 = vector.broadcast %730 : vector<8x1xf32> to vector<8x8xf32>
    %782 = vector.broadcast %732 : vector<1x8xf32> to vector<8x8xf32>
    %783 = arith.addf %781, %782 : vector<8x8xf32>
    %cst_213 = arith.constant 2.000000e+00 : f32
    %784 = vector.broadcast %cst_213 : f32 to vector<8x8xf32>
    %785 = arith.mulf %784, %780 : vector<8x8xf32>
    %786 = arith.subf %783, %785 : vector<8x8xf32>
    %cst_214 = arith.constant 0.000000e+00 : f32
    %787 = vector.broadcast %cst_214 : f32 to vector<8x8xf32>
    %788 = arith.maximumf %786, %787 : vector<8x8xf32>
    %cst_215 = arith.constant 0.000000e+00 : f32
    %789 = vector.broadcast %cst_215 : f32 to vector<8x8xf32>
    %790 = arith.subf %789, %788 : vector<8x8xf32>
    %cst_216 = arith.constant 3.906250e-03 : f32
    %791 = vector.broadcast %cst_216 : f32 to vector<8x8xf32>
    %792 = arith.mulf %790, %791 : vector<8x8xf32>
    %793 = math.exp %792 : vector<8x8xf32>
    %cst_217 = arith.constant 0.000000e+00 : f32
    %794 = vector.broadcast %cst_217 : f32 to vector<8x8xf32>
    %795 = arith.select %664, %793, %794 : vector<8x8xi1>, vector<8x8xf32>
    %cst_218 = arith.constant dense<0.000000e+00> : vector<8xf32>
    %796 = vector.multi_reduction <add>, %795, %cst_218 [1] : vector<8x8xf32> to vector<8xf32>
    %797 = vector.shape_cast %796 : vector<8xf32> to vector<8x1xf32>
    %cst_219 = arith.constant dense<0.000000e+00> : vector<1xf32>
    %798 = vector.multi_reduction <add>, %797, %cst_219 [0] : vector<8x1xf32> to vector<1xf32>
    %799 = vector.shape_cast %798 : vector<1xf32> to vector<1x1xf32>
    %cst_220 = arith.constant 6.250000e-02 : f32
    %800 = vector.broadcast %cst_220 : f32 to vector<1x1xf32>
    %801 = arith.mulf %799, %800 : vector<1x1xf32>
    %cst_221 = arith.constant 2.000000e+00 : f32
    %802 = vector.broadcast %cst_221 : f32 to vector<1x1xf32>
    %803 = arith.mulf %802, %801 : vector<1x1xf32>
    %804 = arith.subf %779, %803 : vector<1x1xf32>
    %805 = tpu.iota {dimensions = array<i32: 1>} : vector<1x128xi32>
    %c0_i32_222 = arith.constant 0 : i32
    %806 = vector.broadcast %c0_i32_222 : i32 to vector<1x128xi32>
    %807 = arith.cmpi eq, %805, %806 : vector<1x128xi32>
    %cst_223 = arith.constant 0.000000e+00 : f32
    %808 = vector.shape_cast %652 : vector<1x1xf32> to vector<1x1xf32>
    %809 = vector.broadcast %808 : vector<1x1xf32> to vector<1x128xf32>
    %810 = vector.broadcast %cst_223 : f32 to vector<1x128xf32>
    %811 = arith.select %807, %809, %810 : vector<1x128xi1>, vector<1x128xf32>
    %c1_i32 = arith.constant 1 : i32
    %812 = vector.broadcast %c1_i32 : i32 to vector<1x128xi32>
    %813 = arith.cmpi eq, %805, %812 : vector<1x128xi32>
    %cst_224 = arith.constant 0.000000e+00 : f32
    %814 = vector.shape_cast %684 : vector<1x1xf32> to vector<1x1xf32>
    %815 = vector.broadcast %814 : vector<1x1xf32> to vector<1x128xf32>
    %816 = vector.broadcast %cst_224 : f32 to vector<1x128xf32>
    %817 = arith.select %813, %815, %816 : vector<1x128xi1>, vector<1x128xf32>
    %818 = arith.addf %811, %817 : vector<1x128xf32>
    %c2_i32 = arith.constant 2 : i32
    %819 = vector.broadcast %c2_i32 : i32 to vector<1x128xi32>
    %820 = arith.cmpi eq, %805, %819 : vector<1x128xi32>
    %cst_225 = arith.constant 0.000000e+00 : f32
    %821 = vector.shape_cast %726 : vector<1x1xf32> to vector<1x1xf32>
    %822 = vector.broadcast %821 : vector<1x1xf32> to vector<1x128xf32>
    %823 = vector.broadcast %cst_225 : f32 to vector<1x128xf32>
    %824 = arith.select %820, %822, %823 : vector<1x128xi1>, vector<1x128xf32>
    %825 = arith.addf %818, %824 : vector<1x128xf32>
    %c3_i32 = arith.constant 3 : i32
    %826 = vector.broadcast %c3_i32 : i32 to vector<1x128xi32>
    %827 = arith.cmpi eq, %805, %826 : vector<1x128xi32>
    %cst_226 = arith.constant 0.000000e+00 : f32
    %828 = vector.shape_cast %804 : vector<1x1xf32> to vector<1x1xf32>
    %829 = vector.broadcast %828 : vector<1x1xf32> to vector<1x128xf32>
    %830 = vector.broadcast %cst_226 : f32 to vector<1x128xf32>
    %831 = arith.select %827, %829, %830 : vector<1x128xi1>, vector<1x128xf32>
    %832 = arith.addf %825, %831 : vector<1x128xf32>
    %833 = vector.shape_cast %832 : vector<1x128xf32> to vector<1x128xf32>
    %834 = vector.broadcast %833 : vector<1x128xf32> to vector<8x128xf32>
    %c0_227 = arith.constant 0 : index
    %c0_228 = arith.constant 0 : index
    %835 = vector.load %arg15[%c0_227, %c0_228] : memref<8x128xf32, #tpu.memory_space<vmem>>, vector<8x128xf32>
    tpu.vector_store %arg15[%c0_227, %c0_228], %834 {strides = array<i32>} : memref<8x128xf32, #tpu.memory_space<vmem>>, vector<8x128xf32>,
    return
  }
}

</mosaic_0001>

<bundles_post_ra>
// kernel: _vae_loss_impl.3
= control target key start
LH: loop header
LB: loop body
LE: loop exit
PB: predicated region body
PF: predicated region fallthrough
CT: control target
= control target key end

     0   :  { %v5923_v3 = vmov 0.0   ;;  %v5924_v7 = vmov 0   ;;  %vm83_vm0 = vcmask 195584   ;;  %v5925_v39 = vmov 0.0|0.0   ;;  %s7153_s7 = inlined_call_operand.vmem [shape: f32[24,384], index: 7, kind: input, shape index: {}]   ;;  %s7154_s0 = inlined_call_operand.vmem [shape: f32[64,24], index: 0, kind: input, shape index: {}]   ;;  %s7155_s8 = inlined_call_operand.vmem [shape: f32[32,384], index: 8, kind: input, shape index: {}]   ;;  %s7156_s2 = inlined_call_operand.vmem [shape: f32[8,1], index: 2, kind: input, shape index: {}]   ;;  %s7157_s6 = inlined_call_operand.vmem [shape: s32[64,1], index: 6, kind: input, shape index: {}]   ;;  %s7158_s11 = inlined_call_operand.vmem [shape: f32[8,384], index: 11, kind: input, shape index: {}]   ;;  %s7159_s12 = inlined_call_operand.vmem [shape: f32[32,256], index: 12, kind: input, shape index: {}]   ;;  %s7160_s13 = inlined_call_operand.vmem [shape: f32[16,32], index: 13, kind: input, shape index: {}]   ;;  %s7161_s9 = inlined_call_operand.vmem [shape: f32[24,384], index: 9, kind: input, shape index: {}]   ;;  %s7162_s1 = inlined_call_operand.vmem [shape: f32[64,24], index: 1, kind: input, shape index: {}]   ;;  %s7163_s10 = inlined_call_operand.vmem [shape: f32[32,384], index: 10, kind: input, shape index: {}]   ;;  %s7164_s3 = inlined_call_operand.vmem [shape: f32[8,16], index: 3, kind: input, shape index: {}]   ;;  %s7165_s14 = inlined_call_operand.vmem [shape: f32[32,24], index: 14, kind: input, shape index: {}]   ;;  %s7166_s4 = inlined_call_operand.vmem [shape: f32[8,16], index: 4, kind: input, shape index: {}]   ;;  %s7167_s5 = inlined_call_operand.vmem [shape: f32[8,8], index: 5, kind: input, shape index: {}]   ;;  %s7168_s15 = inlined_call_operand.vmem [shape: f32[8,128], index: 15, kind: output, shape index: {}]  }
   0x1   :  { %v63_v0 = vld [vmem:[%s7153_s7 + $0x8] sm:$0xff]  ;;  %v66_v1 = vld [vmem:[%s7153_s7 + $0x20] sm:$0xff]  ;;  %172 = vmatprep.mubr.f32.mxu0 %v5923_v3  ;;  %v65_v5 = vld [vmem:[%s7153_s7 + $0x18] sm:$0xff]  ;;  %5710 = vset.pattern.permute.xlu0 %v5924_v7  ;;  %vm5926_vm5 = vmmov 0   ;;  %v71_v47 = vlaneseq  ;;  %vm342_vm7 = vcmask 261120  }
   0x2   :  { %v62_v2 = vld [vmem:[%s7153_s7] sm:$0xff]  ;;  %v5382_v4 = vpack.c.bf16 %v66_v1, %v63_v0  ;;  %v69_v6 = vld [vmem:[%s7153_s7 + $0x38] sm:$0xff]  ;;  %5711 = vset.pattern.permute.xlu1 %v5924_v7  ;;  %v331_v10 = vld [vmem:[%s7155_s8 + $0x8] sm:$0xff] }
   0x3   :  { %v5384_v8 = vpack.c.bf16 %v65_v5, %v62_v2  ;;  %v54_v9 = vld [vmem:[%s7154_s0] sm:$0xff]  ;;  %v333_v13 = vld [vmem:[%s7155_s8 + $0x18] sm:$0xff]  ;;  %v68_v14 = vld [vmem:[%s7153_s7 + $0x30] sm:$0xff]  ;;  %v6176_v48 = vshrl.u32 %v71_v47, 7 }
   0x4   :  { %v334_v11 = vld [vmem:[%s7155_s8 + $0x20] sm:$0xff]  ;;  %5383 = vmatprep.subr.bf16.mxu0 %v5382_v4  ;;  %5104 = vmatprep.mubr.msk.f32.mxu1 %vm83_vm0, %v54_v9  ;;  %v337_v16 = vld [vmem:[%s7155_s8 + $0x38] sm:$0xff]  ;;  %v340_v17 = vld [vmem:[%s7155_s8 + $0x50] sm:$0xff] }
   0x5   :  { %v330_v12 = vld [vmem:[%s7155_s8] sm:$0xff]  ;;  %5385 = vmatpush1.bf16.msra.mxu0 %v5384_v8  ;;  %v6045_v15 = vpack.c.bf16 %v334_v11, %v331_v10  ;;  %v336_v19 = vld [vmem:[%s7155_s8 + $0x30] sm:$0xff]  ;;  %v6058_v20 = vpack.c.bf16 %v340_v17, %v337_v16  ;;  %v339_v21 = vld [vmem:[%s7155_s8 + $0x48] sm:$0xff]  ;;  %v6184_v50 = vsub.s32 0, %v6176_v48 }
   0x6   :  { %112 = vmatprep.subr.mxu0 %v69_v6  ;;  %v6053_v18 = vpack.c.bf16 %v333_v13, %v330_v12  ;;  %v64_v22 = vld [vmem:[%s7153_s7 + $0x10] sm:$0xff]  ;;  %v67_v23 = vld [vmem:[%s7153_s7 + $0x28] sm:$0xff]  ;;  %v6074_v25 = vld [vmem:[%s7156_s2] sm:$0xff]  ;;  %v6081_v27 = vpack.c.bf16 %v339_v21, %v336_v19 }
   0x7   :  { %v5386_v24 = vpack.c.bf16 %v67_v23, %v64_v22  ;;  %v55_v26 = vld [vmem:[%s7154_s0 + $0x8] sm:$0xff]  ;;  %v70_v28 = vld [vmem:[%s7153_s7 + $0x40] sm:$0xff]  ;;  %vm509_vm1 = vcmp.gt.f32.partialorder %v6074_v25, 0.0  ;;  %vm682_vm2 = vcmp.gt.f32.partialorder %v6074_v25, 1.0  ;;  %v332_v30 = vld [vmem:[%s7155_s8 + $0x10] sm:$0xff]  ;;  %vm1201_vm3 = vcmp.gt.f32.partialorder %v6074_v25, 4.0 }
   0x8   :  { %v510_v29 = vsel %vm509_vm1, 1, %v5924_v7  ;;  %v335_v31 = vld [vmem:[%s7155_s8 + $0x28] sm:$0xff]  ;;  %v683_v32 = vsel %vm682_vm2, 1, %v5924_v7  ;;  %v56_v33 = vld [vmem:[%s7154_s0 + $0x10] sm:$0xff]  ;;  %v338_v35 = vld [vmem:[%s7155_s8 + $0x40] sm:$0xff]  ;;  %v1202_v37 = vsel %vm1201_vm3, 1, %v5924_v7 }
   0x9   :  { %113 = vmatpush1.msra.mxu0 %v68_v14  ;;  %5387 = vmatprep.subr.bf16.mxu1 %v5386_v24  ;;  %v6104_v34 = vpack.c.bf16 %v335_v31, %v332_v30  ;;  %v341_v36 = vld [vmem:[%s7155_s8 + $0x58] sm:$0xff]  ;;  %vm1547_vm4 = vcmp.gt.f32.partialorder %v6074_v25, 6.0  ;;  %v58_v41 = vld [vmem:[%s7154_s0 + $0x20] sm:$0xff]  ;;  %v59_v43 = vld [vmem:[%s7154_s0 + $0x28] sm:$0xff]  ;;  %v328_v22 = vsub.s32 1, %v6176_v48  ;;  %vm855_vm8 = vcmp.gt.f32.partialorder %v6074_v25, 2.0 }
   0xa   :  { %4832 = vmatmul.mubr.msk.f32.vlgmr.msra.gmra.mrb[0].mxu0 %vm83_vm0, %v54_v9  ;;  %5391 = vmatprep.subr.bf16.mxu0 %v6045_v15  ;;  %v57_v38 = vld [vmem:[%s7154_s0 + $0x18] sm:$0xff]  ;;  %v6124_v40 = vpack.c.bf16 %v341_v36, %v338_v35  ;;  %v1548_v42 = vsel %vm1547_vm4, 1, %v5924_v7  ;;  %v60_v44 = vld [vmem:[%s7154_s0 + $0x30] sm:$0xff]  ;;  %v3867_v45 = vld [vmem:[%s7157_s6 + $0x8] sm:$0xff]  ;;  %vm1028_vm9 = vcmp.gt.f32.partialorder %v6074_v25, 3.0  ;;  %vm1374_vm10 = vcmp.gt.f32.partialorder %v6074_v25, 5.0 }
   0xb   :  { %5393 = vmatpush1.bf16.msra.mxu0 %v6053_v18  ;;  %178 = vmatprep.mubr.f32.mxu0 %v5923_v3  ;;  %v61_v46 = vld [vmem:[%s7154_s0 + $0x38] sm:$0xff]  ;;  %v6181_v49 = vld [vmem:[%s7158_s11 + $0x10] sm:$0xff]  ;;  %v6205_v6 = vld [vmem:[%s7158_s11] sm:$0xff]  ;;  %vm1720_vm11 = vcmp.gt.f32.partialorder %v6074_v25, 7.0  ;;  %vm1829_vm4 = vcmask 130048  }
   0xc   :  { %5395 = vmatprep.subr.bf16.mxu0 %v6058_v20  ;;  %5389 = vmatpush3.bf16.msra.mxu1 %v5386_v24  ;;  %v82_v51 = vrot.slane %v6181_v49, %v6184_v50  ;;  %v6209_v8 = vrot.slane %v6205_v6, %v6184_v50  ;;  %v6214_v9 = vld [vmem:[%s7158_s11 + $0x8] sm:$0xff]  ;;  %v6224_v23 = vrot.slane %v6205_v6, %v328_v22 }
   0xd   :  { %512 = vperm.xlu0 %5710, %v510_v29   ;;  %5102 = vmatprep.subr.mxu1 %v70_v28  ;;  %v6218_v11 = vrot.slane %v6214_v9, %v6184_v50 }
   0xe   :  { %4833 = vmatmul.mubr.msk.f32.gmra.mrb[2].mxu0 %vm83_vm0, %v55_v26 }
   0xf   :  { %184 = vmatprep.mubr.f32.mxu0 %v5923_v3  ;;  %5397 = vmatpush1.bf16.msra.mxu0 %v6081_v27 }
  0x10   :  { %5405 = vmatprep.subr.bf16.mxu0 %v6045_v15  ;;  %5103 = vmatpush3.msra.mxu1 %v70_v28 }
  0x11   :  { %685 = vperm.xlu0 %5710, %v683_v32   ;;  %5105 = vmatmul.mubr.msk.f32.vlgmr.msra.gmra.mrb[0].mxu1 %vm83_vm0, %v55_v26 }
  0x12   :  { %4834 = vmatmul.mubr.msk.f32.gmra.mrb[4].mxu0 %vm83_vm0, %v56_v33  ;;  %5398 = vmatprep.subr.bf16.mxu1 %v5925_v39 }
  0x13   :  { %190 = vmatprep.mubr.f32.mxu0 %v5923_v3  ;;  %5400 = vmatpush3.bf16.msra.mxu1 %v6104_v34 }
  0x14   :  { %5107 = vmatprep.mubr.msk.f32.mxu1 %vm83_vm0, %v56_v33  ;;  %5401 = vmatprep.subr.bf16.mxu1 %v5925_v39 }
  0x15   :  { %1204 = vperm.xlu0 %5710, %v1202_v37   ;;  %5108 = vmatmul.mubr.msk.f32.gmra.mrb[2].mxu1 %vm83_vm0, %v57_v38 }
  0x16   :  { %4835 = vmatmul.mubr.msk.f32.gmra.mrb[6].mxu0 %vm83_vm0, %v57_v38  ;;  %5110 = vmatprep.mubr.msk.f32.mxu1 %vm83_vm0, %v58_v41 }
  0x17   :  { %196 = vmatprep.mubr.f32.mxu0 %v5923_v3  ;;  %5403 = vmatpush3.bf16.msra.mxu1 %v6124_v40 }
  0x18   :  { %5412 = vmatprep.subr.bf16.mxu1 %v5925_v39 }
  0x19   :  { %1550 = vperm.xlu0 %5710, %v1548_v42   ;;  %5111 = vmatmul.mubr.msk.f32.gmra.mrb[4].mxu1 %vm83_vm0, %v59_v43 }
  0x1a   :  { %4836 = vmatmul.mubr.msk.f32.gmra.mrb[8].mxu0 %vm83_vm0, %v58_v41  ;;  %5113 = vmatprep.mubr.msk.f32.mxu1 %vm83_vm0, %v60_v44 }
  0x1b   :  { %202 = vmatprep.mubr.f32.mxu0 %v5923_v3 }
  0x1d   :  { %3880 = vperm.xlu0 %5710, %v3867_v45   ;;  %5114 = vmatmul.mubr.msk.f32.gmra.mrb[6].mxu1 %vm83_vm0, %v61_v46  ;;  %v1029_v45 = vsel %vm1028_vm9, 1, %v5924_v7 }
  0x1e   :  { %4837 = vmatmul.mubr.msk.f32.gmra.mrb[10].mxu0 %vm83_vm0, %v59_v43  ;;  %5124 = vmatprep.mubr.msk.f32.mxu1 %vm5926_vm5, %v5923_v3 }
  0x1f   :  { %208 = vmatprep.mubr.f32.mxu0 %v5923_v3 }
  0x21   :  { %5125 = vmatmul.mubr.f32.vlgmr.msra.gmra.mrb[8].mxu1 %v5923_v3 }
  0x22   :  { %4838 = vmatmul.mubr.msk.f32.gmra.mrb[12].mxu0 %vm83_vm0, %v60_v44  ;;  %5414 = vmatpush3.bf16.msra.mxu1 %v6104_v34  ;;  %v856_v44 = vsel %vm855_vm8, 1, %v5924_v7 }
  0x23   :  { %214 = vmatprep.mubr.f32.mxu0 %v5923_v3  ;;  %5415 = vmatprep.subr.bf16.mxu1 %v5925_v39 }
  0x24   :  { %5135 = vmatprep.mubr.msk.f32.mxu1 %vm5926_vm5, %v5923_v3  ;;  %858 = vperm.xlu1 %5711, %v856_v44  }
  0x26   :  { %4839 = vmatmul.mubr.msk.f32.gmra.mrb[14].mxu0 %vm83_vm0, %v61_v46  ;;  %5417 = vmatpush3.bf16.msra.mxu1 %v6124_v40  ;;  %v1375_v46 = vsel %vm1374_vm10, 1, %v5924_v7 }
  0x27   :  { %410 = vmatprep.mubr.f32.mxu0 %v5923_v3  ;;  %5426 = vmatprep.subr.bf16.mxu1 %v5925_v39 }
  0x28   :  { %1031 = vperm.xlu1 %5711, %v1029_v45  }
  0x2a   :  { %411 = vmatmul.mubr.f32.vlgmr.msra.gmra.mrb[0].mxu0 %v5923_v3 }
  0x2b   :  { %5407 = vmatpush1.bf16.msra.mxu0 %v6053_v18  ;;  %583 = vmatprep.mubr.f32.mxu0 %v5923_v3 }
  0x2c   :  { %5409 = vmatprep.subr.bf16.mxu0 %v6058_v20  ;;  %1377 = vperm.xlu1 %5711, %v1375_v46  }
  0x2f   :  { %5411 = vmatpush1.bf16.msra.mxu0 %v6081_v27 }
  0x30   :  { %5419 = vmatprep.subr.bf16.mxu0 %v6045_v15 }
  0x8c   :  { %v6227_v37 = vpop.permute.xlu0 %512 }
  0x8d   :  { %vm514_vm6 = vcmp.eq.s32.totalorder %v6227_v37, 1 }
  0xe4   :  { %v5106_v52 = vpop.f32.mrb[0].mxu1 }
  0xe5   :  { %v6188_v53 = vadd.f32 %v5106_v52, %v82_v51  ;;  %v287_v54 = vpop.f32.mrb[1].mxu1  ;;  %v3866_v52 = vld [vmem:[%s7157_s6] sm:$0xff] }
  0xe6   :  { %v288_v30 = vadd.f32 %v287_v54, %v82_v51  ;;  %v3868_v54 = vld [vmem:[%s7157_s6 + $0x10] sm:$0xff] }
  0xe8   :  { %v5109_v55 = vpop.f32.mrb[2].mxu1 }
  0xe9   :  { %v6190_v56 = vadd.f32 %v5109_v55, %v82_v51  ;;  %v297_v57 = vpop.f32.mrb[3].mxu1  ;;  %v3869_v55 = vld [vmem:[%s7157_s6 + $0x18] sm:$0xff] }
  0xea   :  { %v6192_v58 = vadd.f32 %v297_v57, %v82_v51 }
  0xec   :  { %v5112_v59 = vpop.f32.mrb[4].mxu1 }
  0xed   :  { %v6194_v60 = vadd.f32 %v5112_v59, %v82_v51  ;;  %v307_v61 = vpop.f32.mrb[5].mxu1 }
  0xee   :  { %v6196_v62 = vadd.f32 %v307_v61, %v82_v51 }
  0xf0   :  { %v5115_v63 = vpop.f32.mrb[6].mxu1 }
  0xf1   :  { %v6198_v0 = vadd.f32 %v5115_v63, %v82_v51  ;;  %v317_v1 = vpop.f32.mrb[7].mxu1 }
  0xf2   :  { %v6200_v2 = vadd.f32 %v317_v1, %v82_v51  ;;  %v1721_v51 = vsel %vm1720_vm11, 1, %v5924_v7 }
  0xf3   :  { %1723 = vperm.xlu1 %5711, %v1721_v51  }
  0xf4   :  { %v483_v4 = vpop.f32.mrb[8].mxu1 }
  0xf5   :  { %v5126_v5 = vpop.f32.mrb[9].mxu1  ;;  %v501_v28 = vadd.f32 %v483_v4, %v6224_v23 }
  0xf7   :  { %3877 = vperm.xlu1 %5711, %v3866_v52  }
  0xfb   :  { %3883 = vperm.xlu1 %5711, %v3868_v54  }
  0xfd   :  { %v412_v10 = vpop.f32.mrb[0].mxu0 }
  0xfe   :  { %v5641_v12 = vadd.f32 %v412_v10, %v6209_v8  ;;  %v414_v13 = vpop.f32.mrb[1].mxu0 }
  0xff   :  { %v5642_v16 = vadd.f32 %v414_v13, %v6218_v11  ;;  %3886 = vperm.xlu1 %5711, %v3869_v55  }
 0x100   :  { %v4848_v14 = vmul.f32 -1.442695, %v5641_v12 }
 0x101   :  { %v4849_v17 = vmul.f32 -1.442695, %v5642_v16 }
 0x102   :  { %5712 = vpow2.f32 %v4848_v14 }
 0x103   :  { %5714 = vpow2.f32 %v4849_v17 }
 0x10c   :  { %v5713_v19 = vpop.eup %5712 }
 0x10d   :  { %v491_v21 = vadd.f32 1.0, %v5713_v19  ;;  %v5715_v24 = vpop.eup %5714 }
 0x10e   :  { %v498_v26 = vadd.f32 1.0, %v5715_v24 }
 0x10f   :  { %5716 = vrcp.f32 %v491_v21 }
 0x110   :  { %5718 = vrcp.f32 %v498_v26 }
 0x119   :  { %v5717_v29 = vpop.eup %5716 }
 0x11a   :  { %v502_v31 = vmul.f32 %v5717_v29, %v501_v28  ;;  %v5719_v33 = vpop.eup %5718  ;;  %v6266_v29 = vpop.permute.xlu0 %685 }
 0x11b   :  { %v505_v35 = vsub.f32 1.0, %v5719_v33  ;;  %v507_v41 = vmul.f32 0.0, %v5719_v33  ;;  %vm687_vm12 = vcmp.eq.s32.totalorder %v6266_v29, 1 }
 0x11c   :  { %v503_v32 = vadd.f32 %v502_v31, %v288_v30 }
 0x11e   :  { %5720 = vtanh.f32 %v503_v32 }
 0x128   :  { %v5721_v36 = vpop.eup %5720 }
 0x129   :  { %v506_v38 = vmul.f32 %v5721_v36, %v505_v35 }
 0x12b   :  { %v508_v42 = vadd.f32 %v507_v41, %v506_v38 }
 0x12d   :  { %v515_v43 = vsel %vm514_vm6, %v508_v42, 0.0 }
 0x12e   :  { %4850 = vmatmul.mubr.msk.f32.vlgmr.msra.gmra.mrb[2].mxu0 %vm342_vm7, %v515_v43  ;;  %5136 = vmatmul.mubr.msk.f32.vlgmr.msra.gmra.mrb[10].mxu1 %vm342_vm7, %v515_v43 }
 0x12f   :  { %5421 = vmatpush1.bf16.msra.mxu0 %v6053_v18  ;;  %5428 = vmatpush3.bf16.msra.mxu1 %v6104_v34 }
 0x130   :  { %5423 = vmatprep.subr.bf16.mxu0 %v6058_v20  ;;  %5429 = vmatprep.subr.bf16.mxu1 %v5925_v39 }
 0x131   :  { %756 = vmatprep.mubr.f32.mxu0 %v5923_v3  ;;  %5146 = vmatprep.mubr.msk.f32.mxu1 %vm5926_vm5, %v5923_v3 }
 0x133   :  { %5425 = vmatpush1.bf16.msra.mxu0 %v6081_v27  ;;  %5431 = vmatpush3.bf16.msra.mxu1 %v6124_v40 }
 0x134   :  { %5433 = vmatprep.subr.bf16.mxu0 %v6045_v15  ;;  %5440 = vmatprep.subr.bf16.mxu1 %v5925_v39 }
 0x201   :  { %v585_v25 = vpop.f32.mrb[2].mxu0  ;;  %v656_v57 = vpop.f32.mrb[10].mxu1 }
 0x202   :  { %v5643_v7 = vadd.f32 %v585_v25, %v6209_v8  ;;  %v587_v59 = vpop.f32.mrb[3].mxu0  ;;  %v5137_v61 = vpop.f32.mrb[11].mxu1  ;;  %v674_v14 = vadd.f32 %v656_v57, %v6224_v23 }
 0x203   :  { %v5644_v1 = vadd.f32 %v587_v59, %v6218_v11  ;;  %v6288_v59 = vpop.permute.xlu1 %858 }
 0x204   :  { %v4852_v63 = vmul.f32 -1.442695, %v5643_v7  ;;  %vm860_vm13 = vcmp.eq.s32.totalorder %v6288_v59, 1 }
 0x205   :  { %v4853_v4 = vmul.f32 -1.442695, %v5644_v1 }
 0x206   :  { %5722 = vpow2.f32 %v4852_v63 }
 0x207   :  { %5724 = vpow2.f32 %v4853_v4 }
 0x210   :  { %v5723_v5 = vpop.eup %5722 }
 0x211   :  { %v664_v10 = vadd.f32 1.0, %v5723_v5  ;;  %v5725_v12 = vpop.eup %5724 }
 0x212   :  { %v671_v13 = vadd.f32 1.0, %v5725_v12 }
 0x213   :  { %5726 = vrcp.f32 %v664_v10 }
 0x214   :  { %5728 = vrcp.f32 %v671_v13 }
 0x21d   :  { %v5727_v16 = vpop.eup %5726 }
 0x21e   :  { %v675_v17 = vmul.f32 %v5727_v16, %v674_v14  ;;  %v5729_v21 = vpop.eup %5728 }
 0x21f   :  { %v678_v22 = vsub.f32 1.0, %v5729_v21  ;;  %v680_v28 = vmul.f32 %v5729_v21, %v515_v43 }
 0x220   :  { %v676_v19 = vadd.f32 %v675_v17, %v6188_v53 }
 0x222   :  { %5730 = vtanh.f32 %v676_v19 }
 0x22c   :  { %v5731_v24 = vpop.eup %5730 }
 0x22d   :  { %v679_v26 = vmul.f32 %v5731_v24, %v678_v22 }
 0x22f   :  { %v681_v30 = vadd.f32 %v680_v28, %v679_v26 }
 0x231   :  { %v688_v31 = vsel %vm687_vm12, %v681_v30, %v515_v43 }
 0x232   :  { %4854 = vmatmul.mubr.msk.f32.vlgmr.msra.gmra.mrb[4].mxu0 %vm342_vm7, %v688_v31  ;;  %5147 = vmatmul.mubr.msk.f32.vlgmr.msra.gmra.mrb[12].mxu1 %vm342_vm7, %v688_v31 }
 0x233   :  { %5435 = vmatpush1.bf16.msra.mxu0 %v6053_v18  ;;  %5442 = vmatpush3.bf16.msra.mxu1 %v6104_v34 }
 0x234   :  { %5437 = vmatprep.subr.bf16.mxu0 %v6058_v20  ;;  %5443 = vmatprep.subr.bf16.mxu1 %v5925_v39 }
 0x235   :  { %929 = vmatprep.mubr.f32.mxu0 %v5923_v3  ;;  %5157 = vmatprep.mubr.msk.f32.mxu1 %vm5926_vm5, %v5923_v3 }
 0x237   :  { %5439 = vmatpush1.bf16.msra.mxu0 %v6081_v27  ;;  %5445 = vmatpush3.bf16.msra.mxu1 %v6124_v40 }
 0x238   :  { %5447 = vmatprep.subr.bf16.mxu0 %v6045_v15  ;;  %5454 = vmatprep.subr.bf16.mxu1 %v5925_v39 }
 0x305   :  { %v758_v53 = vpop.f32.mrb[4].mxu0  ;;  %v829_v32 = vpop.f32.mrb[12].mxu1 }
 0x306   :  { %v5645_v33 = vadd.f32 %v758_v53, %v6209_v8  ;;  %v760_v35 = vpop.f32.mrb[5].mxu0  ;;  %v5148_v36 = vpop.f32.mrb[13].mxu1  ;;  %v847_v51 = vadd.f32 %v829_v32, %v6224_v23 }
 0x307   :  { %v5646_v41 = vadd.f32 %v760_v35, %v6218_v11 }
 0x308   :  { %v4856_v38 = vmul.f32 -1.442695, %v5645_v33 }
 0x309   :  { %v4857_v42 = vmul.f32 -1.442695, %v5646_v41 }
 0x30a   :  { %5732 = vpow2.f32 %v4856_v38  ;;  %v6310_v38 = vpop.permute.xlu1 %1031 }
 0x30b   :  { %5734 = vpow2.f32 %v4857_v42  ;;  %vm1033_vm14 = vcmp.eq.s32.totalorder %v6310_v38, 1 }
 0x314   :  { %v5733_v43 = vpop.eup %5732 }
 0x315   :  { %v837_v44 = vadd.f32 1.0, %v5733_v43  ;;  %v5735_v45 = vpop.eup %5734 }
 0x316   :  { %v844_v46 = vadd.f32 1.0, %v5735_v45 }
 0x317   :  { %5736 = vrcp.f32 %v837_v44 }
 0x318   :  { %5738 = vrcp.f32 %v844_v46 }
 0x321   :  { %v5737_v52 = vpop.eup %5736 }
 0x322   :  { %v848_v54 = vmul.f32 %v5737_v52, %v847_v51  ;;  %v5739_v25 = vpop.eup %5738 }
 0x323   :  { %v851_v57 = vsub.f32 1.0, %v5739_v25  ;;  %v853_v63 = vmul.f32 %v5739_v25, %v688_v31 }
 0x324   :  { %v849_v55 = vadd.f32 %v848_v54, %v6192_v58 }
 0x326   :  { %5740 = vtanh.f32 %v849_v55 }
 0x330   :  { %v5741_v7 = vpop.eup %5740 }
 0x331   :  { %v852_v61 = vmul.f32 %v5741_v7, %v851_v57 }
 0x333   :  { %v854_v1 = vadd.f32 %v853_v63, %v852_v61 }
 0x335   :  { %v861_v4 = vsel %vm860_vm13, %v854_v1, %v688_v31 }
 0x336   :  { %4858 = vmatmul.mubr.msk.f32.vlgmr.msra.gmra.mrb[6].mxu0 %vm342_vm7, %v861_v4  ;;  %5158 = vmatmul.mubr.msk.f32.vlgmr.msra.gmra.mrb[14].mxu1 %vm342_vm7, %v861_v4 }
 0x337   :  { %5449 = vmatpush1.bf16.msra.mxu0 %v6053_v18  ;;  %5456 = vmatpush3.bf16.msra.mxu1 %v6104_v34 }
 0x338   :  { %5451 = vmatprep.subr.bf16.mxu0 %v6058_v20  ;;  %5457 = vmatprep.subr.bf16.mxu1 %v5925_v39 }
 0x339   :  { %1102 = vmatprep.mubr.f32.mxu0 %v5923_v3  ;;  %5168 = vmatprep.mubr.msk.f32.mxu1 %vm5926_vm5, %v5923_v3 }
 0x33b   :  { %5453 = vmatpush1.bf16.msra.mxu0 %v6081_v27  ;;  %5459 = vmatpush3.bf16.msra.mxu1 %v6124_v40 }
 0x33c   :  { %5461 = vmatprep.subr.bf16.mxu0 %v6045_v15  ;;  %5468 = vmatprep.subr.bf16.mxu1 %v5925_v39 }
 0x409   :  { %v931_v58 = vpop.f32.mrb[6].mxu0  ;;  %v1002_v5 = vpop.f32.mrb[14].mxu1 }
 0x40a   :  { %v5647_v10 = vadd.f32 %v931_v58, %v6209_v8  ;;  %v933_v12 = vpop.f32.mrb[7].mxu0  ;;  %v5159_v13 = vpop.f32.mrb[15].mxu1  ;;  %v1020_v26 = vadd.f32 %v1002_v5, %v6224_v23 }
 0x40b   :  { %v5648_v16 = vadd.f32 %v933_v12, %v6218_v11 }
 0x40c   :  { %v4860_v14 = vmul.f32 -1.442695, %v5647_v10 }
 0x40d   :  { %v4861_v17 = vmul.f32 -1.442695, %v5648_v16 }
 0x40e   :  { %5742 = vpow2.f32 %v4860_v14  ;;  %v6332_v14 = vpop.permute.xlu0 %1204 }
 0x40f   :  { %5744 = vpow2.f32 %v4861_v17  ;;  %vm1206_vm15 = vcmp.eq.s32.totalorder %v6332_v14, 1 }
 0x418   :  { %v5743_v19 = vpop.eup %5742 }
 0x419   :  { %v1010_v21 = vadd.f32 1.0, %v5743_v19  ;;  %v5745_v22 = vpop.eup %5744 }
 0x41a   :  { %v1017_v24 = vadd.f32 1.0, %v5745_v22 }
 0x41b   :  { %5746 = vrcp.f32 %v1010_v21 }
 0x41c   :  { %5748 = vrcp.f32 %v1017_v24 }
 0x425   :  { %v5747_v28 = vpop.eup %5746 }
 0x426   :  { %v1021_v30 = vmul.f32 %v5747_v28, %v1020_v26  ;;  %v5749_v53 = vpop.eup %5748 }
 0x427   :  { %v1024_v32 = vsub.f32 1.0, %v5749_v53  ;;  %v1026_v36 = vmul.f32 %v5749_v53, %v861_v4 }
 0x428   :  { %v1022_v31 = vadd.f32 %v1021_v30, %v6190_v56 }
 0x42a   :  { %5750 = vtanh.f32 %v1022_v31 }
 0x434   :  { %v5751_v33 = vpop.eup %5750 }
 0x435   :  { %v1025_v35 = vmul.f32 %v5751_v33, %v1024_v32 }
 0x437   :  { %v1027_v41 = vadd.f32 %v1026_v36, %v1025_v35 }
 0x439   :  { %v1034_v42 = vsel %vm1033_vm14, %v1027_v41, %v861_v4 }
 0x43a   :  { %4862 = vmatmul.mubr.msk.f32.vlgmr.msra.gmra.mrb[8].mxu0 %vm342_vm7, %v1034_v42  ;;  %5169 = vmatmul.mubr.msk.f32.vlgmr.msra.gmra.mrb[16].mxu1 %vm342_vm7, %v1034_v42 }
 0x43b   :  { %5463 = vmatpush1.bf16.msra.mxu0 %v6053_v18  ;;  %5470 = vmatpush3.bf16.msra.mxu1 %v6104_v34 }
 0x43c   :  { %5465 = vmatprep.subr.bf16.mxu0 %v6058_v20  ;;  %5471 = vmatprep.subr.bf16.mxu1 %v5925_v39 }
 0x43d   :  { %1275 = vmatprep.mubr.f32.mxu0 %v5923_v3  ;;  %5179 = vmatprep.mubr.msk.f32.mxu1 %vm5926_vm5, %v5923_v3 }
 0x43f   :  { %5467 = vmatpush1.bf16.msra.mxu0 %v6081_v27  ;;  %5473 = vmatpush3.bf16.msra.mxu1 %v6124_v40 }
 0x440   :  { %5475 = vmatprep.subr.bf16.mxu0 %v6045_v15  ;;  %5482 = vmatprep.subr.bf16.mxu1 %v5925_v39 }
 0x50d   :  { %v1104_v56 = vpop.f32.mrb[8].mxu0  ;;  %v1175_v43 = vpop.f32.mrb[16].mxu1 }
 0x50e   :  { %v5649_v44 = vadd.f32 %v1104_v56, %v6209_v8  ;;  %v1106_v45 = vpop.f32.mrb[9].mxu0  ;;  %v5170_v46 = vpop.f32.mrb[17].mxu1  ;;  %v1193_v61 = vadd.f32 %v1175_v43, %v6224_v23 }
 0x50f   :  { %v5650_v52 = vadd.f32 %v1106_v45, %v6218_v11  ;;  %v6354_v46 = vpop.permute.xlu1 %1377 }
 0x510   :  { %v4864_v51 = vmul.f32 -1.442695, %v5649_v44  ;;  %vm1379_vm1 = vcmp.eq.s32.totalorder %v6354_v46, 1  ;;  %v3633_v46 = vld [vmem:[%s7165_s14] sm:$0xff] }
 0x511   :  { %v4865_v54 = vmul.f32 -1.442695, %v5650_v52 }
 0x512   :  { %5752 = vpow2.f32 %v4864_v51 }
 0x513   :  { %5754 = vpow2.f32 %v4865_v54 }
 0x51c   :  { %v5753_v55 = vpop.eup %5752 }
 0x51d   :  { %v1183_v25 = vadd.f32 1.0, %v5753_v55  ;;  %v5755_v57 = vpop.eup %5754 }
 0x51e   :  { %v1190_v7 = vadd.f32 1.0, %v5755_v57 }
 0x51f   :  { %5756 = vrcp.f32 %v1183_v25 }
 0x520   :  { %5758 = vrcp.f32 %v1190_v7 }
 0x529   :  { %v5757_v63 = vpop.eup %5756 }
 0x52a   :  { %v1194_v1 = vmul.f32 %v5757_v63, %v1193_v61  ;;  %v5759_v58 = vpop.eup %5758 }
 0x52b   :  { %v1197_v5 = vsub.f32 1.0, %v5759_v58  ;;  %v1199_v13 = vmul.f32 %v5759_v58, %v1034_v42 }
 0x52c   :  { %v1195_v4 = vadd.f32 %v1194_v1, %v6196_v62 }
 0x52e   :  { %5760 = vtanh.f32 %v1195_v4 }
 0x538   :  { %v5761_v10 = vpop.eup %5760 }
 0x539   :  { %v1198_v12 = vmul.f32 %v5761_v10, %v1197_v5 }
 0x53b   :  { %v1200_v16 = vadd.f32 %v1199_v13, %v1198_v12 }
 0x53d   :  { %v1207_v17 = vsel %vm1206_vm15, %v1200_v16, %v1034_v42 }
 0x53e   :  { %4866 = vmatmul.mubr.msk.f32.vlgmr.msra.gmra.mrb[10].mxu0 %vm342_vm7, %v1207_v17  ;;  %5180 = vmatmul.mubr.msk.f32.vlgmr.msra.gmra.mrb[18].mxu1 %vm342_vm7, %v1207_v17 }
 0x53f   :  { %5477 = vmatpush1.bf16.msra.mxu0 %v6053_v18  ;;  %5484 = vmatpush3.bf16.msra.mxu1 %v6104_v34 }
 0x540   :  { %5479 = vmatprep.subr.bf16.mxu0 %v6058_v20  ;;  %5485 = vmatprep.subr.bf16.mxu1 %v5925_v39 }
 0x541   :  { %1448 = vmatprep.mubr.f32.mxu0 %v5923_v3  ;;  %5190 = vmatprep.mubr.msk.f32.mxu1 %vm5926_vm5, %v5923_v3 }
 0x543   :  { %5481 = vmatpush1.bf16.msra.mxu0 %v6081_v27  ;;  %5487 = vmatpush3.bf16.msra.mxu1 %v6124_v40 }
 0x544   :  { %5489 = vmatprep.subr.bf16.mxu0 %v6045_v15  ;;  %5496 = vmatprep.subr.bf16.mxu1 %v5925_v39 }
 0x611   :  { %v1277_v62 = vpop.f32.mrb[10].mxu0  ;;  %v1348_v19 = vpop.f32.mrb[18].mxu1 }
 0x612   :  { %v5651_v21 = vadd.f32 %v1277_v62, %v6209_v8  ;;  %v1279_v22 = vpop.f32.mrb[11].mxu0  ;;  %v5181_v24 = vpop.f32.mrb[19].mxu1  ;;  %v1366_v15 = vadd.f32 %v1348_v19, %v6224_v23 }
 0x613   :  { %v5652_v28 = vadd.f32 %v1279_v22, %v6218_v11  ;;  %v1727_v22 = vld [vmem:[%s7159_s12] sm:$0xff] }
 0x614   :  { %v4868_v26 = vmul.f32 -1.442695, %v5651_v21  ;;  %v1730_v21 = vld [vmem:[%s7159_s12 + $0x18] sm:$0xff] }
 0x615   :  { %v4869_v30 = vmul.f32 -1.442695, %v5652_v28  ;;  %v1732_v28 = vld [vmem:[%s7159_s12 + $0x28] sm:$0xff] }
 0x616   :  { %5762 = vpow2.f32 %v4868_v26  ;;  %v1729_v26 = vld [vmem:[%s7159_s12 + $0x10] sm:$0xff] }
 0x617   :  { %5764 = vpow2.f32 %v4869_v30  ;;  %v1734_v30 = vld [vmem:[%s7159_s12 + $0x38] sm:$0xff] }
 0x620   :  { %v5763_v31 = vpop.eup %5762 }
 0x621   :  { %v1356_v53 = vadd.f32 1.0, %v5763_v31  ;;  %v5765_v32 = vpop.eup %5764  ;;  %v5504_v31 = vpack.c.bf16 %v1729_v26, %v1727_v22  ;;  %v6479_v22 = vld [vmem:[%s7162_s1 + $0x28] sm:$0xff] }
 0x622   :  { %v1363_v33 = vadd.f32 1.0, %v5765_v32  ;;  %v1731_v32 = vld [vmem:[%s7159_s12 + $0x20] sm:$0xff]  ;;  %v2183_v26 = vld [vmem:[%s7163_s10 + $0x28] sm:$0xff] }
 0x623   :  { %5766 = vrcp.f32 %v1356_v53  ;;  %v5506_v53 = vpack.c.bf16 %v1734_v30, %v1732_v28  ;;  %v6490_v28 = vld [vmem:[%s7162_s1 + $0x30] sm:$0xff] }
 0x624   :  { %5768 = vrcp.f32 %v1363_v33  ;;  %v1733_v33 = vld [vmem:[%s7159_s12 + $0x30] sm:$0xff] }
 0x62d   :  { %v5767_v35 = vpop.eup %5766 }
 0x62e   :  { %v1367_v36 = vmul.f32 %v5767_v35, %v1366_v15  ;;  %v5769_v42 = vpop.eup %5768  ;;  %v5508_v15 = vpack.c.bf16 %v1733_v33, %v1731_v32 }
 0x62f   :  { %v1370_v56 = vsub.f32 1.0, %v5769_v42  ;;  %v1372_v45 = vmul.f32 %v5769_v42, %v1207_v17 }
 0x630   :  { %v1368_v41 = vadd.f32 %v1367_v36, %v6194_v60 }
 0x632   :  { %5770 = vtanh.f32 %v1368_v41 }
 0x63c   :  { %v5771_v43 = vpop.eup %5770 }
 0x63d   :  { %v1371_v44 = vmul.f32 %v5771_v43, %v1370_v56 }
 0x63f   :  { %v1373_v51 = vadd.f32 %v1372_v45, %v1371_v44 }
 0x641   :  { %v1380_v52 = vsel %vm1379_vm1, %v1373_v51, %v1207_v17  ;;  %v6374_v17 = vpop.permute.xlu0 %1550 }
 0x642   :  { %4870 = vmatmul.mubr.msk.f32.vlgmr.msra.gmra.mrb[12].mxu0 %vm342_vm7, %v1380_v52  ;;  %5191 = vmatmul.mubr.msk.f32.vlgmr.msra.gmra.mrb[20].mxu1 %vm342_vm7, %v1380_v52  ;;  %vm1552_vm2 = vcmp.eq.s32.totalorder %v6374_v17, 1 }
 0x643   :  { %5491 = vmatpush1.bf16.msra.mxu0 %v6053_v18  ;;  %5498 = vmatpush3.bf16.msra.mxu1 %v6104_v34 }
 0x644   :  { %5493 = vmatprep.subr.bf16.mxu0 %v6058_v20  ;;  %5499 = vmatprep.subr.bf16.mxu1 %v5925_v39 }
 0x645   :  { %1621 = vmatprep.mubr.f32.mxu0 %v5923_v3  ;;  %5201 = vmatprep.mubr.msk.f32.mxu1 %vm5926_vm5, %v5923_v3 }
 0x647   :  { %5495 = vmatpush1.bf16.msra.mxu0 %v6081_v27  ;;  %5501 = vmatpush3.bf16.msra.mxu1 %v6124_v40 }
 0x715   :  { %v1450_v60 = vpop.f32.mrb[12].mxu0  ;;  %v1521_v54 = vpop.f32.mrb[20].mxu1 }
 0x716   :  { %v5653_v55 = vadd.f32 %v1450_v60, %v6209_v8  ;;  %v1452_v18 = vpop.f32.mrb[13].mxu0  ;;  %v5192_v25 = vpop.f32.mrb[21].mxu1  ;;  %v1539_v27 = vadd.f32 %v1521_v54, %v6224_v23 }
 0x717   :  { %v5654_v20 = vadd.f32 %v1452_v18, %v6218_v11 }
 0x718   :  { %v4872_v34 = vmul.f32 -1.442695, %v5653_v55 }
 0x719   :  { %v4873_v57 = vmul.f32 -1.442695, %v5654_v20 }
 0x71a   :  { %5772 = vpow2.f32 %v4872_v34 }
 0x71b   :  { %5774 = vpow2.f32 %v4873_v57 }
 0x724   :  { %v5773_v7 = vpop.eup %5772 }
 0x725   :  { %v1529_v61 = vadd.f32 1.0, %v5773_v7  ;;  %v5775_v63 = vpop.eup %5774 }
 0x726   :  { %v1536_v1 = vadd.f32 1.0, %v5775_v63 }
 0x727   :  { %5776 = vrcp.f32 %v1529_v61  ;;  %v6411_v61 = vpop.permute.xlu1 %1723 }
 0x728   :  { %5778 = vrcp.f32 %v1536_v1  ;;  %vm1725_vm3 = vcmp.eq.s32.totalorder %v6411_v61, 1 }
 0x731   :  { %v5777_v40 = vpop.eup %5776 }
 0x732   :  { %v1540_v4 = vmul.f32 %v5777_v40, %v1539_v27  ;;  %v5779_v5 = vpop.eup %5778  ;;  %v1912_v40 = vld [vmem:[%s7161_s9 + $0x8] sm:$0xff] }
 0x733   :  { %v1543_v10 = vsub.f32 1.0, %v5779_v5  ;;  %v1545_v16 = vmul.f32 %v5779_v5, %v1380_v52  ;;  %v6434_v5 = vld [vmem:[%s7162_s1] sm:$0xff] }
 0x734   :  { %v1541_v58 = vadd.f32 %v1540_v4, %v6200_v2  ;;  %v1728_v2 = vld [vmem:[%s7159_s12 + $0x8] sm:$0xff]  ;;  %v1915_v4 = vld [vmem:[%s7161_s9 + $0x20] sm:$0xff] }
 0x735   :  { %v5502_v24 = vpack.c.bf16 %v1730_v21, %v1728_v2  ;;  %v6465_v2 = vld [vmem:[%s7162_s1 + $0x18] sm:$0xff]  ;;  %v6470_v21 = vld [vmem:[%s7162_s1 + $0x20] sm:$0xff] }
 0x736   :  { %5780 = vtanh.f32 %v1541_v58  ;;  %v5513_v58 = vpack.c.bf16 %v1915_v4, %v1912_v40  ;;  %v2186_v40 = vld [vmem:[%s7163_s10 + $0x40] sm:$0xff]  ;;  %v2189_v4 = vld [vmem:[%s7163_s10 + $0x58] sm:$0xff] }
 0x737   :  { %5503 = vmatprep.subr.bf16.mxu1 %v5502_v24  ;;  %v2180_v24 = vld [vmem:[%s7163_s10 + $0x10] sm:$0xff] }
 0x738   :  { %v6494_v30 = vpack.c.bf16 %v2183_v26, %v2180_v24 }
 0x740   :  { %v5781_v12 = vpop.eup %5780 }
 0x741   :  { %v1544_v13 = vmul.f32 %v5781_v12, %v1543_v10  ;;  %v1913_v10 = vld [vmem:[%s7161_s9 + $0x10] sm:$0xff]  ;;  %v1916_v12 = vld [vmem:[%s7161_s9 + $0x28] sm:$0xff] }
 0x743   :  { %v1546_v62 = vadd.f32 %v1545_v16, %v1544_v13  ;;  %v5517_v13 = vpack.c.bf16 %v1916_v12, %v1913_v10  ;;  %v1919_v16 = vld [vmem:[%s7161_s9 + $0x40] sm:$0xff] }
 0x745   :  { %v1553_v19 = vsel %vm1552_vm2, %v1546_v62, %v1380_v52  ;;  %5518 = vmatprep.subr.bf16.mxu0 %v5517_v13  ;;  %v6450_v62 = vld [vmem:[%s7162_s1 + $0x8] sm:$0xff] }
 0x746   :  { %4874 = vmatmul.mubr.msk.f32.vlgmr.msra.gmra.mrb[14].mxu0 %vm342_vm7, %v1553_v19  ;;  %5202 = vmatmul.mubr.msk.f32.vlgmr.msra.gmra.mrb[22].mxu1 %vm342_vm7, %v1553_v19 }
 0x747   :  { %1810 = vmatprep.mubr.f32.mxu1 %v5923_v3  ;;  %5505 = vmatpush1.bf16.msra.mxu1 %v5504_v31  ;;  %v1910_v31 = vld [vmem:[%s7162_s1 + $0x38] sm:$0xff] }
 0x748   :  { %5507 = vmatprep.subr.bf16.mxu1 %v5506_v53  ;;  %5217 = vmatprep.mubr.msk.f32.mxu0 %vm83_vm0, %v6434_v5  ;;  %v1737_v53 = vsub.s32 4, %v6176_v48 }
 0x749   :  { %5520 = vmatpush3.bf16.msra.mxu0 %v5517_v13 }
 0x74a   :  { %5215 = vmatprep.subr.mxu0 %v1919_v16  ;;  %v1742_v32 = vrot.slane %v6214_v9, %v1737_v53 }
 0x74b   :  { %5509 = vmatpush1.bf16.msra.mxu1 %v5508_v15 }
 0x74c   :  { %5510 = vmatprep.subr.bf16.mxu1 %v5925_v39 }
 0x74d   :  { %5216 = vmatpush3.msra.mxu0 %v1919_v16 }
 0x74e   :  { %5218 = vmatmul.mubr.msk.f32.vlgmr.msra.gmra.mrb[16].mxu0 %vm83_vm0, %v6450_v62  ;;  %5529 = vmatprep.subr.bf16.mxu0 %v5925_v39 }
 0x74f   :  { %5531 = vmatpush3.bf16.msra.mxu0 %v6494_v30 }
 0x750   :  { %5532 = vmatprep.subr.bf16.mxu0 %v5925_v39 }
 0x819   :  { %v1623_v35 = vpop.f32.mrb[14].mxu0  ;;  %v1694_v36 = vpop.f32.mrb[22].mxu1 }
 0x81a   :  { %v5655_v41 = vadd.f32 %v1623_v35, %v6209_v8  ;;  %v1625_v42 = vpop.f32.mrb[15].mxu0  ;;  %v5203_v56 = vpop.f32.mrb[23].mxu1  ;;  %v1712_v55 = vadd.f32 %v1694_v36, %v6224_v23  ;;  %v1824_v23 = vld [vmem:[%s7160_s13 + $0x8] sm:$0xff] }
 0x81b   :  { %v5656_v44 = vadd.f32 %v1625_v42, %v6218_v11  ;;  %v1738_v42 = vrot.slane %v6205_v6, %v1737_v53  ;;  %v1817_v56 = vld [vmem:[%s7164_s3] sm:$0xff] }
 0x81c   :  { %v4876_v43 = vmul.f32 -1.442695, %v5655_v41 }
 0x81d   :  { %v4877_v45 = vmul.f32 -1.442695, %v5656_v44  ;;  %v1914_v44 = vld [vmem:[%s7161_s9 + $0x18] sm:$0xff] }
 0x81e   :  { %5782 = vpow2.f32 %v4876_v43  ;;  %v1911_v43 = vld [vmem:[%s7161_s9] sm:$0xff] }
 0x81f   :  { %5784 = vpow2.f32 %v4877_v45 }
 0x821   :  { %v5219_v12 = vpop.f32.mrb[16].mxu0 }
 0x822   :  { %v2135_v16 = vpop.f32.mrb[17].mxu0 }
 0x828   :  { %v5783_v51 = vpop.eup %5782 }
 0x829   :  { %v1702_v52 = vadd.f32 1.0, %v5783_v51  ;;  %v5785_v60 = vpop.eup %5784 }
 0x82a   :  { %v1709_v54 = vadd.f32 1.0, %v5785_v60  ;;  %v5515_v60 = vpack.c.bf16 %v1914_v44, %v1911_v43 }
 0x82b   :  { %5786 = vrcp.f32 %v1702_v52 }
 0x82c   :  { %5788 = vrcp.f32 %v1709_v54 }
 0x835   :  { %v5787_v18 = vpop.eup %5786 }
 0x836   :  { %v1713_v25 = vmul.f32 %v5787_v18, %v1712_v55  ;;  %v5789_v34 = vpop.eup %5788  ;;  %v1918_v55 = vld [vmem:[%s7161_s9 + $0x38] sm:$0xff]  ;;  %v2179_v18 = vld [vmem:[%s7163_s10 + $0x8] sm:$0xff] }
 0x837   :  { %v1716_v20 = vsub.f32 1.0, %v5789_v34  ;;  %v1718_v7 = vmul.f32 %v5789_v34, %v1553_v19  ;;  %v2181_v34 = vld [vmem:[%s7163_s10 + $0x18] sm:$0xff] }
 0x838   :  { %v1714_v8 = vadd.f32 %v1713_v25, %v6198_v0  ;;  %v1823_v0 = vld [vmem:[%s7160_s13] sm:$0xff] }
 0x839   :  { %v5511_v27 = vpack.c.bf16 %v1824_v23, %v1823_v0  ;;  %v2182_v25 = vld [vmem:[%s7163_s10 + $0x20] sm:$0xff]  ;;  %v2184_v0 = vld [vmem:[%s7163_s10 + $0x30] sm:$0xff]  ;;  %v2187_v23 = vld [vmem:[%s7163_s10 + $0x48] sm:$0xff] }
 0x83a   :  { %5790 = vtanh.f32 %v1714_v8  ;;  %v2178_v8 = vld [vmem:[%s7163_s10] sm:$0xff] }
 0x844   :  { %v5791_v57 = vpop.eup %5790 }
 0x845   :  { %v1717_v11 = vmul.f32 %v5791_v57, %v1716_v20  ;;  %v2185_v20 = vld [vmem:[%s7163_s10 + $0x38] sm:$0xff]  ;;  %v2188_v57 = vld [vmem:[%s7163_s10 + $0x50] sm:$0xff] }
 0x847   :  { %v1719_v63 = vadd.f32 %v1718_v7, %v1717_v11  ;;  %v1917_v11 = vld [vmem:[%s7161_s9 + $0x30] sm:$0xff]  ;;  %v6553_v7 = vpack.c.bf16 %v2182_v25, %v2179_v18 }
 0x849   :  { %v1726_v1 = vsel %vm1725_vm3, %v1719_v63, %v1553_v19  ;;  %v6455_v19 = vld [vmem:[%s7162_s1 + $0x10] sm:$0xff]  ;;  %v6555_v63 = vpack.c.bf16 %v2181_v34, %v2178_v8 }
 0x84a   :  { %4878 = vmatmul.mubr.msk.f32.vlgmr.msra.gmra.mrb[24].mxu1 %vm342_vm7, %v1726_v1  ;;  %5220 = vmatprep.mubr.msk.f32.mxu0 %vm83_vm0, %v6455_v19  ;;  %v6557_v1 = vpack.c.bf16 %v2188_v57, %v2185_v20 }
 0x84b   :  { %5208 = vmatprep.mubr.msk.f32.mxu1 %vm5926_vm5, %v5923_v3  ;;  %5512 = vmatpush3.bf16.msra.mxu1 %v5511_v27  ;;  %v6570_v27 = vpack.c.bf16 %v2187_v23, %v2184_v0 }
 0x84c   :  { %5514 = vmatprep.subr.bf16.mxu1 %v5513_v58  ;;  %5221 = vmatmul.mubr.msk.f32.gmra.mrb[18].mxu0 %vm83_vm0, %v6465_v2  ;;  %v6601_v58 = vpack.c.bf16 %v2189_v4, %v2186_v40 }
 0x84d   :  { %5223 = vmatprep.mubr.msk.f32.mxu0 %vm83_vm0, %v6470_v21 }
 0x84e   :  { %5534 = vmatpush3.bf16.msra.mxu0 %v6601_v58 }
 0x84f   :  { %5543 = vmatprep.subr.bf16.mxu0 %v5925_v39 }
 0x850   :  { %5224 = vmatmul.mubr.msk.f32.gmra.mrb[20].mxu0 %vm83_vm0, %v6479_v22 }
 0x851   :  { %5226 = vmatprep.mubr.msk.f32.mxu0 %vm83_vm0, %v6490_v28 }
 0x854   :  { %5227 = vmatmul.mubr.msk.f32.gmra.mrb[22].mxu0 %vm83_vm0, %v1910_v31 }
 0x855   :  { %5237 = vmatprep.mubr.msk.f32.mxu0 %vm5926_vm5, %v5923_v3 }
 0x91d   :  { %v1812_v33 = vpop.f32.mrb[24].mxu1 }
 0x91e   :  { %v1814_v15 = vpop.f32.mrb[25].mxu1  ;;  %v6521_v51 = vadd.f32 %v1812_v33, %v1738_v42  ;;  %v1827_v33 = vsub.s32 5, %v6176_v48 }
 0x91f   :  { %v6508_v35 = vadd.f32 %v1814_v15, %v1742_v32 }
 0x920   :  { %v1828_v15 = vrot.slane %v6205_v6, %v1827_v33 }
 0x921   :  { %v1818_v36 = vmul.f32 0.5, %v6508_v35 }
 0x923   :  { %v1819_v41 = vmul.f32 1.442695, %v1818_v36 }
 0x925   :  { %5792 = vpow2.f32 %v1819_v41 }
 0x92f   :  { %v5793_v45 = vpop.eup %5792 }
 0x930   :  { %v1821_v52 = vmul.f32 %v5793_v45, %v1817_v56 }
 0x932   :  { %v6524_v54 = vadd.f32 %v1821_v52, %v6521_v51 }
 0x934   :  { %5209 = vmatmul.mubr.msk.f32.vlgmr.msra.gmra.mrb[26].mxu1 %vm1829_vm4, %v6524_v54  ;;  %v6816_v17 = vmul.f32 %v6524_v54, %v6524_v54 }
 0x935   :  { %5516 = vmatpush1.bf16.msra.mxu1 %v5515_v60  ;;  %2020 = vmatprep.mubr.f32.mxu1 %v5923_v3 }
 0x936   :  { %1960 = vmatprep.subr.mxu1 %v1918_v55 }
 0x939   :  { %1961 = vmatpush1.msra.mxu1 %v1917_v11 }
 0x93a   :  { %4880 = vmatmul.mubr.msk.f32.vlgmr.msra.gmra.mrb[28].mxu1 %vm83_vm0, %v6434_v5  ;;  %5522 = vmatprep.subr.bf16.mxu1 %v6553_v7  ;;  %v1922_v5 = vsub.s32 2, %v6176_v48 }
 0x93b   :  { %5524 = vmatpush1.bf16.msra.mxu1 %v6555_v63  ;;  %2026 = vmatprep.mubr.f32.mxu1 %v5923_v3 }
 0x93c   :  { %5526 = vmatprep.subr.bf16.mxu1 %v6557_v1  ;;  %v1931_v10 = vrot.slane %v6181_v49, %v1922_v5  ;;  %v6637_v56 = vrot.slane %v6205_v6, %v1922_v5  ;;  %v6640_v45 = vrot.slane %v6214_v9, %v1922_v5  ;;  %v2176_v6 = vsub.s32 3, %v6176_v48  ;;  %v6648_v9 = vld [vmem:[%s7158_s11] sm:$0xff] }
 0x93e   :  { %4881 = vmatmul.mubr.msk.f32.gmra.mrb[30].mxu1 %vm83_vm0, %v6450_v62  ;;  %v6607_v13 = vadd.f32 %v5219_v12, %v1931_v10  ;;  %v5222_v62 = vpop.f32.mrb[18].mxu0  ;;  %v6651_v11 = vrot.slane %v6648_v9, %v2176_v6  ;;  %v2136_v4 = vadd.f32 %v2135_v16, %v1931_v10 }
 0x93f   :  { %2032 = vmatprep.mubr.f32.mxu1 %v5923_v3  ;;  %5528 = vmatpush1.bf16.msra.mxu1 %v6570_v27 }
 0x940   :  { %5536 = vmatprep.subr.bf16.mxu1 %v6553_v7 }
 0x942   :  { %4882 = vmatmul.mubr.msk.f32.gmra.mrb[32].mxu1 %vm83_vm0, %v6455_v19  ;;  %v6609_v19 = vadd.f32 %v5222_v62, %v1931_v10 }
 0x943   :  { %2038 = vmatprep.mubr.f32.mxu1 %v5923_v3 }
 0x946   :  { %4883 = vmatmul.mubr.msk.f32.gmra.mrb[34].mxu1 %vm83_vm0, %v6465_v2  ;;  %v2145_v2 = vpop.f32.mrb[19].mxu0 }
 0x947   :  { %2044 = vmatprep.mubr.f32.mxu1 %v5923_v3 }
 0x94a   :  { %4884 = vmatmul.mubr.msk.f32.gmra.mrb[36].mxu1 %vm83_vm0, %v6470_v21  ;;  %v6611_v21 = vadd.f32 %v2145_v2, %v1931_v10 }
 0x94b   :  { %2050 = vmatprep.mubr.f32.mxu1 %v5923_v3 }
 0x94e   :  { %4885 = vmatmul.mubr.msk.f32.gmra.mrb[38].mxu1 %vm83_vm0, %v6479_v22  ;;  %v5225_v22 = vpop.f32.mrb[20].mxu0 }
 0x94f   :  { %2056 = vmatprep.mubr.f32.mxu1 %v5923_v3  ;;  %v6613_v24 = vadd.f32 %v5225_v22, %v1931_v10  ;;  %v2155_v26 = vpop.f32.mrb[21].mxu0 }
 0x952   :  { %4886 = vmatmul.mubr.msk.f32.gmra.mrb[40].mxu1 %vm83_vm0, %v6490_v28  ;;  %v6615_v28 = vadd.f32 %v2155_v26, %v1931_v10 }
 0x953   :  { %2062 = vmatprep.mubr.f32.mxu1 %v5923_v3 }
 0x956   :  { %4887 = vmatmul.mubr.msk.f32.gmra.mrb[42].mxu1 %vm83_vm0, %v1910_v31  ;;  %v5228_v31 = vpop.f32.mrb[22].mxu0 }
 0x957   :  { %2257 = vmatprep.mubr.f32.mxu1 %v5923_v3  ;;  %v6617_v53 = vadd.f32 %v5228_v31, %v1931_v10  ;;  %v2165_v49 = vpop.f32.mrb[23].mxu0 }
 0x958   :  { %v6619_v32 = vadd.f32 %v2165_v49, %v1931_v10 }
 0xa07   :  { %v1899_v36 = vpop.f32.mrb[26].mxu1 }
 0xa08   :  { %v1900_v41 = vadd.f32 %v1899_v36, %v1828_v15  ;;  %v5210_v42 = vpop.f32.mrb[27].mxu1 }
 0xa0a   :  { %4896 = vmatmul.mubr.msk.f32.vlgmr.msra.gmra.mrb[28].mxu1 %vm342_vm7, %v1900_v41  ;;  %5238 = vmatmul.mubr.msk.f32.vlgmr.msra.gmra.mrb[24].mxu0 %vm342_vm7, %v1900_v41 }
 0xa0b   :  { %5538 = vmatpush1.bf16.msra.mxu1 %v6555_v63  ;;  %5545 = vmatpush3.bf16.msra.mxu0 %v6494_v30 }
 0xa0c   :  { %5540 = vmatprep.subr.bf16.mxu1 %v6557_v1  ;;  %5546 = vmatprep.subr.bf16.mxu0 %v5925_v39 }
 0xa0d   :  { %2438 = vmatprep.mubr.f32.mxu1 %v5923_v3  ;;  %5248 = vmatprep.mubr.msk.f32.mxu0 %vm5926_vm5, %v5923_v3 }
 0xa0f   :  { %5542 = vmatpush1.bf16.msra.mxu1 %v6570_v27  ;;  %5548 = vmatpush3.bf16.msra.mxu0 %v6601_v58 }
 0xa10   :  { %5550 = vmatprep.subr.bf16.mxu1 %v6553_v7  ;;  %5557 = vmatprep.subr.bf16.mxu0 %v5925_v39 }
 0xadd   :  { %v2259_v43 = vpop.f32.mrb[28].mxu1  ;;  %v2330_v44 = vpop.f32.mrb[24].mxu0 }
 0xade   :  { %v5657_v52 = vadd.f32 %v2259_v43, %v6637_v56  ;;  %v2261_v60 = vpop.f32.mrb[29].mxu1  ;;  %v5239_v55 = vpop.f32.mrb[25].mxu0  ;;  %v2348_v23 = vadd.f32 %v2330_v44, %v6651_v11 }
 0xadf   :  { %v5658_v25 = vadd.f32 %v2261_v60, %v6640_v45 }
 0xae0   :  { %v4898_v18 = vmul.f32 -1.442695, %v5657_v52 }
 0xae1   :  { %v4899_v8 = vmul.f32 -1.442695, %v5658_v25 }
 0xae2   :  { %5794 = vpow2.f32 %v4898_v18 }
 0xae3   :  { %5796 = vpow2.f32 %v4899_v8 }
 0xaec   :  { %v5795_v34 = vpop.eup %5794 }
 0xaed   :  { %v2338_v20 = vadd.f32 1.0, %v5795_v34  ;;  %v5797_v57 = vpop.eup %5796 }
 0xaee   :  { %v2345_v0 = vadd.f32 1.0, %v5797_v57 }
 0xaef   :  { %5798 = vrcp.f32 %v2338_v20 }
 0xaf0   :  { %5800 = vrcp.f32 %v2345_v0 }
 0xaf9   :  { %v5799_v40 = vpop.eup %5798 }
 0xafa   :  { %v2349_v5 = vmul.f32 %v5799_v40, %v2348_v23  ;;  %v5801_v62 = vpop.eup %5800 }
 0xafb   :  { %v2352_v2 = vsub.f32 1.0, %v5801_v62  ;;  %v2354_v31 = vmul.f32 %v5801_v62, %v1900_v41 }
 0xafc   :  { %v2350_v12 = vadd.f32 %v2349_v5, %v2136_v4 }
 0xafe   :  { %5802 = vtanh.f32 %v2350_v12 }
 0xb08   :  { %v5803_v22 = vpop.eup %5802 }
 0xb09   :  { %v2353_v26 = vmul.f32 %v5803_v22, %v2352_v2 }
 0xb0b   :  { %v2355_v49 = vadd.f32 %v2354_v31, %v2353_v26 }
 0xb0d   :  { %v2356_v33 = vsel %vm514_vm6, %v2355_v49, %v1900_v41  ;;  %v2357_v15 = vsel %vm514_vm6, %v2355_v49, 0.0  ;;  %vm4359_vm6 = vcmask 64512  }
 0xb0e   :  { %2358 = vst.msk [vmem:[#allocation2] sm:$0xff] %vm342_vm7, %v2357_v15  ;;  %4900 = vmatmul.mubr.msk.f32.vlgmr.msra.gmra.mrb[30].mxu1 %vm342_vm7, %v2356_v33  ;;  %5249 = vmatmul.mubr.msk.f32.vlgmr.msra.gmra.mrb[26].mxu0 %vm342_vm7, %v2356_v33 }
 0xb0f   :  { %5552 = vmatpush1.bf16.msra.mxu1 %v6555_v63  ;;  %5559 = vmatpush3.bf16.msra.mxu0 %v6494_v30 }
 0xb10   :  { %5554 = vmatprep.subr.bf16.mxu1 %v6557_v1  ;;  %5560 = vmatprep.subr.bf16.mxu0 %v5925_v39 }
 0xb11   :  { %2619 = vmatprep.mubr.f32.mxu1 %v5923_v3  ;;  %5259 = vmatprep.mubr.msk.f32.mxu0 %vm5926_vm5, %v5923_v3 }
 0xb13   :  { %5556 = vmatpush1.bf16.msra.mxu1 %v6570_v27  ;;  %5562 = vmatpush3.bf16.msra.mxu0 %v6601_v58 }
 0xb14   :  { %5564 = vmatprep.subr.bf16.mxu1 %v6553_v7  ;;  %5571 = vmatprep.subr.bf16.mxu0 %v5925_v39 }
 0xbe1   :  { %v2440_v37 = vpop.f32.mrb[30].mxu1  ;;  %v2511_v10 = vpop.f32.mrb[26].mxu0 }
 0xbe2   :  { %v5659_v16 = vadd.f32 %v2440_v37, %v6637_v56  ;;  %v2442_v36 = vpop.f32.mrb[31].mxu1  ;;  %v5250_v41 = vpop.f32.mrb[27].mxu0  ;;  %v2529_v25 = vadd.f32 %v2511_v10, %v6651_v11 }
 0xbe3   :  { %v5660_v43 = vadd.f32 %v2442_v36, %v6640_v45 }
 0xbe4   :  { %v4902_v42 = vmul.f32 -1.442695, %v5659_v16 }
 0xbe5   :  { %v4903_v44 = vmul.f32 -1.442695, %v5660_v43 }
 0xbe6   :  { %5804 = vpow2.f32 %v4902_v42 }
 0xbe7   :  { %5806 = vpow2.f32 %v4903_v44 }
 0xbf0   :  { %v5805_v52 = vpop.eup %5804 }
 0xbf1   :  { %v2519_v60 = vadd.f32 1.0, %v5805_v52  ;;  %v5807_v55 = vpop.eup %5806 }
 0xbf2   :  { %v2526_v18 = vadd.f32 1.0, %v5807_v55 }
 0xbf3   :  { %5808 = vrcp.f32 %v2519_v60 }
 0xbf4   :  { %5810 = vrcp.f32 %v2526_v18 }
 0xbfd   :  { %v5809_v8 = vpop.eup %5808 }
 0xbfe   :  { %v2530_v34 = vmul.f32 %v5809_v8, %v2529_v25  ;;  %v5811_v6 = vpop.eup %5810 }
 0xbff   :  { %v2533_v57 = vsub.f32 1.0, %v5811_v6  ;;  %v2535_v40 = vmul.f32 %v5811_v6, %v2356_v33 }
 0xc00   :  { %v2531_v20 = vadd.f32 %v2530_v34, %v6607_v13 }
 0xc02   :  { %5812 = vtanh.f32 %v2531_v20 }
 0xc0c   :  { %v5813_v0 = vpop.eup %5812 }
 0xc0d   :  { %v2534_v23 = vmul.f32 %v5813_v0, %v2533_v57 }
 0xc0f   :  { %v2536_v4 = vadd.f32 %v2535_v40, %v2534_v23 }
 0xc11   :  { %v2537_v5 = vsel %vm687_vm12, %v2536_v4, %v2356_v33  ;;  %v2538_v12 = vsel %vm687_vm12, %v2536_v4, 0.0 }
 0xc12   :  { %2539 = vst.msk [vmem:[#allocation2 + $0x8] sm:$0xff] %vm342_vm7, %v2538_v12  ;;  %4904 = vmatmul.mubr.msk.f32.vlgmr.msra.gmra.mrb[32].mxu1 %vm342_vm7, %v2537_v5  ;;  %5260 = vmatmul.mubr.msk.f32.vlgmr.msra.gmra.mrb[28].mxu0 %vm342_vm7, %v2537_v5 }
 0xc13   :  { %5566 = vmatpush1.bf16.msra.mxu1 %v6555_v63  ;;  %5573 = vmatpush3.bf16.msra.mxu0 %v6494_v30 }
 0xc14   :  { %5568 = vmatprep.subr.bf16.mxu1 %v6557_v1  ;;  %5574 = vmatprep.subr.bf16.mxu0 %v5925_v39 }
 0xc15   :  { %2800 = vmatprep.mubr.f32.mxu1 %v5923_v3  ;;  %5270 = vmatprep.mubr.msk.f32.mxu0 %vm5926_vm5, %v5923_v3 }
 0xc17   :  { %5570 = vmatpush1.bf16.msra.mxu1 %v6570_v27  ;;  %5576 = vmatpush3.bf16.msra.mxu0 %v6601_v58 }
 0xc18   :  { %5578 = vmatprep.subr.bf16.mxu1 %v6553_v7  ;;  %5585 = vmatprep.subr.bf16.mxu0 %v5925_v39 }
 0xce5   :  { %v2621_v29 = vpop.f32.mrb[32].mxu1  ;;  %v2692_v13 = vpop.f32.mrb[28].mxu0 }
 0xce6   :  { %v5661_v62 = vadd.f32 %v2621_v29, %v6637_v56  ;;  %v2623_v2 = vpop.f32.mrb[33].mxu1  ;;  %v5261_v22 = vpop.f32.mrb[29].mxu0  ;;  %v2710_v16 = vadd.f32 %v2692_v13, %v6651_v11 }
 0xce7   :  { %v5662_v31 = vadd.f32 %v2623_v2, %v6640_v45 }
 0xce8   :  { %v4906_v26 = vmul.f32 -1.442695, %v5661_v62 }
 0xce9   :  { %v4907_v49 = vmul.f32 -1.442695, %v5662_v31 }
 0xcea   :  { %5814 = vpow2.f32 %v4906_v26 }
 0xceb   :  { %5816 = vpow2.f32 %v4907_v49 }
 0xcf4   :  { %v5815_v33 = vpop.eup %5814 }
 0xcf5   :  { %v2700_v15 = vadd.f32 1.0, %v5815_v33  ;;  %v5817_v37 = vpop.eup %5816 }
 0xcf6   :  { %v2707_v10 = vadd.f32 1.0, %v5817_v37 }
 0xcf7   :  { %5818 = vrcp.f32 %v2700_v15 }
 0xcf8   :  { %5820 = vrcp.f32 %v2707_v10 }
 0xd01   :  { %v5819_v36 = vpop.eup %5818 }
 0xd02   :  { %v2711_v41 = vmul.f32 %v5819_v36, %v2710_v16  ;;  %v5821_v43 = vpop.eup %5820 }
 0xd03   :  { %v2714_v44 = vsub.f32 1.0, %v5821_v43  ;;  %v2716_v55 = vmul.f32 %v5821_v43, %v2537_v5 }
 0xd04   :  { %v2712_v42 = vadd.f32 %v2711_v41, %v6611_v21 }
 0xd06   :  { %5822 = vtanh.f32 %v2712_v42 }
 0xd10   :  { %v5823_v52 = vpop.eup %5822 }
 0xd11   :  { %v2715_v60 = vmul.f32 %v5823_v52, %v2714_v44 }
 0xd13   :  { %v2717_v18 = vadd.f32 %v2716_v55, %v2715_v60 }
 0xd15   :  { %v2718_v25 = vsel %vm860_vm13, %v2717_v18, %v2537_v5  ;;  %v2719_v8 = vsel %vm860_vm13, %v2717_v18, 0.0 }
 0xd16   :  { %2720 = vst.msk [vmem:[#allocation2 + $0x10] sm:$0xff] %vm342_vm7, %v2719_v8  ;;  %4908 = vmatmul.mubr.msk.f32.vlgmr.msra.gmra.mrb[34].mxu1 %vm342_vm7, %v2718_v25  ;;  %5271 = vmatmul.mubr.msk.f32.vlgmr.msra.gmra.mrb[30].mxu0 %vm342_vm7, %v2718_v25 }
 0xd17   :  { %5580 = vmatpush1.bf16.msra.mxu1 %v6555_v63  ;;  %5587 = vmatpush3.bf16.msra.mxu0 %v6494_v30 }
 0xd18   :  { %5582 = vmatprep.subr.bf16.mxu1 %v6557_v1  ;;  %5588 = vmatprep.subr.bf16.mxu0 %v5925_v39 }
 0xd19   :  { %2981 = vmatprep.mubr.f32.mxu1 %v5923_v3  ;;  %5281 = vmatprep.mubr.msk.f32.mxu0 %vm5926_vm5, %v5923_v3 }
 0xd1b   :  { %5584 = vmatpush1.bf16.msra.mxu1 %v6570_v27  ;;  %5590 = vmatpush3.bf16.msra.mxu0 %v6601_v58 }
 0xd1c   :  { %5592 = vmatprep.subr.bf16.mxu1 %v6553_v7  ;;  %5599 = vmatprep.subr.bf16.mxu0 %v5925_v39 }
 0xde9   :  { %v2802_v59 = vpop.f32.mrb[34].mxu1  ;;  %v2873_v21 = vpop.f32.mrb[30].mxu0 }
 0xdea   :  { %v5663_v34 = vadd.f32 %v2802_v59, %v6637_v56  ;;  %v2804_v20 = vpop.f32.mrb[35].mxu1  ;;  %v5272_v6 = vpop.f32.mrb[31].mxu0  ;;  %v2891_v29 = vadd.f32 %v2873_v21, %v6651_v11 }
 0xdeb   :  { %v5664_v0 = vadd.f32 %v2804_v20, %v6640_v45 }
 0xdec   :  { %v4910_v57 = vmul.f32 -1.442695, %v5663_v34 }
 0xded   :  { %v4911_v23 = vmul.f32 -1.442695, %v5664_v0 }
 0xdee   :  { %5824 = vpow2.f32 %v4910_v57 }
 0xdef   :  { %5826 = vpow2.f32 %v4911_v23 }
 0xdf8   :  { %v5825_v40 = vpop.eup %5824 }
 0xdf9   :  { %v2881_v4 = vadd.f32 1.0, %v5825_v40  ;;  %v5827_v5 = vpop.eup %5826 }
 0xdfa   :  { %v2888_v12 = vadd.f32 1.0, %v5827_v5 }
 0xdfb   :  { %5828 = vrcp.f32 %v2881_v4 }
 0xdfc   :  { %5830 = vrcp.f32 %v2888_v12 }
 0xe05   :  { %v5829_v13 = vpop.eup %5828 }
 0xe06   :  { %v2892_v62 = vmul.f32 %v5829_v13, %v2891_v29  ;;  %v5831_v22 = vpop.eup %5830 }
 0xe07   :  { %v2895_v26 = vsub.f32 1.0, %v5831_v22  ;;  %v2897_v33 = vmul.f32 %v5831_v22, %v2718_v25 }
 0xe08   :  { %v2893_v2 = vadd.f32 %v2892_v62, %v6609_v19 }
 0xe0a   :  { %5832 = vtanh.f32 %v2893_v2 }
 0xe14   :  { %v5833_v31 = vpop.eup %5832 }
 0xe15   :  { %v2896_v49 = vmul.f32 %v5833_v31, %v2895_v26 }
 0xe17   :  { %v2898_v15 = vadd.f32 %v2897_v33, %v2896_v49 }
 0xe19   :  { %v2899_v37 = vsel %vm1033_vm14, %v2898_v15, %v2718_v25  ;;  %v2900_v10 = vsel %vm1033_vm14, %v2898_v15, 0.0 }
 0xe1a   :  { %2901 = vst.msk [vmem:[#allocation2 + $0x18] sm:$0xff] %vm342_vm7, %v2900_v10  ;;  %4912 = vmatmul.mubr.msk.f32.vlgmr.msra.gmra.mrb[36].mxu1 %vm342_vm7, %v2899_v37  ;;  %5282 = vmatmul.mubr.msk.f32.vlgmr.msra.gmra.mrb[32].mxu0 %vm342_vm7, %v2899_v37 }
 0xe1b   :  { %5594 = vmatpush1.bf16.msra.mxu1 %v6555_v63  ;;  %5601 = vmatpush3.bf16.msra.mxu0 %v6494_v30 }
 0xe1c   :  { %5596 = vmatprep.subr.bf16.mxu1 %v6557_v1  ;;  %5602 = vmatprep.subr.bf16.mxu0 %v5925_v39 }
 0xe1d   :  { %3162 = vmatprep.mubr.f32.mxu1 %v5923_v3  ;;  %5292 = vmatprep.mubr.msk.f32.mxu0 %vm5926_vm5, %v5923_v3 }
 0xe1f   :  { %5598 = vmatpush1.bf16.msra.mxu1 %v6570_v27  ;;  %5604 = vmatpush3.bf16.msra.mxu0 %v6601_v58 }
 0xe20   :  { %5606 = vmatprep.subr.bf16.mxu1 %v6553_v7  ;;  %5613 = vmatprep.subr.bf16.mxu0 %v5925_v39 }
 0xeed   :  { %v2983_v38 = vpop.f32.mrb[36].mxu1  ;;  %v3054_v19 = vpop.f32.mrb[32].mxu0 }
 0xeee   :  { %v5665_v16 = vadd.f32 %v2983_v38, %v6637_v56  ;;  %v2985_v36 = vpop.f32.mrb[37].mxu1  ;;  %v5283_v41 = vpop.f32.mrb[33].mxu0  ;;  %v3072_v25 = vadd.f32 %v3054_v19, %v6651_v11 }
 0xeef   :  { %v5666_v43 = vadd.f32 %v2985_v36, %v6640_v45 }
 0xef0   :  { %v4914_v42 = vmul.f32 -1.442695, %v5665_v16 }
 0xef1   :  { %v4915_v44 = vmul.f32 -1.442695, %v5666_v43 }
 0xef2   :  { %5834 = vpow2.f32 %v4914_v42 }
 0xef3   :  { %5836 = vpow2.f32 %v4915_v44 }
 0xefc   :  { %v5835_v52 = vpop.eup %5834 }
 0xefd   :  { %v3062_v60 = vadd.f32 1.0, %v5835_v52  ;;  %v5837_v55 = vpop.eup %5836 }
 0xefe   :  { %v3069_v18 = vadd.f32 1.0, %v5837_v55 }
 0xeff   :  { %5838 = vrcp.f32 %v3062_v60 }
 0xf00   :  { %5840 = vrcp.f32 %v3069_v18 }
 0xf09   :  { %v5839_v8 = vpop.eup %5838 }
 0xf0a   :  { %v3073_v59 = vmul.f32 %v5839_v8, %v3072_v25  ;;  %v5841_v34 = vpop.eup %5840 }
 0xf0b   :  { %v3076_v20 = vsub.f32 1.0, %v5841_v34  ;;  %v3078_v0 = vmul.f32 %v5841_v34, %v2899_v37 }
 0xf0c   :  { %v3074_v21 = vadd.f32 %v3073_v59, %v6615_v28 }
 0xf0e   :  { %5842 = vtanh.f32 %v3074_v21 }
 0xf18   :  { %v5843_v6 = vpop.eup %5842 }
 0xf19   :  { %v3077_v57 = vmul.f32 %v5843_v6, %v3076_v20  ;;  %v4017_v20 = vsub.f32 0.0, %v6508_v35 }
 0xf1b   :  { %v3079_v23 = vadd.f32 %v3078_v0, %v3077_v57  ;;  %v4018_v57 = vmul.f32 1.442695, %v4017_v20 }
 0xf1d   :  { %v3080_v40 = vsel %vm1206_vm15, %v3079_v23, %v2899_v37  ;;  %v3081_v4 = vsel %vm1206_vm15, %v3079_v23, 0.0 }
 0xf1e   :  { %3082 = vst.msk [vmem:[#allocation2 + $0x20] sm:$0xff] %vm342_vm7, %v3081_v4  ;;  %4916 = vmatmul.mubr.msk.f32.vlgmr.msra.gmra.mrb[38].mxu1 %vm342_vm7, %v3080_v40  ;;  %5293 = vmatmul.mubr.msk.f32.vlgmr.msra.gmra.mrb[34].mxu0 %vm342_vm7, %v3080_v40 }
 0xf1f   :  { %5608 = vmatpush1.bf16.msra.mxu1 %v6555_v63  ;;  %5615 = vmatpush3.bf16.msra.mxu0 %v6494_v30 }
 0xf20   :  { %5610 = vmatprep.subr.bf16.mxu1 %v6557_v1  ;;  %5616 = vmatprep.subr.bf16.mxu0 %v5925_v39 }
 0xf21   :  { %3343 = vmatprep.mubr.f32.mxu1 %v5923_v3  ;;  %5303 = vmatprep.mubr.msk.f32.mxu0 %vm5926_vm5, %v5923_v3 }
 0xf23   :  { %5612 = vmatpush1.bf16.msra.mxu1 %v6570_v27  ;;  %5618 = vmatpush3.bf16.msra.mxu0 %v6601_v58 }
 0xf24   :  { %5620 = vmatprep.subr.bf16.mxu1 %v6553_v7  ;;  %5627 = vmatprep.subr.bf16.mxu0 %v5925_v39 }
 0xff1   :  { %v3164_v14 = vpop.f32.mrb[38].mxu1  ;;  %v3235_v28 = vpop.f32.mrb[34].mxu0 }
 0xff2   :  { %v5667_v5 = vadd.f32 %v3164_v14, %v6637_v56  ;;  %v3166_v12 = vpop.f32.mrb[39].mxu1  ;;  %v5294_v29 = vpop.f32.mrb[35].mxu0  ;;  %v3253_v7 = vadd.f32 %v3235_v28, %v6651_v11  ;;  %v3635_v28 = vld [vmem:[%s7165_s14 + $0x10] sm:$0xff] }
 0xff3   :  { %v5668_v62 = vadd.f32 %v3166_v12, %v6640_v45 }
 0xff4   :  { %v4918_v13 = vmul.f32 -1.442695, %v5667_v5  ;;  %v3636_v5 = vld [vmem:[%s7165_s14 + $0x18] sm:$0xff] }
 0xff5   :  { %v4919_v2 = vmul.f32 -1.442695, %v5668_v62  ;;  %v5637_v29 = vpack.c.bf16 %v3636_v5, %v3635_v28 }
 0xff6   :  { %5844 = vpow2.f32 %v4918_v13 }
 0xff7   :  { %5846 = vpow2.f32 %v4919_v2  ;;  %v3625_v2 = vld [vmem:[#allocation2] sm:$0xff] }
0x1000   :  { %v5845_v22 = vpop.eup %5844 }
0x1001   :  { %v3243_v26 = vadd.f32 1.0, %v5845_v22  ;;  %v5847_v31 = vpop.eup %5846 }
0x1002   :  { %v3250_v49 = vadd.f32 1.0, %v5847_v31  ;;  %v3626_v31 = vld [vmem:[#allocation2 + $0x8] sm:$0xff] }
0x1003   :  { %5848 = vrcp.f32 %v3243_v26  ;;  %v6832_v26 = vld [vmem:[%s7166_s4] sm:$0xff] }
0x1004   :  { %5850 = vrcp.f32 %v3250_v49  ;;  %v3627_v49 = vld [vmem:[#allocation2 + $0x10] sm:$0xff] }
0x100d   :  { %v5849_v33 = vpop.eup %5848 }
0x100e   :  { %v3254_v15 = vmul.f32 %v5849_v33, %v3253_v7  ;;  %v5851_v10 = vpop.eup %5850  ;;  %v6843_v7 = vmul.f32 %v6832_v26, %v6832_v26  ;;  %v3628_v33 = vld [vmem:[#allocation2 + $0x18] sm:$0xff] }
0x100f   :  { %v3257_v38 = vsub.f32 1.0, %v5851_v10  ;;  %v3259_v36 = vmul.f32 %v5851_v10, %v3080_v40 }
0x1010   :  { %v3255_v37 = vadd.f32 %v3254_v15, %v6613_v24  ;;  %v3629_v15 = vld [vmem:[#allocation2 + $0x20] sm:$0xff] }
0x1012   :  { %5852 = vtanh.f32 %v3255_v37  ;;  %v5927_v37 = vmov 1.0  }
0x101c   :  { %v5853_v19 = vpop.eup %5852 }
0x101d   :  { %v3258_v16 = vmul.f32 %v5853_v19, %v3257_v38 }
0x101f   :  { %v3260_v41 = vadd.f32 %v3259_v36, %v3258_v16 }
0x1021   :  { %v3261_v42 = vsel %vm1379_vm1, %v3260_v41, %v3080_v40  ;;  %v3262_v43 = vsel %vm1379_vm1, %v3260_v41, 0.0 }
0x1022   :  { %3263 = vst.msk [vmem:[#allocation2 + $0x28] sm:$0xff] %vm342_vm7, %v3262_v43  ;;  %4920 = vmatmul.mubr.msk.f32.vlgmr.msra.gmra.mrb[40].mxu1 %vm342_vm7, %v3261_v42  ;;  %5304 = vmatmul.mubr.msk.f32.vlgmr.msra.gmra.mrb[36].mxu0 %vm342_vm7, %v3261_v42 }
0x1023   :  { %5622 = vmatpush1.bf16.msra.mxu1 %v6555_v63  ;;  %5629 = vmatpush3.bf16.msra.mxu0 %v6494_v30  ;;  %v3634_v30 = vld [vmem:[%s7165_s14 + $0x8] sm:$0xff] }
0x1024   :  { %5624 = vmatprep.subr.bf16.mxu1 %v6557_v1  ;;  %5630 = vmatprep.subr.bf16.mxu0 %v5925_v39  ;;  %v5633_v39 = vpack.c.bf16 %v3634_v30, %v3633_v46  ;;  %v3639_v46 = vsub.s32 6, %v6176_v48 }
0x1025   :  { %3524 = vmatprep.mubr.f32.mxu1 %v5923_v3  ;;  %5314 = vmatprep.mubr.msk.f32.mxu0 %vm5926_vm5, %v5923_v3 }
0x1027   :  { %5626 = vmatpush1.bf16.msra.mxu1 %v6570_v27  ;;  %5632 = vmatpush3.bf16.msra.mxu0 %v6601_v58 }
0x1028   :  { %5337 = vmatprep.subr.mxu1 %v5923_v3  ;;  %5634 = vmatprep.subr.bf16.mxu0 %v5633_v39 }
0x1029   :  { %v3630_v38 = vld [vmem:[#allocation2 + $0x28] sm:$0xff] }
0x10f5   :  { %v3345_v63 = vpop.f32.mrb[40].mxu1  ;;  %v3416_v1 = vpop.f32.mrb[36].mxu0 }
0x10f6   :  { %v5669_v24 = vadd.f32 %v3345_v63, %v6637_v56  ;;  %v3347_v44 = vpop.f32.mrb[41].mxu1  ;;  %v5305_v27 = vpop.f32.mrb[37].mxu0  ;;  %v3434_v59 = vadd.f32 %v3416_v1, %v6651_v11 }
0x10f7   :  { %v5670_v58 = vadd.f32 %v3347_v44, %v6640_v45 }
0x10f8   :  { %v4922_v52 = vmul.f32 -1.442695, %v5669_v24  ;;  %v6874_v24 = vrot.slane %v6648_v9, %v3639_v46 }
0x10f9   :  { %v4923_v60 = vmul.f32 -1.442695, %v5670_v58 }
0x10fa   :  { %5854 = vpow2.f32 %v4922_v52 }
0x10fb   :  { %5856 = vpow2.f32 %v4923_v60 }
0x1104   :  { %v5855_v55 = vpop.eup %5854 }
0x1105   :  { %v3424_v18 = vadd.f32 1.0, %v5855_v55  ;;  %v5857_v25 = vpop.eup %5856 }
0x1106   :  { %v3431_v8 = vadd.f32 1.0, %v5857_v25 }
0x1107   :  { %5858 = vrcp.f32 %v3424_v18 }
0x1108   :  { %5860 = vrcp.f32 %v3431_v8 }
0x1111   :  { %v5859_v21 = vpop.eup %5858 }
0x1112   :  { %v3435_v34 = vmul.f32 %v5859_v21, %v3434_v59  ;;  %v5861_v0 = vpop.eup %5860 }
0x1113   :  { %v3438_v23 = vsub.f32 1.0, %v5861_v0  ;;  %v3440_v14 = vmul.f32 %v5861_v0, %v3261_v42 }
0x1114   :  { %v3436_v6 = vadd.f32 %v3435_v34, %v6619_v32 }
0x1116   :  { %5862 = vtanh.f32 %v3436_v6 }
0x1117   :  { %5864 = vpow2.f32 %v4018_v57 }
0x1120   :  { %v5863_v40 = vpop.eup %5862 }
0x1121   :  { %v3439_v4 = vmul.f32 %v5863_v40, %v3438_v23  ;;  %v6804_v62 = vpop.eup %5864 }
0x1122   :  { %v4043_v22 = vmul.f32 %v6804_v62, %v6521_v51 }
0x1123   :  { %v3441_v12 = vadd.f32 %v3440_v14, %v3439_v4 }
0x1124   :  { %v4193_v10 = vmul.f32 %v4043_v22, %v6521_v51 }
0x1125   :  { %v6800_v32 = vsel %vm1552_vm2, %v3441_v12, %v3261_v42  ;;  %v3443_v13 = vsel %vm1552_vm2, %v3441_v12, 0.0 }
0x1126   :  { %3444 = vst.msk [vmem:[#allocation2 + $0x30] sm:$0xff] %vm342_vm7, %v3443_v13  ;;  %4924 = vmatmul.mubr.msk.f32.vlgmr.msra.gmra.mrb[42].mxu1 %vm342_vm7, %v6800_v32  ;;  %5315 = vmatmul.mubr.msk.f32.vlgmr.msra.gmra.mrb[38].mxu0 %vm342_vm7, %v6800_v32 }
0x1127   :  { %5636 = vmatpush3.bf16.msra.mxu0 %v5633_v39  ;;  %5338 = vmatpush3.xpose.msk.msra.mxu1 %vm1829_vm4, %v6804_v62 }
0x1128   :  { %5325 = vmatprep.mubr.msk.f32.mxu0 %vm342_vm7, %v3625_v2  ;;  %5638 = vmatprep.subr.bf16.mxu0 %v5637_v29 }
0x1129   :  { %5339 = vmatprep.mubr.msk.f32.mxu1 %vm5926_vm5, %v5923_v3  ;;  %5342 = vmatprep.subr.mxu1 %v5923_v3 }
0x112a   :  { %5340 = vmatmul.mubr.msk.f32.vlgmr.msra.gmra.mrb[44].mxu1 %vm1829_vm4, %v6816_v17 }
0x112b   :  { %5640 = vmatpush3.bf16.msra.mxu0 %v5637_v29  ;;  %5343 = vmatpush3.xpose.msk.msra.mxu1 %vm1829_vm4, %v4043_v22 }
0x112c   :  { %5344 = vmatprep.mubr.msk.f32.mxu1 %vm5926_vm5, %v5923_v3  ;;  %5352 = vmatprep.subr.mxu1 %v5923_v3 }
0x112d   :  { %5347 = vmatprep.subr.mxu0 %v5923_v3  ;;  %v3631_v19 = vld [vmem:[#allocation2 + $0x30] sm:$0xff] }
0x112e   :  { %5326 = vmatmul.mubr.msk.f32.vlgmr.msra.gmra.mrb[40].mxu0 %vm342_vm7, %v3626_v31  ;;  %5345 = vmatmul.mubr.msk.f32.vlgmr.msra.gmra.mrb[46].mxu1 %vm1829_vm4, %v6524_v54 }
0x112f   :  { %5328 = vmatprep.mubr.msk.f32.mxu0 %vm342_vm7, %v3627_v49  ;;  %5353 = vmatpush3.xpose.msk.msra.mxu1 %vm1829_vm4, %v6508_v35 }
0x1130   :  { %5354 = vmatprep.mubr.msk.f32.mxu1 %vm5926_vm5, %v5923_v3  ;;  %5362 = vmatprep.subr.mxu1 %v5923_v3 }
0x1132   :  { %5329 = vmatmul.mubr.msk.f32.gmra.mrb[42].mxu0 %vm342_vm7, %v3628_v33  ;;  %5355 = vmatmul.mubr.msk.f32.vlgmr.msra.gmra.mrb[48].mxu1 %vm1829_vm4, %v5927_v37 }
0x1133   :  { %5331 = vmatprep.mubr.msk.f32.mxu0 %vm342_vm7, %v3629_v15  ;;  %5363 = vmatpush3.xpose.msk.msra.mxu1 %vm1829_vm4, %v6843_v7 }
0x1134   :  { %5348 = vmatpush3.xpose.msk.msra.mxu0 %vm1829_vm4, %v4193_v10  ;;  %5364 = vmatprep.mubr.msk.f32.mxu1 %vm5926_vm5, %v5923_v3 }
0x1135   :  { %5372 = vmatprep.subr.mxu1 %v5923_v3  ;;  %5357 = vmatprep.subr.mxu0 %v5923_v3 }
0x1136   :  { %5332 = vmatmul.mubr.msk.f32.gmra.mrb[44].mxu0 %vm342_vm7, %v3630_v38  ;;  %5365 = vmatmul.mubr.msk.f32.vlgmr.msra.gmra.mrb[50].mxu1 %vm1829_vm4, %v5927_v37 }
0x1137   :  { %5334 = vmatprep.mubr.msk.f32.mxu0 %vm342_vm7, %v3631_v19  ;;  %5373 = vmatpush3.xpose.msk.msra.mxu1 %vm1829_vm4, %v6524_v54 }
0x1138   :  { %5374 = vmatprep.mubr.msk.f32.mxu1 %vm5926_vm5, %v5923_v3 }
0x113a   :  { %5375 = vmatmul.mubr.msk.f32.vlgmr.msra.gmra.mrb[52].mxu1 %vm1829_vm4, %v6524_v54 }
0x11f9   :  { %v3526_v16 = vpop.f32.mrb[42].mxu1  ;;  %v3597_v36 = vpop.f32.mrb[38].mxu0 }
0x11fa   :  { %v5671_v41 = vadd.f32 %v3526_v16, %v6637_v56  ;;  %v3528_v42 = vpop.f32.mrb[43].mxu1  ;;  %v5316_v43 = vpop.f32.mrb[39].mxu0  ;;  %v3615_v19 = vadd.f32 %v3597_v36, %v6651_v11 }
0x11fb   :  { %v5672_v39 = vadd.f32 %v3528_v42, %v6640_v45 }
0x11fc   :  { %v4926_v30 = vmul.f32 -1.442695, %v5671_v41 }
0x11fd   :  { %v4116_v63 = vpop.f32.mrb[44].mxu1  ;;  %v4927_v44 = vmul.f32 -1.442695, %v5672_v39 }
0x11fe   :  { %5866 = vpow2.f32 %v4926_v30  ;;  %v5341_v1 = vpop.f32.mrb[45].mxu1 }
0x11ff   :  { %5868 = vpow2.f32 %v4927_v44 }
0x1201   :  { %v5327_v27 = vpop.f32.mrb[40].mxu0  ;;  %v4189_v52 = vpop.f32.mrb[46].mxu1 }
0x1202   :  { %v6877_v58 = vadd.f32 %v5327_v27, %v6874_v24  ;;  %v3731_v56 = vpop.f32.mrb[41].mxu0  ;;  %v5346_v60 = vpop.f32.mrb[47].mxu1  ;;  %v4348_v14 = vmul.f32 2.0, %v4189_v52 }
0x1203   :  { %v6880_v55 = vadd.f32 %v3731_v56, %v6874_v24 }
0x1204   :  { %v3773_v45 = vsel %vm83_vm0, %v6877_v58, -inf }
0x1205   :  { %3774 = vmax.xlane.f32.xlu1 %v3773_v45  ;;  %v5330_v18 = vpop.f32.mrb[42].mxu0  ;;  %v3770_v9 = vsel %vm83_vm0, %v6880_v55, -inf  ;;  %v4339_v25 = vpop.f32.mrb[48].mxu1  ;;  %v6956_v45 = vld [vmem:[%s7157_s6 + $0x28] sm:$0xff] }
0x1206   :  { %v6887_v8 = vadd.f32 %v5330_v18, %v6874_v24  ;;  %v3741_v59 = vpop.f32.mrb[43].mxu0  ;;  %3771 = vmax.xlane.f32.xlu0 %v3770_v9  ;;  %v4340_v21 = vadd.f32 29.406033, %v4339_v25  ;;  %v5356_v34 = vpop.f32.mrb[49].mxu1  ;;  %v6964_v18 = vld [vmem:[%s7157_s6 + $0x20] sm:$0xff]  ;;  %v6969_v9 = vld [vmem:[%s7157_s6 + $0x38] sm:$0xff] }
0x1207   :  { %v6893_v23 = vadd.f32 %v3741_v59, %v6874_v24  ;;  %v6975_v59 = vpop.permute.xlu0 %3880 }
0x1208   :  { %v5867_v20 = vpop.eup %5866  ;;  %v4346_v6 = vrot.slane %v4340_v21, %v6184_v50  ;;  %v3779_v57 = vsel %vm83_vm0, %v6887_v8, -inf  ;;  %v6980_v21 = vld [vmem:[%s7157_s6 + $0x30] sm:$0xff] }
0x1209   :  { %v3605_v0 = vadd.f32 1.0, %v5867_v20  ;;  %v5333_v40 = vpop.f32.mrb[44].mxu0  ;;  %v6895_v4 = vpop.f32.mrb[50].mxu1  ;;  %v3776_v31 = vsel %vm83_vm0, %v6893_v23, -inf }
0x120a   :  { %v4347_v28 = vadd.f32 %v4346_v6, %v4116_v63  ;;  %v3751_v5 = vpop.f32.mrb[45].mxu0  ;;  %3780 = vmax.xlane.f32.xlu0 %v3779_v57  ;;  %v5366_v12 = vpop.f32.mrb[51].mxu1  ;;  %v6901_v2 = vadd.f32 %v5333_v40, %v6874_v24 }
0x120b   :  { %5870 = vrcp.f32 %v3605_v0  ;;  %v6898_v29 = vadd.f32 %v3751_v5, %v6874_v24  ;;  %v5869_v15 = vpop.eup %5868 }
0x120c   :  { %v4349_v13 = vsub.f32 %v4347_v28, %v4348_v14  ;;  %v3785_v10 = vsel %vm83_vm0, %v6901_v2, -inf  ;;  %v3612_v38 = vadd.f32 1.0, %v5869_v15 }
0x120d   :  { %v3782_v22 = vsel %vm83_vm0, %v6898_v29, -inf  ;;  %v6907_v49 = vpop.f32.mrb[52].mxu1 }
0x120e   :  { %3783 = vmax.xlane.f32.xlu1 %v3782_v22  ;;  %3777 = vmax.xlane.f32.xlu0 %v3776_v31  ;;  %v5376_v33 = vpop.f32.mrb[53].mxu1  ;;  %5872 = vrcp.f32 %v3612_v38  ;;  %v4356_v38 = vld [vmem:[%s7167_s5] sm:$0xff] }
0x1212   :  { %3786 = vmax.xlane.f32.xlu0 %v3785_v10 }
0x1215   :  { %v5871_v16 = vpop.eup %5870 }
0x1216   :  { %v3616_v41 = vmul.f32 %v5871_v16, %v3615_v19 }
0x1218   :  { %v3617_v42 = vadd.f32 %v3616_v41, %v6617_v53  ;;  %v5873_v43 = vpop.eup %5872  ;;  %v7013_v41 = vand.u32 127, %v71_v47  ;;  %v4384_v47 = vsel %vm1829_vm4, %v6843_v7, 0.0 }
0x1219   :  { %v3619_v46 = vsub.f32 1.0, %v5873_v43  ;;  %v3621_v63 = vmul.f32 %v5873_v43, %v6800_v32 }
0x121a   :  { %5874 = vtanh.f32 %v3617_v42 }
0x1224   :  { %v5875_v30 = vpop.eup %5874 }
0x1225   :  { %v3620_v39 = vmul.f32 %v5875_v30, %v3619_v46 }
0x1227   :  { %v3622_v1 = vadd.f32 %v3621_v63, %v3620_v39 }
0x1229   :  { %v3623_v44 = vsel %vm1725_vm3, %v3622_v1, 0.0 }
0x122a   :  { %3624 = vst.msk [vmem:[#allocation2 + $0x38] sm:$0xff] %vm342_vm7, %v3623_v44 }
0x1231   :  { %v3632_v27 = vld [vmem:[#allocation2 + $0x38] sm:$0xff] }
0x1232   :  { %5335 = vmatmul.mubr.msk.f32.gmra.mrb[46].mxu0 %vm342_vm7, %v3632_v27  ;;  %vm3901_vm7 = vcmp.eq.s32.totalorder %v7013_v41, %v6975_v59 }
0x1233   :  { %5349 = vmatprep.mubr.msk.f32.mxu0 %vm5926_vm5, %v5923_v3 }
0x1236   :  { %5350 = vmatmul.mubr.msk.f32.vlgmr.msra.gmra.mrb[48].mxu0 %vm1829_vm4, %v5927_v37 }
0x1237   :  { %5358 = vmatpush3.xpose.msk.msra.mxu0 %vm1829_vm4, %v6816_v17  ;;  %5359 = vmatprep.mubr.msk.f32.mxu0 %vm5926_vm5, %v5923_v3 }
0x1238   :  { %5367 = vmatprep.subr.mxu0 %v5923_v3 }
0x123a   :  { %5360 = vmatmul.mubr.msk.f32.vlgmr.msra.gmra.mrb[50].mxu0 %vm1829_vm4, %v5927_v37 }
0x123b   :  { %5368 = vmatpush3.xpose.msk.msra.mxu0 %vm1829_vm4, %v6832_v26  ;;  %5369 = vmatprep.mubr.msk.f32.mxu0 %vm5926_vm5, %v5923_v3 }
0x123c   :  { %5377 = vmatprep.subr.mxu0 %v5923_v3 }
0x123e   :  { %5370 = vmatmul.mubr.msk.f32.vlgmr.msra.gmra.mrb[52].mxu0 %vm1829_vm4, %v6832_v26 }
0x123f   :  { %5378 = vmatpush3.xpose.msk.msra.mxu0 %vm1829_vm4, %v6524_v54  ;;  %5379 = vmatprep.mubr.msk.f32.mxu0 %vm5926_vm5, %v5923_v3  ;;  %vm4015_vm5 = vcmp.lt.s32.totalorder %v7013_v41, 4 }
0x1242   :  { %5380 = vmatmul.mubr.msk.f32.vlgmr.msra.gmra.mrb[54].mxu0 %vm1829_vm4, %v6832_v26 }
0x1293   :  { %v6983_v34 = vpop.xlane.xlu0 %3771 }
0x1294   :  { %v3794_v40 = vsub.f32 %v6880_v55, %v6983_v34 }
0x1296   :  { %v3802_v5 = vmul.f32 1.442695, %v3794_v40 }
0x1297   :  { %v6989_v57 = vpop.xlane.xlu0 %3780 }
0x1298   :  { %v3797_v12 = vsub.f32 %v6887_v8, %v6989_v57 }
0x129a   :  { %v3808_v31 = vmul.f32 1.442695, %v3797_v12 }
0x129b   :  { %v6995_v28 = vpop.xlane.xlu0 %3777 }
0x129c   :  { %v3796_v22 = vsub.f32 %v6893_v23, %v6995_v28 }
0x129e   :  { %v3806_v16 = vmul.f32 1.442695, %v3796_v22 }
0x1305   :  { %v5336_v61 = vpop.f32.mrb[46].mxu0 }
0x1306   :  { %v6943_v53 = vadd.f32 %v5336_v61, %v6874_v24  ;;  %v3761_v11 = vpop.f32.mrb[47].mxu0 }
0x1307   :  { %v6946_v32 = vadd.f32 %v3761_v11, %v6874_v24  ;;  %v6958_v24 = vpop.permute.xlu1 %3877  ;;  %v4024_v11 = vsel %vm1829_vm4, %v6816_v17, 0.0 }
0x1308   :  { %v3791_v37 = vsel %vm83_vm0, %v6943_v53, -inf  ;;  %vm3900_vm8 = vcmp.eq.s32.totalorder %v7013_v41, %v6958_v24 }
0x1309   :  { %3792 = vmax.xlane.f32.xlu0 %v3791_v37  ;;  %v4266_v36 = vpop.f32.mrb[48].mxu0  ;;  %v3788_v52 = vsel %vm83_vm0, %v6946_v32, -inf }
0x130a   :  { %v4353_v56 = vrot.slane %v4266_v36, %v6184_v50  ;;  %3789 = vmax.xlane.f32.xlu1 %v3788_v52  ;;  %v5351_v26 = vpop.f32.mrb[49].mxu0 }
0x130b   :  { %v6971_v25 = vpop.permute.xlu1 %3883 }
0x130c   :  { %v4354_v60 = vadd.f32 %v4353_v56, %v4349_v13  ;;  %v6999_v13 = vpop.xlane.xlu0 %3786  ;;  %vm3902_vm10 = vcmp.eq.s32.totalorder %v7013_v41, %v6971_v25 }
0x130d   :  { %v3799_v15 = vsub.f32 %v6901_v2, %v6999_v13 }
0x130e   :  { %v4355_v10 = vmul.f32 -0.5, %v4354_v60 }
0x130f   :  { %v6985_v20 = vpop.permute.xlu1 %3886  ;;  %v3812_v42 = vmul.f32 1.442695, %v3799_v15 }
0x1310   :  { %v4357_v46 = vadd.f32 %v4356_v38, %v4355_v10  ;;  %vm3903_vm9 = vcmp.eq.s32.totalorder %v7013_v41, %v6985_v20 }
0x1312   :  { %v7020_v44 = vsel %vm4015_vm5, %v4357_v46, -1e+30 }
0x1313   :  { %v6987_v6 = vpop.xlane.xlu1 %3774  ;;  %v4360_v27 = vsel %vm4359_vm6, %v7020_v44, -inf }
0x1314   :  { %v3795_v0 = vsub.f32 %v6877_v58, %v6987_v6 }
0x1316   :  { %v3804_v14 = vmul.f32 1.442695, %v3795_v0  ;;  %v4453_v0 = vpop.f32.mrb[50].mxu0 }
0x1317   :  { %v7003_v33 = vpop.xlane.xlu1 %3783  ;;  %v5361_v40 = vpop.f32.mrb[51].mxu0 }
0x1318   :  { %5876 = vpow2.f32 %v3804_v14  ;;  %v3798_v19 = vsub.f32 %v6898_v29, %v7003_v33  ;;  %v4599_v14 = vpop.f32.mrb[52].mxu0 }
0x1319   :  { %5878 = vpow2.f32 %v3802_v5  ;;  %v5371_v17 = vpop.f32.mrb[53].mxu0 }
0x131a   :  { %5880 = vpow2.f32 %v3808_v31  ;;  %v3810_v39 = vmul.f32 1.442695, %v3798_v19  ;;  %v4786_v5 = vpop.f32.mrb[54].mxu0 }
0x131b   :  { %3892 = vperm.xlu1 %5711, %v6956_v45   ;;  %5882 = vpow2.f32 %v3806_v16  ;;  %v5381_v12 = vpop.f32.mrb[55].mxu0  ;;  %v4791_v40 = vmul.f32 2.0, %v4786_v5 }
0x131c   :  { %5884 = vpow2.f32 %v3812_v42 }
0x131d   :  { %5886 = vpow2.f32 %v3810_v39  ;;  %v3909_v39 = vsel %vm3901_vm7, %v6877_v58, 0.0  ;;  %v3910_v58 = vsel %vm3902_vm10, %v6893_v23, 0.0  ;;  %vm3944_vm7 = vcmp.ne.s32.totalorder %v6964_v18, 0 }
0x131e   :  { %v3919_v59 = vsel %vm83_vm0, %v3909_v39, 0.0  ;;  %vm4811_vm10 = vcmp.eq.s32.totalorder %v7013_v41, 0 }
0x131f   :  { %3889 = vperm.xlu0 %5710, %v6964_v18   ;;  %3898 = vperm.xlu1 %5711, %v6969_v9  }
0x1322   :  { %v5877_v43 = vpop.eup %5876 }
0x1323   :  { %3895 = vperm.xlu0 %5710, %v6980_v21   ;;  %v5879_v30 = vpop.eup %5878  ;;  %v3821_v63 = vsel %vm83_vm0, %v5877_v43, 0.0 }
0x1324   :  { %v3818_v1 = vsel %vm83_vm0, %v5879_v30, 0.0  ;;  %v5881_v61 = vpop.eup %5880 }
0x1325   :  { %v5883_v37 = vpop.eup %5882  ;;  %v3827_v36 = vsel %vm83_vm0, %v5881_v61, 0.0  ;;  %v3922_v61 = vsel %vm83_vm0, %v3910_v58, 0.0 }
0x1326   :  { %v5885_v52 = vpop.eup %5884  ;;  %v3824_v56 = vsel %vm83_vm0, %v5883_v37, 0.0 }
0x1327   :  { %v5887_v26 = vpop.eup %5886  ;;  %v3833_v7 = vsel %vm83_vm0, %v5885_v52, 0.0 }
0x1328   :  { %v3830_v60 = vsel %vm83_vm0, %v5887_v26, 0.0 }
0x1342   :  { %3822 = vadd.xlane.f32.xlu0 %v3821_v63 }
0x1343   :  { %3819 = vadd.xlane.f32.xlu1 %v3818_v1  ;;  %v3908_v1 = vsel %vm3900_vm8, %v6880_v55, 0.0  ;;  %vm3947_vm8 = vcmp.ne.s32.totalorder %v6969_v9, 0 }
0x1344   :  { %v3916_v24 = vsel %vm83_vm0, %v3908_v1, 0.0  ;;  %v4943_v18 = vsel %vm3947_vm8, 1.0, %v5923_v3 }
0x1346   :  { %4361 = vmax.xlane.f32.xlu0 %v4360_v27 }
0x1347   :  { %4385 = vadd.xlane.f32.xlu1 %v4384_v47  ;;  %v3911_v47 = vsel %vm3903_vm9, %v6887_v8, 0.0  ;;  %vm3946_vm9 = vcmp.ne.s32.totalorder %v6980_v21, 0 }
0x1348   :  { %v3925_v20 = vsel %vm83_vm0, %v3911_v47, 0.0  ;;  %v4942_v21 = vsel %vm3946_vm9, 1.0, %v5923_v3 }
0x134a   :  { %4025 = vadd.xlane.f32.xlu0 %v4024_v11 }
0x134b   :  { %3828 = vadd.xlane.f32.xlu1 %v3827_v36 }
0x134e   :  { %3825 = vadd.xlane.f32.xlu0 %v3824_v56 }
0x134f   :  { %3834 = vadd.xlane.f32.xlu1 %v3833_v7  ;;  %v4606_v7 = vrot.slane %v6895_v4, %v6184_v50 }
0x1352   :  { %3831 = vadd.xlane.f32.xlu0 %v3830_v60 }
0x1396   :  { %v7032_v22 = vpop.xlane.xlu0 %3792 }
0x1397   :  { %v3801_v31 = vsub.f32 %v6943_v53, %v7032_v22  ;;  %v7036_v15 = vpop.xlane.xlu1 %3789 }
0x1398   :  { %v3800_v10 = vsub.f32 %v6946_v32, %v7036_v15 }
0x1399   :  { %v3816_v38 = vmul.f32 1.442695, %v3801_v31 }
0x139a   :  { %v3814_v19 = vmul.f32 1.442695, %v3800_v10 }
0x139b   :  { %5888 = vpow2.f32 %v3816_v38  ;;  %v3893_v46 = vpop.permute.xlu1 %3892 }
0x139c   :  { %5890 = vpow2.f32 %v3814_v19  ;;  %vm3905_vm11 = vcmp.eq.s32.totalorder %v7013_v41, %v3893_v46 }
0x139d   :  { %v3913_v25 = vsel %vm3905_vm11, %v6901_v2, 0.0  ;;  %vm4818_vm11 = vcmp.eq.s32.totalorder %v7013_v41, 1 }
0x139e   :  { %v3890_v63 = vpop.permute.xlu0 %3889  ;;  %v3931_v23 = vsel %vm83_vm0, %v3913_v25, 0.0 }
0x139f   :  { %vm3904_vm12 = vcmp.eq.s32.totalorder %v7013_v41, %v3890_v63  ;;  %v3899_v55 = vpop.permute.xlu1 %3898 }
0x13a0   :  { %vm3907_vm13 = vcmp.eq.s32.totalorder %v7013_v41, %v3899_v55  ;;  %v3912_v8 = vsel %vm3904_vm12, %v6898_v29, 0.0  ;;  %v4020_v29 = vsel %vm1829_vm4, %v6508_v35, 0.0  ;;  %vm4821_vm12 = vcmp.eq.s32.totalorder %v7013_v41, 2 }
0x13a1   :  { %v3928_v11 = vsel %vm83_vm0, %v3912_v8, 0.0  ;;  %v3915_v37 = vsel %vm3907_vm13, %v6943_v53, 0.0  ;;  %v4699_v53 = vrot.slane %v4453_v0, %v6184_v50  ;;  %vm4824_vm13 = vcmp.eq.s32.totalorder %v7013_v41, 3 }
0x13a2   :  { %v3896_v27 = vpop.permute.xlu0 %3895  ;;  %v3937_v52 = vsel %vm83_vm0, %v3915_v37, 0.0 }
0x13a3   :  { %vm3906_vm14 = vcmp.eq.s32.totalorder %v7013_v41, %v3896_v27 }
0x13a4   :  { %v3914_v36 = vsel %vm3906_vm14, %v6946_v32, 0.0  ;;  %v4608_v32 = vmul.f32 2.0, %v4599_v14 }
0x13a5   :  { %v5889_v16 = vpop.eup %5888  ;;  %v3934_v2 = vsel %vm83_vm0, %v3914_v36, 0.0 }
0x13a6   :  { %v5891_v42 = vpop.eup %5890  ;;  %v3839_v43 = vsel %vm83_vm0, %v5889_v16, 0.0 }
0x13a7   :  { %3840 = vadd.xlane.f32.xlu1 %v3839_v43  ;;  %v3836_v30 = vsel %vm83_vm0, %v5891_v42, 0.0  ;;  %v4701_v42 = vmul.f32 2.0, %v6907_v49  ;;  %vm4012_vm0 = vcmp.lt.s32.totalorder %v6176_v48, 4 }
0x13a8   :  { %3837 = vadd.xlane.f32.xlu0 %v3836_v30  ;;  %vm4016_vm15 = vmand %vm4012_vm0, %vm4015_vm5  ;;  %vm3988_vm5 = vcmask 7168  }
0x13ab   :  { %3920 = vadd.xlane.f32.xlu1 %v3919_v59 }
0x13ac   :  { %3917 = vadd.xlane.f32.xlu0 %v3916_v24 }
0x13af   :  { %3926 = vadd.xlane.f32.xlu1 %v3925_v20 }
0x13b0   :  { %3923 = vadd.xlane.f32.xlu0 %v3922_v61 }
0x13b3   :  { %3932 = vadd.xlane.f32.xlu1 %v3931_v23 }
0x13b4   :  { %3929 = vadd.xlane.f32.xlu0 %v3928_v11 }
0x13b7   :  { %3938 = vadd.xlane.f32.xlu1 %v3937_v52 }
0x13b8   :  { %3935 = vadd.xlane.f32.xlu0 %v3934_v2 }
0x13bb   :  { %4021 = vadd.xlane.f32.xlu1 %v4020_v29 }
0x13cf   :  { %v3823_v56 = vpop.xlane.xlu0 %3822 }
0x13d0   :  { %v3820_v26 = vpop.xlane.xlu1 %3819 }
0x13d3   :  { %v7075_v60 = vpop.xlane.xlu0 %4361 }
0x13d4   :  { %v4363_v17 = vsub.f32 %v7020_v44, %v7075_v60  ;;  %v4386_v12 = vpop.xlane.xlu1 %4385  ;;  %v4027_v44 = vsub.f32 %v6524_v54, %v6521_v51 }
0x13d5   :  { %v4607_v31 = vadd.f32 %v4606_v7, %v4386_v12  ;;  %v4790_v10 = vadd.f32 %v4699_v53, %v4386_v12 }
0x13d6   :  { %v4364_v38 = vmul.f32 1.442695, %v4363_v17  ;;  %v4028_v24 = vmul.f32 %v4027_v44, %v4027_v44 }
0x13d7   :  { %v4609_v35 = vsub.f32 %v4607_v31, %v4608_v32  ;;  %v7079_v19 = vpop.xlane.xlu0 %4025  ;;  %v4792_v16 = vsub.f32 %v4790_v10, %v4791_v40  ;;  %v5919_v10 = vld [vmem:[%s7157_s6 + $0x8] sm:$0xff] }
0x13d8   :  { %5892 = vpow2.f32 %v4364_v38  ;;  %v4700_v50 = vadd.f32 %v4699_v53, %v7079_v19  ;;  %v4029_v27 = vmul.f32 %v6804_v62, %v4028_v24  ;;  %v3829_v36 = vpop.xlane.xlu1 %3828  ;;  %vm3941_vm1 = vcmp.ne.s32.totalorder %v5919_v10, 0 }
0x13d9   :  { %v4610_v4 = vmax.f32 %v4609_v35, 0.0  ;;  %v4793_v0 = vmax.f32 %v4792_v16, 0.0 }
0x13da   :  { %v4702_v14 = vsub.f32 %v4700_v50, %v4701_v42  ;;  %v4030_v51 = vsel %vm1829_vm4, %v4029_v27, 0.0  ;;  %v4937_v50 = vsel %vm3941_vm1, 1.0, %v5923_v3 }
0x13db   :  { %v4611_v5 = vsub.f32 0.0, %v4610_v4  ;;  %v4794_v43 = vsub.f32 0.0, %v4793_v0  ;;  %v3826_v52 = vpop.xlane.xlu0 %3825 }
0x13dc   :  { %v4703_v46 = vmax.f32 %v4702_v14, 0.0  ;;  %v3835_v2 = vpop.xlane.xlu1 %3834 }
0x13dd   :  { %v4612_v30 = vmul.f32 0.00390625, %v4611_v5  ;;  %v4795_v39 = vmul.f32 0.00390625, %v4794_v43 }
0x13de   :  { %v4704_v63 = vsub.f32 0.0, %v4703_v46  ;;  %v5921_v46 = vld [vmem:[%s7157_s6 + $0x10] sm:$0xff] }
0x13df   :  { %v4613_v1 = vmul.f32 1.442695, %v4612_v30  ;;  %v4796_v59 = vmul.f32 1.442695, %v4795_v39  ;;  %v3832_v29 = vpop.xlane.xlu0 %3831  ;;  %vm3942_vm3 = vcmp.ne.s32.totalorder %v5921_v46, 0 }
0x13e0   :  { %v4705_v47 = vmul.f32 0.00390625, %v4704_v63  ;;  %v4938_v27 = vsel %vm3942_vm3, 1.0, %v5923_v3 }
0x13e1   :  { %5894 = vpow2.f32 %v4613_v1 }
0x13e2   :  { %v5893_v49 = vpop.eup %5892  ;;  %v4706_v58 = vmul.f32 1.442695, %v4705_v47  ;;  %5896 = vpow2.f32 %v4796_v59 }
0x13e3   :  { %v4366_v55 = vsel %vm4359_vm6, %v5893_v49, 0.0 }
0x13e4   :  { %5898 = vpow2.f32 %v4706_v58  ;;  %4367 = vadd.xlane.f32.xlu0 %v4366_v55 }
0x13e5   :  { %5900 = vlog2.f32 %v3823_v56 }
0x13e6   :  { %5902 = vlog2.f32 %v3820_v26  ;;  %v5920_v26 = vld [vmem:[%s7157_s6] sm:$0xff] }
0x13e7   :  { %5904 = vlog2.f32 %v3829_v36  ;;  %vm3940_vm2 = vcmp.ne.s32.totalorder %v5920_v26, 0 }
0x13e8   :  { %4031 = vadd.xlane.f32.xlu0 %v4030_v51  ;;  %5906 = vlog2.f32 %v3826_v52  ;;  %v4936_v43 = vsel %vm3940_vm2, 1.0, %v5923_v3 }
0x13e9   :  { %5908 = vlog2.f32 %v3835_v2  ;;  %v4940_v2 = vsel %vm3944_vm7, 1.0, %v5923_v3 }
0x13ea   :  { %5910 = vlog2.f32 %v3832_v29 }
0x13eb   :  { %v5895_v54 = vpop.eup %5894 }
0x13ec   :  { %v5897_v20 = vpop.eup %5896  ;;  %v4615_v61 = vsel %vm4016_vm15, %v5895_v54, 0.0 }
0x13ed   :  { %v4616_v25 = vsel %vm4359_vm6, %v4615_v61, 0.0  ;;  %v4798_v8 = vsel %vm4016_vm15, %v5897_v20, 0.0 }
0x13ee   :  { %v5899_v23 = vpop.eup %5898  ;;  %4617 = vadd.xlane.f32.xlu1 %v4616_v25  ;;  %v4799_v11 = vsel %vm4359_vm6, %v4798_v8, 0.0 }
0x13ef   :  { %v4708_v62 = vsel %vm4016_vm15, %v5899_v23, 0.0  ;;  %v5901_v7 = vpop.eup %5900 }
0x13f0   :  { %v4709_v37 = vsel %vm4359_vm6, %v4708_v62, 0.0  ;;  %v5903_v53 = vpop.eup %5902  ;;  %v3845_v32 = vmul.f32 0.6931472, %v5901_v7  ;;  %vm3945_vm6 = vcmp.ne.s32.totalorder %v6956_v45, 0 }
0x13f1   :  { %4710 = vadd.xlane.f32.xlu0 %v4709_v37  ;;  %v5905_v40 = vpop.eup %5904  ;;  %v3843_v17 = vmul.f32 0.6931472, %v5903_v53  ;;  %v4941_v45 = vsel %vm3945_vm6, 1.0, %v5923_v3 }
0x13f2   :  { %4800 = vadd.xlane.f32.xlu1 %v4799_v11  ;;  %v5907_v31 = vpop.eup %5906  ;;  %v3849_v38 = vmul.f32 0.6931472, %v5905_v40  ;;  %v3859_v35 = vadd.f32 %v3845_v32, %v6987_v6  ;;  %v5922_v6 = vld [vmem:[%s7157_s6 + $0x18] sm:$0xff] }
0x13f3   :  { %v5909_v16 = vpop.eup %5908  ;;  %v3847_v42 = vmul.f32 0.6931472, %v5907_v31  ;;  %v3858_v0 = vadd.f32 %v3843_v17, %v6983_v34  ;;  %vm3943_vm4 = vcmp.ne.s32.totalorder %v5922_v6, 0 }
0x13f4   :  { %v5911_v14 = vpop.eup %5910  ;;  %v3853_v39 = vmul.f32 0.6931472, %v5909_v16  ;;  %v3861_v34 = vadd.f32 %v3849_v38, %v6989_v57  ;;  %v4939_v58 = vsel %vm3943_vm4, 1.0, %v5923_v3 }
0x13f5   :  { %v3851_v1 = vmul.f32 0.6931472, %v5911_v14  ;;  %v3860_v47 = vadd.f32 %v3847_v42, %v6995_v28 }
0x13f6   :  { %v3863_v28 = vadd.f32 %v3853_v39, %v6999_v13 }
0x13f7   :  { %v3862_v37 = vadd.f32 %v3851_v1, %v7003_v33 }
0x1434   :  { %v3841_v12 = vpop.xlane.xlu1 %3840 }
0x1435   :  { %5912 = vlog2.f32 %v3841_v12  ;;  %v3838_v56 = vpop.xlane.xlu0 %3837 }
0x1436   :  { %5914 = vlog2.f32 %v3838_v56 }
0x1438   :  { %v3921_v4 = vpop.xlane.xlu1 %3920 }
0x1439   :  { %v3965_v5 = vsub.f32 %v3859_v35, %v3921_v4  ;;  %v3918_v44 = vpop.xlane.xlu0 %3917 }
0x143a   :  { %v3964_v30 = vsub.f32 %v3858_v0, %v3918_v44 }
0x143b   :  { %v3973_v63 = vmul.f32 %v4937_v50, %v3965_v5 }
0x143c   :  { %v3972_v59 = vmul.f32 %v4936_v43, %v3964_v30  ;;  %v3927_v24 = vpop.xlane.xlu1 %3926 }
0x143d   :  { %v3990_v49 = vsel %vm3988_vm5, %v3973_v63, 0.0  ;;  %v3967_v55 = vsub.f32 %v3861_v34, %v3927_v24  ;;  %v3924_v51 = vpop.xlane.xlu0 %3923 }
0x143e   :  { %v3989_v54 = vsel %vm3988_vm5, %v3972_v59, 0.0  ;;  %v3966_v57 = vsub.f32 %v3860_v47, %v3924_v51  ;;  %v4372_v47 = vadd.f32 29.406033, %v7079_v19 }
0x143f   :  { %v5913_v20 = vpop.eup %5912  ;;  %v3991_v61 = vadd.f32 %v3990_v49, %v3989_v54  ;;  %v3975_v23 = vmul.f32 %v4939_v58, %v3967_v55  ;;  %v4944_v49 = vsel %vm4012_vm0, 1.0, %v5923_v3 }
0x1440   :  { %v5915_v25 = vpop.eup %5914  ;;  %v3857_v8 = vmul.f32 0.6931472, %v5913_v20  ;;  %v3974_v62 = vmul.f32 %v4938_v27, %v3966_v57  ;;  %v3933_v11 = vpop.xlane.xlu1 %3932  ;;  %v4373_v54 = vmul.f32 -0.5, %v4372_v47  ;;  %v4033_v57 = vmul.f32 -0.5, %v4944_v49 }
0x1441   :  { %v3855_v36 = vmul.f32 0.6931472, %v5915_v25  ;;  %v3969_v52 = vsub.f32 %v3863_v28, %v3933_v11  ;;  %v3930_v29 = vpop.xlane.xlu0 %3929  ;;  %v3994_v33 = vsel %vm3988_vm5, %v3975_v23, 0.0 }
0x1442   :  { %v3992_v13 = vsel %vm3988_vm5, %v3974_v62, 0.0  ;;  %v3968_v7 = vsub.f32 %v3862_v37, %v3930_v29  ;;  %v3865_v53 = vadd.f32 %v3857_v8, %v7032_v22 }
0x1443   :  { %v3993_v32 = vadd.f32 %v3992_v13, %v3991_v61  ;;  %v3864_v40 = vadd.f32 %v3855_v36, %v7036_v15  ;;  %v3977_v17 = vmul.f32 %v4941_v45, %v3969_v52 }
0x1444   :  { %v3976_v12 = vmul.f32 %v4940_v2, %v3968_v7  ;;  %v3939_v31 = vpop.xlane.xlu1 %3938 }
0x1445   :  { %v3995_v10 = vadd.f32 %v3994_v33, %v3993_v32  ;;  %v3971_v56 = vsub.f32 %v3865_v53, %v3939_v31  ;;  %v3936_v26 = vpop.xlane.xlu0 %3935  ;;  %v3998_v15 = vsel %vm3988_vm5, %v3977_v17, 0.0 }
0x1446   :  { %v3996_v38 = vsel %vm3988_vm5, %v3976_v12, 0.0  ;;  %v3970_v22 = vsub.f32 %v3864_v40, %v3936_v26 }
0x1447   :  { %v3997_v35 = vadd.f32 %v3996_v38, %v3995_v10  ;;  %v3979_v16 = vmul.f32 %v4943_v18, %v3971_v56 }
0x1448   :  { %v3978_v42 = vmul.f32 %v4942_v21, %v3970_v22  ;;  %v4022_v63 = vpop.xlane.xlu1 %4021 }
0x1449   :  { %v3999_v50 = vadd.f32 %v3998_v15, %v3997_v35  ;;  %v4002_v14 = vsel %vm3988_vm5, %v3979_v16, 0.0 }
0x144a   :  { %v4000_v4 = vsel %vm3988_vm5, %v3978_v42, 0.0 }
0x144b   :  { %v4001_v0 = vadd.f32 %v4000_v4, %v3999_v50 }
0x144d   :  { %v4003_v9 = vadd.f32 %v4002_v14, %v4001_v0 }
0x144f   :  { %v4004_v5 = vrot.slane %v4003_v9, 4 }
0x1451   :  { %v4005_v43 = vadd.f32 %v4004_v5, %v4003_v9 }
0x1453   :  { %v4006_v44 = vrot.slane %v4005_v43, 2 }
0x1455   :  { %v4007_v46 = vadd.f32 %v4006_v44, %v4005_v43 }
0x1457   :  { %v4008_v6 = vrot.slane %v4007_v46, 1 }
0x1459   :  { %v4009_v30 = vadd.f32 %v4008_v6, %v4007_v46 }
0x145b   :  { %4814 = vperm.xlu0 %5710, %v4009_v30  }
0x1471   :  { %v4368_v39 = vpop.xlane.xlu0 %4367 }
0x1472   :  { %5916 = vlog2.f32 %v4368_v39 }
0x1475   :  { %v4032_v59 = vpop.xlane.xlu0 %4031 }
0x1476   :  { %v4034_v58 = vadd.f32 %v4032_v59, %v4022_v63 }
0x1478   :  { %v4035_v20 = vsub.f32 %v4034_v58, %v7079_v19 }
0x147a   :  { %v4036_v23 = vmul.f32 %v4035_v20, %v4033_v57 }
0x147b   :  { %v4618_v1 = vpop.xlane.xlu1 %4617 }
0x147c   :  { %v5917_v34 = vpop.eup %5916  ;;  %v4619_v61 = vrot.slane %v4618_v1, 4  ;;  %v4037_v48 = vrot.slane %v4036_v23, 4 }
0x147d   :  { %v4370_v24 = vmul.f32 0.6931472, %v5917_v34 }
0x147e   :  { %v4711_v55 = vpop.xlane.xlu0 %4710  ;;  %v4620_v62 = vadd.f32 %v4619_v61, %v4618_v1  ;;  %v4038_v29 = vadd.f32 %v4037_v48, %v4036_v23 }
0x147f   :  { %v4801_v27 = vpop.xlane.xlu1 %4800  ;;  %v4371_v51 = vadd.f32 %v4370_v24, %v7075_v60  ;;  %v4712_v28 = vrot.slane %v4711_v55, 4 }
0x1480   :  { %v4802_v25 = vrot.slane %v4801_v27, 4  ;;  %v4621_v3 = vrot.slane %v4620_v62, 2  ;;  %v4039_v33 = vrot.slane %v4038_v29, 2 }
0x1481   :  { %v4374_v8 = vsub.f32 %v4371_v51, %v4373_v54  ;;  %v4713_v11 = vadd.f32 %v4712_v28, %v4711_v55 }
0x1482   :  { %v4803_v37 = vadd.f32 %v4802_v25, %v4801_v27  ;;  %v4622_v60 = vadd.f32 %v4621_v3, %v4620_v62  ;;  %v4040_v18 = vadd.f32 %v4039_v33, %v4038_v29 }
0x1483   :  { %v4375_v36 = vmul.f32 %v4944_v49, %v4374_v8  ;;  %v4714_v45 = vrot.slane %v4713_v11, 2 }
0x1484   :  { %v4804_v52 = vrot.slane %v4803_v37, 2  ;;  %v4623_v19 = vrot.slane %v4622_v60, 1  ;;  %v4041_v22 = vrot.slane %v4040_v18, 1 }
0x1485   :  { %v4376_v2 = vrot.slane %v4375_v36, 4  ;;  %v4715_v13 = vadd.f32 %v4714_v45, %v4713_v11 }
0x1486   :  { %v4805_v7 = vadd.f32 %v4804_v52, %v4803_v37  ;;  %v4624_v12 = vadd.f32 %v4623_v19, %v4622_v60  ;;  %v4042_v42 = vadd.f32 %v4041_v22, %v4040_v18 }
0x1487   :  { %v4377_v53 = vadd.f32 %v4376_v2, %v4375_v36  ;;  %v4716_v32 = vrot.slane %v4715_v13, 1 }
0x1488   :  { %v4806_v40 = vrot.slane %v4805_v7, 1  ;;  %v4625_v21 = vmul.f32 0.0625, %v4624_v12  ;;  %v4819_v9 = vsel %vm4818_vm11, %v4042_v42, 0.0 }
0x1489   :  { %v4378_v17 = vrot.slane %v4377_v53, 2  ;;  %v4717_v31 = vadd.f32 %v4716_v32, %v4715_v13 }
0x148a   :  { %v4807_v10 = vadd.f32 %v4806_v40, %v4805_v7 }
0x148b   :  { %v4379_v56 = vadd.f32 %v4378_v17, %v4377_v53  ;;  %v4718_v26 = vmul.f32 0.0625, %v4717_v31 }
0x148c   :  { %v4808_v38 = vmul.f32 0.0625, %v4807_v10 }
0x148d   :  { %v4380_v35 = vrot.slane %v4379_v56, 1  ;;  %v4719_v15 = vadd.f32 %v4718_v26, %v4625_v21 }
0x148e   :  { %v4809_v16 = vmul.f32 2.0, %v4808_v38 }
0x148f   :  { %v4381_v50 = vadd.f32 %v4380_v35, %v4379_v56 }
0x1490   :  { %v4810_v0 = vsub.f32 %v4719_v15, %v4809_v16 }
0x1491   :  { %v4822_v43 = vsel %vm4821_vm12, %v4381_v50, 0.0 }
0x1492   :  { %v4825_v46 = vsel %vm4824_vm13, %v4810_v0, 0.0 }
0x14da   :  { %v4815_v4 = vpop.permute.xlu0 %4814 }
0x14db   :  { %v4817_v14 = vsel %vm4811_vm10, %v4815_v4, 0.0 }
0x14dc   :  { %v4820_v5 = vadd.f32 %v4819_v9, %v4817_v14 }
0x14de   :  { %v4823_v44 = vadd.f32 %v4822_v43, %v4820_v5 }
0x14e0   :  { %v4826_v6 = vadd.f32 %v4825_v46, %v4823_v44 }
0x14e2   :  { %4827 = vst [vmem:[%s7168_s15] sm:$0xff] %v4826_v6 }

</bundles_post_ra>
